<compile_context>
chip_gen: v5e
topology: v5e:2x2
jax: 0.10.0
libtpu: 0.0.40
codegen_flags: <defaults>
</compile_context>

<pallas_src>
import functools

import jax
import jax.numpy as jnp
from jax.experimental import pallas as pl
from jax.experimental.pallas import tpu as pltpu


_LANES = 128
# Conservative VMEM budgeting: v7x has only 64 MiB physical VMEM (v5e/v6e: 128).
_VMEM_TILE_BUDGET = 24 << 20   # what our tiles + intermediates may consume
_VMEM_LIMIT_CAP = 56 << 20     # never ask Mosaic for more than this


def _round_up(v, m):
    return ((v + m - 1) // m) * m


def _num_tensorcores_per_chip():
    # v7x has 2 TensorCores per chip (a "parallel" grid axis shards across
    # them); v5e/v6e have a single TC where splitting the batch tile of a
    # mem-bound kernel is pure per-step overhead.
    try:
        kind = jax.devices()[0].device_kind.lower()
        return 2 if "v7" in kind else 1
    except Exception:  # defensive: fall back to "no split"
        return 1


_NUM_TC = _num_tensorcores_per_chip()


def mlp_kernel(x_ref, w1_ref, b1_ref, w2_ref, b2_ref, w3_ref, b3_ref, o_ref,
               *, num_classes, precision):
    cdt = w1_ref.dtype
    # x streams in its native dtype (f32); the cast to the MXU compute dtype is
    # a VPU op that hides under the input DMA.
    x = x_ref[...].astype(cdt)

    # Layer 1: Linear(D -> 128) + ReLU. f32 accumulate, re-cast immediately so
    # the live/spilled activation is held in the narrow compute dtype.
    h1 = jnp.dot(x, w1_ref[...], preferred_element_type=jnp.float32,
                 precision=precision)
    h1 = jnp.maximum(h1 + b1_ref[...], 0.0).astype(cdt)
    # (Dropout p=0.5 -> identity at inference)

    # Layer 2: Linear(128 -> 64, zero-padded to 128 lanes) + ReLU.
    h2 = jnp.dot(h1, w2_ref[...], preferred_element_type=jnp.float32,
                 precision=precision)
    h2 = jnp.maximum(h2 + b2_ref[...], 0.0).astype(cdt)
    # (Dropout p=0.5 -> identity at inference)

    # Layer 3: Linear(64 -> C). Lane-dense (128-wide) only *inside* the kernel;
    # only the real num_classes columns are written back to HBM.
    out = jnp.dot(h2, w3_ref[...], preferred_element_type=jnp.float32,
                  precision=precision)
    out = out + b3_ref[...]
    o_ref[...] = out[:, :num_classes].astype(o_ref.dtype)


def prepare_params(params, compute_dtype=jnp.bfloat16):
    """One-time layout prep (keep OUT of the per-forward path).

    PyTorch layout (out,in)/(out,) -> (in,out) weights in the MXU compute
    dtype, (1,out) f32 biases. The hidden-2 dim (64) and the class dim are
    zero-padded to 128 lanes so every in-kernel matmul / vreg is lane-dense;
    the class padding never reaches HBM (the kernel stores only num_classes
    columns).
    """
    H2 = params["w2"].shape[0]                       # 64
    C = params["w3"].shape[0]
    H2_pad = _round_up(max(H2, _LANES), _LANES)      # 128
    C_pad = _round_up(max(C, _LANES), _LANES)        # >= 128

    w1 = params["w1"].T.astype(compute_dtype)                                   # (D, 128)
    b1 = params["b1"][None, :].astype(jnp.float32)                              # (1, 128)
    w2 = jnp.pad(params["w2"].T, ((0, 0), (0, H2_pad - H2))).astype(compute_dtype)   # (128, 128)
    b2 = jnp.pad(params["b2"], (0, H2_pad - H2))[None, :].astype(jnp.float32)        # (1, 128)
    w3 = jnp.pad(params["w3"].T,
                 ((0, H2_pad - H2), (0, C_pad - C))).astype(compute_dtype)            # (128, C_pad)
    b3 = jnp.pad(params["b3"], (0, C_pad - C))[None, :].astype(jnp.float32)           # (1, C_pad)

    return {"w1": w1, "b1": b1, "w2": w2, "b2": b2, "w3": w3, "b3": b3}


@functools.partial(jax.jit, static_argnames=("num_classes", "block_b"))
def trajectory_classifier_forward(x, prepped, num_classes, block_b=8192):
    """x: (B, D) float; prepped: prepare_params output. Returns (B, num_classes) f32."""
    B, D = x.shape
    w1, b1 = prepped["w1"], prepped["b1"]
    w2, b2 = prepped["w2"], prepped["b2"]
    w3, b3 = prepped["w3"], prepped["b3"]
    C_pad = w3.shape[1]
    x_isz = jnp.dtype(x.dtype).itemsize

    # --- batch tile selection -------------------------------------------------
    # Conservative per-row VMEM bytes: double-buffered x tile, double-buffered
    # (lane-padded) output tile, plus room for the f32 / compute-dtype h1/h2/out
    # intermediates the compiler materialises.
    per_row = 2 * D * x_isz + 2 * C_pad * 4 + 6 * _LANES * 4

    bb = (1 << 20) // max(D * x_isz, 1)          # target ~1 MiB streamed x / step
    bb = min(bb, block_b, 8192)
    if _NUM_TC >= 2 and B > 512:
        bb = min(bb, pl.cdiv(B, _NUM_TC))        # shard across v7x's two TCs
    bb = min(bb, B)
    bb = min(bb, max(256, (_VMEM_TILE_BUDGET // per_row) // 256 * 256))
    block_b_eff = max(256, _round_up(bb, 256))   # full-height MXU passes

    grid = (pl.cdiv(B, block_b_eff),)            # ragged tail: Pallas masks stores

    weight_bytes = sum(int(v.size) * jnp.dtype(v.dtype).itemsize
                       for v in (w1, b1, w2, b2, w3, b3))
    vmem_est = block_b_eff * per_row + 2 * weight_bytes + (2 << 20)
    vmem_limit = int(min(max(2 * vmem_est, 32 << 20), _VMEM_LIMIT_CAP))

    cost = pl.CostEstimate(
        flops=2 * B * (D * _LANES + _LANES * _LANES + _LANES * C_pad),
        transcendentals=0,
        bytes_accessed=B * D * x_isz + B * num_classes * 4 + weight_bytes,
    )

    precision = (jax.lax.Precision.HIGHEST if w1.dtype == jnp.float32
                 else jax.lax.Precision.DEFAULT)
    kernel = functools.partial(mlp_kernel, num_classes=num_classes,
                               precision=precision)

    return pl.pallas_call(
        kernel,
        out_shape=jax.ShapeDtypeStruct((B, num_classes), jnp.float32),
        grid_spec=pltpu.PrefetchScalarGridSpec(
            num_scalar_prefetch=0,
            grid=grid,
            in_specs=[
                pl.BlockSpec((block_b_eff, D), lambda i: (i, 0)),   # x (streamed)
                pl.BlockSpec(w1.shape, lambda i: (0, 0)),           # W1 (resident)
                pl.BlockSpec(b1.shape, lambda i: (0, 0)),           # b1
                pl.BlockSpec(w2.shape, lambda i: (0, 0)),           # W2
                pl.BlockSpec(b2.shape, lambda i: (0, 0)),           # b2
                pl.BlockSpec(w3.shape, lambda i: (0, 0)),           # W3
                pl.BlockSpec(b3.shape, lambda i: (0, 0)),           # b3
            ],
            out_specs=pl.BlockSpec((block_b_eff, num_classes), lambda i: (i, 0)),
        ),
        compiler_params=pltpu.CompilerParams(
            dimension_semantics=("parallel",),
            vmem_limit_bytes=vmem_limit,
        ),
        cost_estimate=cost,
    )(x, w1, b1, w2, b2, w3, b3)


def init_params(key, input_dim, num_classes=2):
    """Deterministic synthetic params with PyTorch nn.Linear shapes: W (out,in), b (out,)."""
    ks = jax.random.split(key, 6)

    def lin(kw, kb, fan_in, fan_out):
        bound = 1.0 / jnp.sqrt(fan_in)
        w = jax.random.uniform(kw, (fan_out, fan_in), jnp.float32, -bound, bound)
        b = jax.random.uniform(kb, (fan_out,), jnp.float32, -bound, bound)
        return w, b

    w1, b1 = lin(ks[0], ks[1], input_dim, 128)
    w2, b2 = lin(ks[2], ks[3], 128, 64)
    w3, b3 = lin(ks[4], ks[5], 64, num_classes)
    return {"w1": w1, "b1": b1, "w2": w2, "b2": b2, "w3": w3, "b3": b3}


def reference_forward(x, p):
    # HIGHEST precision so the f32 kernel comparison at 1e-5 is robust to the
    # TPU default matmul precision.
    hi = jax.lax.Precision.HIGHEST
    h1 = jnp.maximum(jnp.dot(x, p["w1"].T, precision=hi) + p["b1"], 0.0)
    h2 = jnp.maximum(jnp.dot(h1, p["w2"].T, precision=hi) + p["b2"], 0.0)
    return jnp.dot(h2, p["w3"].T, precision=hi) + p["b3"]


if __name__ == "__main__":
    key = jax.random.PRNGKey(0)
    k_x, k_p = jax.random.split(key)

    # B deliberately NOT a multiple of the batch tile to exercise the ragged tail.
    B, D, C = 20, 32, 2
    x = jax.random.normal(k_x, (B, D), jnp.float32)
    params = init_params(k_p, input_dim=D, num_classes=C)

    ref = reference_forward(x, params)

    # f32 compute path (precision=HIGHEST inside the kernel): tight check.
    prep_f32 = prepare_params(params, compute_dtype=jnp.float32)
    out_f32 = jax.block_until_ready(
        trajectory_classifier_forward(x, prep_f32, num_classes=C))
    assert out_f32.shape == (B, C), out_f32.shape
    assert jnp.allclose(out_f32, ref, atol=1e-5, rtol=1e-5), "f32 mismatch vs reference"

    # bf16 operands / f32 accumulation path (the fast path): loose tolerance.
    prep_bf16 = prepare_params(params, compute_dtype=jnp.bfloat16)
    out_bf16 = jax.block_until_ready(
        trajectory_classifier_forward(x, prep_bf16, num_classes=C))
    assert out_bf16.shape == (B, C), out_bf16.shape
    assert jnp.allclose(out_bf16, ref, atol=5e-2, rtol=5e-2), "bf16 mismatch vs reference"

    print("KERNEL_OK")
</pallas_src>

<mosaic_0001>
module attributes {stable_mosaic.version = 11 : i64} {
  func.func @mlp_kernel(%arg0: i32, %arg1: memref<256x32xf32, #tpu.memory_space<vmem>>, %arg2: memref<32x128xf32, #tpu.memory_space<vmem>>, %arg3: memref<1x128xf32, #tpu.memory_space<vmem>>, %arg4: memref<128x128xf32, #tpu.memory_space<vmem>>, %arg5: memref<1x128xf32, #tpu.memory_space<vmem>>, %arg6: memref<128x128xf32, #tpu.memory_space<vmem>>, %arg7: memref<1x128xf32, #tpu.memory_space<vmem>>, %arg8: memref<256x2xf32, #tpu.memory_space<vmem>>) attributes {dimension_semantics = [#tpu.dimension_semantics<parallel>], iteration_bounds = array<i64: 1>, scalar_prefetch = 0 : i64, scratch_operands = 0 : i64, tpu.core_type = #tpu.core_type<tc>, window_params = [{transform_indices = @transform_0, window_bounds = array<i64: 256, 32>}, {pipeline_mode = #tpu.pipeline_mode<synchronous>, transform_indices = @transform_1, window_bounds = array<i64: 32, 128>}, {pipeline_mode = #tpu.pipeline_mode<synchronous>, transform_indices = @transform_2, window_bounds = array<i64: 1, 128>}, {pipeline_mode = #tpu.pipeline_mode<synchronous>, transform_indices = @transform_3, window_bounds = array<i64: 128, 128>}, {pipeline_mode = #tpu.pipeline_mode<synchronous>, transform_indices = @transform_4, window_bounds = array<i64: 1, 128>}, {pipeline_mode = #tpu.pipeline_mode<synchronous>, transform_indices = @transform_5, window_bounds = array<i64: 128, 128>}, {pipeline_mode = #tpu.pipeline_mode<synchronous>, transform_indices = @transform_6, window_bounds = array<i64: 1, 128>}, {transform_indices = @transform_7, window_bounds = array<i64: 256, 2>}]} {
    %c0 = arith.constant 0 : index
    %c0_0 = arith.constant 0 : index
    %0 = vector.load %arg1[%c0, %c0_0] : memref<256x32xf32, #tpu.memory_space<vmem>>, vector<256x32xf32>
    %c0_1 = arith.constant 0 : index
    %c0_2 = arith.constant 0 : index
    %1 = vector.load %arg2[%c0_1, %c0_2] : memref<32x128xf32, #tpu.memory_space<vmem>>, vector<32x128xf32>
    %cst = arith.constant dense<0.000000e+00> : vector<256x128xf32>
    %2 = tpu.matmul %0, %1, %cst {dimension_numbers = #tpu.dot_dimension_numbers<[1], [0], [0], [1], [0, 0, 1, 1], [], []>, precision = #tpu.contract_precision<fp32>} : vector<256x32xf32>, vector<32x128xf32>, vector<256x128xf32> -> vector<256x128xf32>
    %c0_3 = arith.constant 0 : index
    %c0_4 = arith.constant 0 : index
    %3 = vector.load %arg3[%c0_3, %c0_4] : memref<1x128xf32, #tpu.memory_space<vmem>>, vector<1x128xf32>
    %4 = vector.broadcast %3 : vector<1x128xf32> to vector<256x128xf32>
    %5 = arith.addf %2, %4 : vector<256x128xf32>
    %cst_5 = arith.constant 0.000000e+00 : f32
    %6 = vector.broadcast %cst_5 : f32 to vector<256x128xf32>
    %7 = arith.maximumf %5, %6 : vector<256x128xf32>
    %c0_6 = arith.constant 0 : index
    %c0_7 = arith.constant 0 : index
    %8 = vector.load %arg4[%c0_6, %c0_7] : memref<128x128xf32, #tpu.memory_space<vmem>>, vector<128x128xf32>
    %cst_8 = arith.constant dense<0.000000e+00> : vector<256x128xf32>
    %9 = tpu.matmul %7, %8, %cst_8 {dimension_numbers = #tpu.dot_dimension_numbers<[1], [0], [0], [1], [0, 0, 1, 1], [], []>, precision = #tpu.contract_precision<fp32>} : vector<256x128xf32>, vector<128x128xf32>, vector<256x128xf32> -> vector<256x128xf32>
    %c0_9 = arith.constant 0 : index
    %c0_10 = arith.constant 0 : index
    %10 = vector.load %arg5[%c0_9, %c0_10] : memref<1x128xf32, #tpu.memory_space<vmem>>, vector<1x128xf32>
    %11 = vector.broadcast %10 : vector<1x128xf32> to vector<256x128xf32>
    %12 = arith.addf %9, %11 : vector<256x128xf32>
    %cst_11 = arith.constant 0.000000e+00 : f32
    %13 = vector.broadcast %cst_11 : f32 to vector<256x128xf32>
    %14 = arith.maximumf %12, %13 : vector<256x128xf32>
    %c0_12 = arith.constant 0 : index
    %c0_13 = arith.constant 0 : index
    %15 = vector.load %arg6[%c0_12, %c0_13] : memref<128x128xf32, #tpu.memory_space<vmem>>, vector<128x128xf32>
    %cst_14 = arith.constant dense<0.000000e+00> : vector<256x128xf32>
    %16 = tpu.matmul %14, %15, %cst_14 {dimension_numbers = #tpu.dot_dimension_numbers<[1], [0], [0], [1], [0, 0, 1, 1], [], []>, precision = #tpu.contract_precision<fp32>} : vector<256x128xf32>, vector<128x128xf32>, vector<256x128xf32> -> vector<256x128xf32>
    %c0_15 = arith.constant 0 : index
    %c0_16 = arith.constant 0 : index
    %17 = vector.load %arg7[%c0_15, %c0_16] : memref<1x128xf32, #tpu.memory_space<vmem>>, vector<1x128xf32>
    %18 = vector.broadcast %17 : vector<1x128xf32> to vector<256x128xf32>
    %19 = arith.addf %16, %18 : vector<256x128xf32>
    %20 = vector.extract_strided_slice %19 {offsets = [0, 0], sizes = [256, 2], strides = [1, 1]} : vector<256x128xf32> to vector<256x2xf32>
    %c0_17 = arith.constant 0 : index
    %c0_18 = arith.constant 0 : index
    %21 = vector.load %arg8[%c0_17, %c0_18] : memref<256x2xf32, #tpu.memory_space<vmem>>, vector<256x2xf32>
    tpu.vector_store %arg8[%c0_17, %c0_18], %20 {strides = array<i32>} : memref<256x2xf32, #tpu.memory_space<vmem>>, vector<256x2xf32>,
    return
  }
  func.func @transform_0(%arg0: i32) -> (i32, i32) {
    %c0_i32 = arith.constant 0 : i32
    %c0_i32_0 = arith.constant 0 : i32
    return %arg0, %c0_i32 : i32, i32
  }
  func.func @transform_1(%arg0: i32) -> (i32, i32) {
    %c0_i32 = arith.constant 0 : i32
    %c0_i32_0 = arith.constant 0 : i32
    %c0_i32_1 = arith.constant 0 : i32
    return %c0_i32, %c0_i32_0 : i32, i32
  }
  func.func @transform_2(%arg0: i32) -> (i32, i32) {
    %c0_i32 = arith.constant 0 : i32
    %c0_i32_0 = arith.constant 0 : i32
    %c0_i32_1 = arith.constant 0 : i32
    return %c0_i32, %c0_i32_0 : i32, i32
  }
  func.func @transform_3(%arg0: i32) -> (i32, i32) {
    %c0_i32 = arith.constant 0 : i32
    %c0_i32_0 = arith.constant 0 : i32
    %c0_i32_1 = arith.constant 0 : i32
    return %c0_i32, %c0_i32_0 : i32, i32
  }
  func.func @transform_4(%arg0: i32) -> (i32, i32) {
    %c0_i32 = arith.constant 0 : i32
    %c0_i32_0 = arith.constant 0 : i32
    %c0_i32_1 = arith.constant 0 : i32
    return %c0_i32, %c0_i32_0 : i32, i32
  }
  func.func @transform_5(%arg0: i32) -> (i32, i32) {
    %c0_i32 = arith.constant 0 : i32
    %c0_i32_0 = arith.constant 0 : i32
    %c0_i32_1 = arith.constant 0 : i32
    return %c0_i32, %c0_i32_0 : i32, i32
  }
  func.func @transform_6(%arg0: i32) -> (i32, i32) {
    %c0_i32 = arith.constant 0 : i32
    %c0_i32_0 = arith.constant 0 : i32
    %c0_i32_1 = arith.constant 0 : i32
    return %c0_i32, %c0_i32_0 : i32, i32
  }
  func.func @transform_7(%arg0: i32) -> (i32, i32) {
    %c0_i32 = arith.constant 0 : i32
    %c0_i32_0 = arith.constant 0 : i32
    return %arg0, %c0_i32 : i32, i32
  }
}

</mosaic_0001>

<bundles_post_ra>
// kernel: trajectory_classifier_forward.1
= control target key start
LH: loop header
LB: loop body
LE: loop exit
PB: predicated region body
PF: predicated region fallthrough
CT: control target
= control target key end

     0   :  { %12 = vsyncpa [#allocation3], 0  ;;  %s6892_s0 = inlined_call_operand.hbm [shape: f32[20,32], index: 0, kind: input, shape index: {}]   ;;  %s6893_s1 = inlined_call_operand.hbm [shape: f32[32,128], index: 1, kind: input, shape index: {}]   ;;  %s6894_s2 = inlined_call_operand.hbm [shape: f32[1,128], index: 2, kind: input, shape index: {}]   ;;  %s6895_s3 = inlined_call_operand.hbm [shape: f32[128,128], index: 3, kind: input, shape index: {}]   ;;  %s6896_s4 = inlined_call_operand.vmem [shape: f32[1,128], index: 4, kind: input, shape index: {}]   ;;  %s6897_s5 = inlined_call_operand.hbm [shape: f32[128,128], index: 5, kind: input, shape index: {}]   ;;  %s6898_s6 = inlined_call_operand.vmem [shape: f32[1,128], index: 6, kind: input, shape index: {}]   ;;  %s6899_s7 = inlined_call_operand.vmem [shape: f32[20,2], index: 7, kind: output, shape index: {}]  }
   0x1   :  { %13 = vsyncpa [#allocation5], 0 }
   0x2   :  { %14 = vsyncpa [#allocation8], 0 }
   0x3   :  { %18 = vsyncadd [#allocation3], 3712  ;;  %s32_s26 = sshll.u32 %s6893_s1, 4  ;;  %s4324_s27 = smov [#allocation4]   ;;  %s33_s26 = int_to_ptr.hbm [resolvable:$true] %s32_s26 }
   0x4   :  { %s34_s28 = sshll.u32 %s4324_s27, 4  ;;  %s56_s8 = sshll.u32 %s6895_s3, 4  ;;  %s35_s28 = int_to_ptr.vmem [resolvable:$true] %s34_s28  ;;  %s57_s8 = int_to_ptr.hbm [resolvable:$true] %s56_s8 }
   0x5   :  { %s4325_s9 = smov 128   ;;  %s4326_s10 = smov 8  }
   0x6   :  { %40 = dma.hbm_to_vmem [thread:$0]  %s33_s26, 512, %s35_s28, [#allocation5], %s4325_s9, %s4325_s9, %s4326_s10  }
   0x7   :  { %s4327_s11 = smov [#allocation7]   ;;  %s19_s15 = sshll.u32 %s6892_s0, 4  ;;  %s20_s15 = int_to_ptr.hbm [resolvable:$true] %s19_s15 }
   0x8   :  { %s58_s12 = sshll.u32 %s4327_s11, 4  ;;  %s46_s17 = sshll.u32 %s6894_s2, 4  ;;  %s59_s12 = int_to_ptr.vmem [resolvable:$true] %s58_s12  ;;  %s47_s17 = int_to_ptr.hbm [resolvable:$true] %s46_s17 }
   0x9   :  { %64 = dma.hbm_to_vmem [thread:$0]  %s57_s8, 2048, %s59_s12, [#allocation8], %s4325_s9, %s4325_s9, %s4326_s10  }
   0xa   :  { %s4328_s18 = smov [#allocation2]   ;;  %s4329_s3 = smov [#allocation6]  }
   0xb   :  { %s21_s19 = sshll.u32 %s4328_s18, 4  ;;  %s48_s20 = sshll.u32 %s4329_s3, 4  ;;  %s22_s19 = int_to_ptr.vmem [resolvable:$true] %s21_s19  ;;  %s49_s20 = int_to_ptr.vmem [resolvable:$true] %s48_s20 }
   0xc   :  { %27 = dma.hbm_to_vmem [thread:$0]  %s20_s15, 384, %s22_s19, [#allocation3], %s4325_s9, %s4325_s9, %s4326_s10  }
   0xd   :  { %s71_s23 = sshll.u32 %s6897_s5, 4  ;;  %s4330_s0 = smov [#allocation9]   ;;  %s72_s23 = int_to_ptr.hbm [resolvable:$true] %s71_s23 }
   0xe   :  { %51 = dma.hbm_to_vmem [thread:$0]  %s47_s17, 16, %s49_s20, [#allocation5]  }
   0xf   :  { %s73_s24 = sshll.u32 %s4330_s0, 4  ;;  %s74_s24 = int_to_ptr.vmem [resolvable:$true] %s73_s24 }
  0x10   :  { %79 = dma.hbm_to_vmem [thread:$0]  %s72_s23, 2048, %s74_s24, [#allocation8], %s4325_s9, %s4325_s9, %s4326_s10  }
  0x11   :  { %4318 = dma.done.wait [#allocation3], 4096  }
  0x12   :  { %4319 = vsyncadd [#allocation3], 4294963200 }
  0x13   :  { %4320 = dma.done.wait [#allocation5], 528  }
  0x14   :  { %4321 = vsyncadd [#allocation5], 4294966768 }
  0x15   :  { %4322 = dma.done.wait [#allocation8], 4096  }
  0x16   :  { %4323 = vsyncadd [#allocation8], 4294963200  ;;  %vm142_vm0 = vcmask 261120   ;;  %v137_v0 = vld [vmem:[#allocation4 + $0x18] sm:$0xff]  ;;  %v136_v1 = vld [vmem:[#allocation4 + $0x10] sm:$0xff]  ;;  %vm4093_vm1 = vcmask 15360  }
  0x17   :  { %v135_v2 = vld [vmem:[#allocation4 + $0x8] sm:$0xff]  ;;  %v4386_v3 = vand.u32 4294901760, %v137_v0  ;;  %v4388_v4 = vand.u32 4294901760, %v136_v1  ;;  %v134_v6 = vld [vmem:[#allocation4] sm:$0xff]  ;;  %v104_v37 = vld [vmem:[#allocation2 + $0x10] sm:$0xff] }
  0x18   :  { %v4390_v5 = vand.u32 4294901760, %v135_v2  ;;  %v102_v7 = vld [vmem:[#allocation2] sm:$0xff]  ;;  %v4392_v9 = vand.u32 4294901760, %v134_v6  ;;  %v103_v12 = vld [vmem:[#allocation2 + $0x8] sm:$0xff]  ;;  %v120_v38 = vld [vmem:[#allocation2 + $0x90] sm:$0xff]  ;;  %v150_v49 = vsel %vm142_vm0, %v104_v37, 0 }
  0x19   :  { %v118_v8 = vld [vmem:[#allocation2 + $0x80] sm:$0xff]  ;;  %v144_v10 = vsel %vm142_vm0, %v102_v7, 0  ;;  %v119_v13 = vld [vmem:[#allocation2 + $0x88] sm:$0xff]  ;;  %252 = vmatpush.msra.mxu0 %v4386_v3  ;;  %4178 = vmatpush.msra.mxu2 %v4386_v3  ;;  %v529_v14 = vsub.f32 %v137_v0, %v4386_v3  ;;  %v535_v17 = vsub.f32 %v136_v1, %v4388_v4  ;;  %v147_v20 = vsel %vm142_vm0, %v103_v12, 0  ;;  %v105_v46 = vld [vmem:[#allocation2 + $0x18] sm:$0xff] }
  0x1a   :  { %v192_v11 = vsel %vm142_vm0, %v118_v8, 0  ;;  %v4399_v15 = vand.u32 4294901760, %v144_v10  ;;  %v541_v18 = vsub.f32 %v135_v2, %v4390_v5  ;;  %v4406_v19 = vsub.f32 %v134_v6, %v4392_v9  ;;  %v121_v51 = vld [vmem:[#allocation2 + $0x98] sm:$0xff]  ;;  %v106_v7 = vld [vmem:[#allocation2 + $0x20] sm:$0xff] }
  0x1b   :  { %v4401_v16 = vand.u32 4294901760, %v192_v11  ;;  %v195_v21 = vsel %vm142_vm0, %v119_v13, 0  ;;  %254 = vmatpush.msra.mxu0 %v4388_v4  ;;  %4179 = vmatpush.msra.mxu2 %v4388_v4  ;;  %v530_v22 = vand.u32 4294901760, %v529_v14  ;;  %v536_v25 = vand.u32 4294901760, %v535_v17  ;;  %v122_v8 = vld [vmem:[#allocation2 + $0xa0] sm:$0xff] }
  0x1c   :  { %v4413_v23 = vsub.f32 %v144_v10, %v4399_v15  ;;  %v542_v26 = vand.u32 4294901760, %v541_v18  ;;  %v548_v27 = vand.u32 4294901760, %v4406_v19  ;;  %v4419_v28 = vand.u32 4294901760, %v147_v20 }
  0x1d   :  { %v4416_v24 = vsub.f32 %v192_v11, %v4401_v16  ;;  %v4421_v29 = vand.u32 4294901760, %v195_v21  ;;  %256 = vmatpush.msra.mxu0 %v4390_v5  ;;  %4180 = vmatpush.msra.mxu2 %v4390_v5  ;;  %v531_v30 = vsub.f32 %v529_v14, %v530_v22  ;;  %v537_v33 = vsub.f32 %v535_v17, %v536_v25 }
  0x1e   :  { %v6921_v31 = vand.u32 4294901760, %v4413_v23  ;;  %v543_v34 = vsub.f32 %v541_v18, %v542_v26  ;;  %v4428_v35 = vsub.f32 %v147_v20, %v4419_v28  ;;  %v549_v43 = vsub.f32 %v4406_v19, %v548_v27 }
  0x1f   :  { %v6907_v32 = vand.u32 4294901760, %v4416_v24  ;;  %v4431_v36 = vsub.f32 %v195_v21, %v4421_v29  ;;  %258 = vmatpush.msra.mxu0 %v4392_v9  ;;  %4181 = vmatpush.msra.mxu2 %v4392_v9  ;;  %v532_v39 = vand.u32 4294901760, %v531_v30  ;;  %v538_v42 = vand.u32 4294901760, %v537_v33  ;;  %v123_v30 = vld [vmem:[#allocation2 + $0xa8] sm:$0xff] }
  0x20   :  { %v262_v40 = vsub.f32 %v4413_v23, %v6921_v31  ;;  %v6919_v44 = vand.u32 4294901760, %v4428_v35  ;;  %v198_v50 = vsel %vm142_vm0, %v120_v38, 0  ;;  %v544_v52 = vand.u32 4294901760, %v543_v34 }
  0x21   :  { %v390_v41 = vsub.f32 %v4416_v24, %v6907_v32  ;;  %695 = vmatpush.msrb.mxu2 %v529_v14  ;;  %v6906_v45 = vand.u32 4294901760, %v4431_v36  ;;  %1094 = vmatpush.msrb.mxu0 %v530_v22  ;;  %v4451_v54 = vand.u32 4294901760, %v150_v49  ;;  %v4453_v55 = vand.u32 4294901760, %v198_v50 }
  0x22   :  { %533 = vmatpush.msra.mxu1 %v532_v39  ;;  %4182 = vmatpush.msra.mxu3 %v532_v39  ;;  %v263_v47 = vand.u32 4294901760, %v262_v40  ;;  %v270_v53 = vsub.f32 %v4428_v35, %v6919_v44  ;;  %v153_v57 = vsel %vm142_vm0, %v105_v46, 0  ;;  %v550_v58 = vand.u32 4294901760, %v549_v43  ;;  %v124_v43 = vld [vmem:[#allocation2 + $0xb0] sm:$0xff] }
  0x23   :  { %v391_v48 = vand.u32 4294901760, %v390_v41  ;;  %698 = vmatpush.msrb.mxu2 %v535_v17  ;;  %1098 = vmatpush.msrb.mxu0 %v536_v25  ;;  %v398_v56 = vsub.f32 %v4431_v36, %v6906_v45  ;;  %v4460_v59 = vsub.f32 %v150_v49, %v4451_v54  ;;  %v4463_v60 = vsub.f32 %v198_v50, %v4453_v55 }
  0x24   :  { %264 = vmatmul.f32.vlgmr.msra.gmra.mxu0 %v263_v47  ;;  %539 = vmatpush.msra.mxu1 %v538_v42  ;;  %v201_v61 = vsel %vm142_vm0, %v121_v51, 0  ;;  %v271_v62 = vand.u32 4294901760, %v270_v53  ;;  %v4466_v63 = vand.u32 4294901760, %v153_v57  ;;  %v156_v11 = vsel %vm142_vm0, %v106_v7, 0 }
  0x25   :  { %392 = vmatmul.f32.vlgmr.msra.gmra.mxu2 %v391_v48  ;;  %4183 = vmatpush.msra.mxu3 %v538_v42  ;;  %v399_v0 = vand.u32 4294901760, %v398_v56  ;;  %v6917_v1 = vand.u32 4294901760, %v4460_v59  ;;  %v6905_v2 = vand.u32 4294901760, %v4463_v60  ;;  %v4470_v6 = vand.u32 4294901760, %v201_v61  ;;  %v108_v42 = vld [vmem:[#allocation2 + $0x30] sm:$0xff] }
  0x26   :  { %701 = vmatpush.msrb.mxu2 %v541_v18  ;;  %1102 = vmatpush.msrb.mxu0 %v542_v26  ;;  %v4477_v10 = vsub.f32 %v153_v57, %v4466_v63  ;;  %v204_v17 = vsel %vm142_vm0, %v122_v8, 0  ;;  %v107_v26 = vld [vmem:[#allocation2 + $0x28] sm:$0xff]  ;;  %v207_v34 = vsel %vm142_vm0, %v123_v30, 0  ;;  %v162_v50 = vsel %vm142_vm0, %v108_v42, 0 }
  0x27   :  { %545 = vmatpush.msra.mxu1 %v544_v52  ;;  %4184 = vmatpush.msra.mxu3 %v544_v52  ;;  %v278_v12 = vsub.f32 %v4460_v59, %v6917_v1  ;;  %v406_v13 = vsub.f32 %v4463_v60, %v6905_v2  ;;  %v4488_v14 = vsub.f32 %v201_v61, %v4470_v6  ;;  %v4497_v18 = vand.u32 4294901760, %v204_v17 }
  0x28   :  { %704 = vmatpush.msrb.mxu2 %v4406_v19  ;;  %1106 = vmatpush.msrb.mxu0 %v548_v27  ;;  %v6916_v22 = vand.u32 4294901760, %v4477_v10  ;;  %v159_v19 = vsel %vm142_vm0, %v107_v26, 0  ;;  %v4523_v38 = vand.u32 4294901760, %v207_v34  ;;  %v210_v51 = vsel %vm142_vm0, %v124_v43, 0 }
  0x29   :  { %551 = vmatpush.msra.mxu1 %v550_v58  ;;  %4185 = vmatpush.msra.mxu3 %v550_v58  ;;  %v279_v20 = vand.u32 4294901760, %v278_v12  ;;  %v407_v21 = vand.u32 4294901760, %v406_v13  ;;  %v6904_v25 = vand.u32 4294901760, %v4488_v14  ;;  %v4518_v33 = vsub.f32 %v204_v17, %v4497_v18 }
  0x2a   :  { %553 = vmatmul.f32.vlgmr.msra.gmra.mxu1 %v4399_v15  ;;  %617 = vmatmul.f32.vlgmr.msra.gmra.mxu3 %v4401_v16  ;;  %v4521_v37 = vand.u32 4294901760, %v159_v19  ;;  %v4533_v47 = vsub.f32 %v207_v34, %v4523_v38  ;;  %v4545_v58 = vand.u32 4294901760, %v162_v50  ;;  %v4547_v61 = vand.u32 4294901760, %v210_v51  ;;  %v126_v34 = vld [vmem:[#allocation2 + $0xc0] sm:$0xff] }
  0x2b   :  { %879 = vmatpush.msrb.mxu3 %v4386_v3  ;;  %1249 = vmatpush.msrb.mxu1 %v4386_v3  ;;  %v4495_v3 = vand.u32 4294901760, %v156_v11  ;;  %v414_v27 = vsub.f32 %v4488_v14, %v6904_v25  ;;  %v6903_v41 = vand.u32 4294901760, %v4518_v33 }
  0x2c   :  { %272 = vmatmul.f32.gmra.mxu0 %v271_v62  ;;  %v4530_v46 = vsub.f32 %v159_v19, %v4521_v37  ;;  %v6901_v53 = vand.u32 4294901760, %v4533_v47  ;;  %7107 = vst [vmem:[#allocation14_spill] sm:$0xff] %v4547_v61  ;;  %v109_v62 = vld [vmem:[#allocation2 + $0x38] sm:$0xff]  ;;  %v4561_v12 = vsub.f32 %v210_v51, %v4547_v61 }
  0x2d   :  { %400 = vmatmul.f32.gmra.mxu2 %v399_v0  ;;  %881 = vmatpush.msrb.mxu3 %v4388_v4  ;;  %v415_v39 = vand.u32 4294901760, %v414_v27  ;;  %v422_v49 = vsub.f32 %v4518_v33, %v6903_v41  ;;  %v125_v0 = vld [vmem:[#allocation2 + $0xb8] sm:$0xff]  ;;  %v165_v13 = vsel %vm142_vm0, %v109_v62, 0  ;;  %v110_v27 = vld [vmem:[#allocation2 + $0x40] sm:$0xff] }
  0x2e   :  { %1251 = vmatpush.msrb.mxu1 %v4388_v4  ;;  %v4507_v4 = vsub.f32 %v156_v11, %v4495_v3  ;;  %v6914_v52 = vand.u32 4294901760, %v4530_v46  ;;  %v430_v8 = vsub.f32 %v4533_v47, %v6901_v53  ;;  %v4558_v11 = vsub.f32 %v162_v50, %v4545_v58 }
  0x2f   :  { %883 = vmatpush.msrb.mxu3 %v4390_v5  ;;  %v423_v57 = vand.u32 4294901760, %v422_v49  ;;  %v213_v17 = vsel %vm142_vm0, %v125_v0, 0  ;;  %v6900_v19 = vand.u32 4294901760, %v4561_v12  ;;  %v216_v49 = vsel %vm142_vm0, %v126_v34, 0 }
  0x30   :  { %1253 = vmatpush.msrb.mxu1 %v4390_v5  ;;  %v286_v5 = vsub.f32 %v4477_v10, %v6916_v22  ;;  %v6915_v40 = vand.u32 4294901760, %v4507_v4  ;;  %v302_v7 = vsub.f32 %v4530_v46, %v6914_v52  ;;  %v431_v26 = vand.u32 4294901760, %v430_v8  ;;  %v127_v8 = vld [vmem:[#allocation2 + $0xc8] sm:$0xff] }
  0x31   :  { %885 = vmatpush.msrb.mxu3 %v4392_v9  ;;  %v6911_v30 = vand.u32 4294901760, %v4558_v11  ;;  %v438_v42 = vsub.f32 %v4561_v12, %v6900_v19  ;;  %v4591_v0 = vand.u32 4294901760, %v216_v49  ;;  %v219_v34 = vsel %vm142_vm0, %v127_v8, 0 }
  0x32   :  { %557 = vmatmul.f32.gmra.mxu1 %v4419_v28  ;;  %621 = vmatmul.f32.gmra.mxu3 %v4421_v29  ;;  %v294_v48 = vsub.f32 %v4507_v4, %v6915_v40 }
  0x33   :  { %1255 = vmatpush.msrb.mxu1 %v4392_v9  ;;  %v287_v9 = vand.u32 4294901760, %v286_v5  ;;  %v4569_v5 = vand.u32 4294901760, %v213_v17  ;;  %7110 = vst [vmem:[#allocation17_spill] sm:$0xff] %v4591_v0 }
  0x34   :  { %280 = vmatmul.f32.gmra.mxu0 %v279_v20  ;;  %v295_v56 = vand.u32 4294901760, %v294_v48  ;;  %v303_v20 = vand.u32 4294901760, %v302_v7  ;;  %v168_v48 = vsel %vm142_vm0, %v110_v27, 0  ;;  %v111_v7 = vld [vmem:[#allocation2 + $0x48] sm:$0xff] }
  0x35   :  { %408 = vmatmul.f32.gmra.mxu2 %v407_v21  ;;  %v4565_v21 = vand.u32 4294901760, %v165_v13  ;;  %7108 = vst [vmem:[#allocation15_spill] sm:$0xff] %v4569_v5  ;;  %v4583_v43 = vsub.f32 %v213_v17, %v4569_v5  ;;  %v4588_v51 = vand.u32 4294901760, %v168_v48  ;;  %v171_v27 = vsel %vm142_vm0, %v111_v7, 0 }
  0x36   :  { %v4611_v53 = vand.u32 4294901760, %v171_v27 }
  0x37   :  { %7109 = vst [vmem:[#allocation16_spill] sm:$0xff] %v4583_v43  ;;  %v6902_v62 = vand.u32 4294901760, %v4583_v43  ;;  %v4599_v17 = vsub.f32 %v168_v48, %v4588_v51 }
  0x3a   :  { %561 = vmatmul.f32.gmra.mxu1 %v4451_v54  ;;  %625 = vmatmul.f32.gmra.mxu3 %v4453_v55 }
  0x3c   :  { %288 = vmatmul.f32.gmra.mxu0 %v287_v9  ;;  %v4574_v9 = vsub.f32 %v165_v13, %v4565_v21 }
  0x3d   :  { %416 = vmatmul.f32.gmra.mxu2 %v415_v39  ;;  %v310_v39 = vsub.f32 %v4558_v11, %v6911_v30 }
  0x3e   :  { %v6910_v50 = vand.u32 4294901760, %v4574_v9 }
  0x40   :  { %v318_v13 = vsub.f32 %v4574_v9, %v6910_v50 }
  0x42   :  { %565 = vmatmul.f32.gmra.mxu1 %v4466_v63  ;;  %629 = vmatmul.f32.gmra.mxu3 %v4470_v6 }
  0x44   :  { %296 = vmatmul.f32.gmra.mxu0 %v295_v56  ;;  %v311_v56 = vand.u32 4294901760, %v310_v39  ;;  %v319_v39 = vand.u32 4294901760, %v318_v13  ;;  %v4624_v13 = vsub.f32 %v171_v27, %v4611_v53  ;;  %v129_v27 = vld [vmem:[#allocation2 + $0xd8] sm:$0xff] }
  0x45   :  { %424 = vmatmul.f32.gmra.mxu2 %v423_v57  ;;  %v439_v57 = vand.u32 4294901760, %v438_v42  ;;  %v6909_v42 = vand.u32 4294901760, %v4599_v17 }
  0x47   :  { %v326_v7 = vsub.f32 %v4599_v17, %v6909_v42  ;;  %v225_v42 = vsel %vm142_vm0, %v129_v27, 0 }
  0x49   :  { %v327_v25 = vand.u32 4294901760, %v326_v7 }
  0x4a   :  { %569 = vmatmul.f32.gmra.mxu1 %v4495_v3  ;;  %633 = vmatmul.f32.gmra.mxu3 %v4497_v18 }
  0x4c   :  { %304 = vmatmul.f32.gmra.mxu0 %v303_v20  ;;  %v446_v20 = vsub.f32 %v4583_v43, %v6902_v62 }
  0x4d   :  { %432 = vmatmul.f32.gmra.mxu2 %v431_v26  ;;  %v4605_v26 = vsub.f32 %v216_v49, %v4591_v0  ;;  %v128_v49 = vld [vmem:[#allocation2 + $0xd0] sm:$0xff] }
  0x4e   :  { %v447_v19 = vand.u32 4294901760, %v446_v20  ;;  %v222_v41 = vsel %vm142_vm0, %v128_v49, 0 }
  0x4f   :  { %7111 = vst [vmem:[#allocation18_spill] sm:$0xff] %v4605_v26  ;;  %v6908_v48 = vand.u32 4294901760, %v4605_v26  ;;  %v4635_v32 = vand.u32 4294901760, %v222_v41 }
  0x51   :  { %v454_v8 = vsub.f32 %v4605_v26, %v6908_v48  ;;  %7114 = vst [vmem:[#allocation21_spill] sm:$0xff] %v4635_v32  ;;  %v113_v48 = vld [vmem:[#allocation2 + $0x58] sm:$0xff]  ;;  %v4649_v7 = vsub.f32 %v222_v41, %v4635_v32  ;;  %v114_v41 = vld [vmem:[#allocation2 + $0x60] sm:$0xff] }
  0x52   :  { %573 = vmatmul.f32.gmra.mxu1 %v4521_v37  ;;  %637 = vmatmul.f32.gmra.mxu3 %v4523_v38  ;;  %v180_v52 = vsel %vm142_vm0, %v114_v41, 0 }
  0x53   :  { %v455_v45 = vand.u32 4294901760, %v454_v8  ;;  %7115 = vst [vmem:[#allocation22_spill] sm:$0xff] %v4649_v7  ;;  %v177_v8 = vsel %vm142_vm0, %v113_v48, 0  ;;  %v6920_v30 = vand.u32 4294901760, %v4649_v7  ;;  %v4677_v44 = vand.u32 4294901760, %v180_v52 }
  0x54   :  { %312 = vmatmul.f32.gmra.mxu0 %v311_v56  ;;  %v4613_v56 = vand.u32 4294901760, %v219_v34  ;;  %v4654_v50 = vand.u32 4294901760, %v177_v8 }
  0x55   :  { %440 = vmatmul.f32.gmra.mxu2 %v439_v57  ;;  %v112_v57 = vld [vmem:[#allocation2 + $0x50] sm:$0xff] }
  0x56   :  { %7112 = vst [vmem:[#allocation19_spill] sm:$0xff] %v4613_v56  ;;  %v4627_v20 = vsub.f32 %v219_v34, %v4613_v56  ;;  %v174_v62 = vsel %vm142_vm0, %v112_v57, 0  ;;  %v4665_v27 = vsub.f32 %v177_v8, %v4654_v50 }
  0x57   :  { %v4631_v2 = vand.u32 4294901760, %v174_v62 }
  0x58   :  { %7113 = vst [vmem:[#allocation20_spill] sm:$0xff] %v4627_v20  ;;  %v6926_v1 = vand.u32 4294901760, %v4665_v27 }
  0x59   :  { %v4640_v34 = vsub.f32 %v174_v62, %v4631_v2 }
  0x5a   :  { %577 = vmatmul.f32.gmra.mxu1 %v4545_v58  ;;  %641 = vmatmul.f32.gmra.mxu3 %v4547_v61 }
  0x5b   :  { %v6918_v62 = vand.u32 4294901760, %v4640_v34 }
  0x5c   :  { %320 = vmatmul.f32.gmra.mxu0 %v319_v39  ;;  %v6913_v39 = vand.u32 4294901760, %v4627_v20 }
  0x5d   :  { %448 = vmatmul.f32.gmra.mxu2 %v447_v19  ;;  %v6912_v19 = vand.u32 4294901760, %v4624_v13  ;;  %v342_v48 = vsub.f32 %v4640_v34, %v6918_v62 }
  0x5e   :  { %v462_v49 = vsub.f32 %v4627_v20, %v6913_v39  ;;  %v130_v39 = vld [vmem:[#allocation2 + $0xe0] sm:$0xff] }
  0x5f   :  { %v334_v57 = vsub.f32 %v4624_v13, %v6912_v19  ;;  %v4657_v19 = vand.u32 4294901760, %v225_v42  ;;  %v228_v40 = vsel %vm142_vm0, %v130_v39, 0  ;;  %v343_v22 = vand.u32 4294901760, %v342_v48 }
  0x60   :  { %v350_v39 = vsub.f32 %v4665_v27, %v6926_v1  ;;  %v4690_v48 = vsub.f32 %v180_v52, %v4677_v44 }
  0x61   :  { %7116 = vst [vmem:[#allocation23_spill] sm:$0xff] %v4657_v19 }
  0x62   :  { %581 = vmatmul.f32.gmra.mxu1 %v4565_v21  ;;  %645 = vmatmul.f32.gmra.mxu3 %v4569_v5 }
  0x64   :  { %328 = vmatmul.f32.gmra.mxu0 %v327_v25  ;;  %v463_v25 = vand.u32 4294901760, %v462_v49  ;;  %v4671_v49 = vsub.f32 %v225_v42, %v4657_v19  ;;  %v131_v42 = vld [vmem:[#allocation2 + $0xe8] sm:$0xff] }
  0x65   :  { %456 = vmatmul.f32.gmra.mxu2 %v455_v45  ;;  %v335_v45 = vand.u32 4294901760, %v334_v57  ;;  %v470_v57 = vsub.f32 %v4649_v7, %v6920_v30  ;;  %v231_v31 = vsel %vm142_vm0, %v131_v42, 0  ;;  %v351_v7 = vand.u32 4294901760, %v350_v39 }
  0x66   :  { %7117 = vst [vmem:[#allocation24_spill] sm:$0xff] %v4671_v49  ;;  %v6929_v8 = vand.u32 4294901760, %v4671_v49  ;;  %v4701_v20 = vand.u32 4294901760, %v231_v31 }
  0x67   :  { %v471_v62 = vand.u32 4294901760, %v470_v57 }
  0x68   :  { %v478_v41 = vsub.f32 %v4671_v49, %v6929_v8  ;;  %7119 = vst [vmem:[#allocation26_spill] sm:$0xff] %v4701_v20  ;;  %v116_v8 = vld [vmem:[#allocation2 + $0x70] sm:$0xff]  ;;  %v4715_v39 = vsub.f32 %v231_v31, %v4701_v20  ;;  %v117_v31 = vld [vmem:[#allocation2 + $0x78] sm:$0xff] }
  0x6a   :  { %585 = vmatmul.f32.gmra.mxu1 %v4588_v51  ;;  %649 = vmatmul.f32.gmra.mxu3 %v4591_v0  ;;  %v479_v1 = vand.u32 4294901760, %v478_v41  ;;  %7120 = vst [vmem:[#allocation27_spill] sm:$0xff] %v4715_v39  ;;  %v186_v41 = vsel %vm142_vm0, %v116_v8, 0  ;;  %v6951_v0 = vand.u32 4294901760, %v4715_v39 }
  0x6c   :  { %336 = vmatmul.f32.gmra.mxu0 %v335_v45  ;;  %v4679_v45 = vand.u32 4294901760, %v228_v40 }
  0x6d   :  { %464 = vmatmul.f32.gmra.mxu2 %v463_v25  ;;  %v115_v25 = vld [vmem:[#allocation2 + $0x68] sm:$0xff] }
  0x6e   :  { %v4693_v57 = vsub.f32 %v228_v40, %v4679_v45  ;;  %v183_v30 = vsel %vm142_vm0, %v115_v25, 0  ;;  %v132_v40 = vld [vmem:[#allocation2 + $0xf0] sm:$0xff] }
  0x6f   :  { %v234_v49 = vsel %vm142_vm0, %v132_v40, 0 }
  0x70   :  { %7118 = vst [vmem:[#allocation25_spill] sm:$0xff] %v4693_v57 }
  0x72   :  { %589 = vmatmul.f32.gmra.mxu1 %v4611_v53  ;;  %653 = vmatmul.f32.gmra.mxu3 %v4613_v56  ;;  %v4697_v56 = vand.u32 4294901760, %v183_v30 }
  0x74   :  { %344 = vmatmul.f32.gmra.mxu0 %v343_v22  ;;  %v6936_v22 = vand.u32 4294901760, %v4690_v48  ;;  %v4706_v52 = vsub.f32 %v183_v30, %v4697_v56 }
  0x75   :  { %472 = vmatmul.f32.gmra.mxu2 %v471_v62  ;;  %v6937_v62 = vand.u32 4294901760, %v4693_v57 }
  0x76   :  { %v358_v25 = vsub.f32 %v4690_v48, %v6936_v22  ;;  %v6946_v30 = vand.u32 4294901760, %v4706_v52  ;;  %v4723_v22 = vand.u32 4294901760, %v234_v49 }
  0x77   :  { %v486_v42 = vsub.f32 %v4693_v57, %v6937_v62  ;;  %v133_v62 = vld [vmem:[#allocation2 + $0xf8] sm:$0xff]  ;;  %v189_v57 = vsel %vm142_vm0, %v117_v31, 0 }
  0x78   :  { %7121 = vst [vmem:[#allocation28_spill] sm:$0xff] %v4723_v22  ;;  %v366_v8 = vsub.f32 %v4706_v52, %v6946_v30  ;;  %v4743_v43 = vand.u32 4294901760, %v189_v57 }
  0x7a   :  { %593 = vmatmul.f32.gmra.mxu1 %v4631_v2  ;;  %657 = vmatmul.f32.gmra.mxu3 %v4635_v32  ;;  %v4720_v32 = vand.u32 4294901760, %v186_v41  ;;  %v367_v26 = vand.u32 4294901760, %v366_v8  ;;  %v4763_v8 = vsub.f32 %v189_v57, %v4743_v43 }
  0x7c   :  { %352 = vmatmul.f32.gmra.mxu0 %v351_v7  ;;  %v487_v7 = vand.u32 4294901760, %v486_v42  ;;  %v4731_v40 = vsub.f32 %v186_v41, %v4720_v32  ;;  %v4737_v42 = vsub.f32 %v234_v49, %v4723_v22 }
  0x7d   :  { %480 = vmatmul.f32.gmra.mxu2 %v479_v1  ;;  %v359_v1 = vand.u32 4294901760, %v358_v25  ;;  %v494_v25 = vsub.f32 %v4715_v39, %v6951_v0 }
  0x7e   :  { %7122 = vst [vmem:[#allocation29_spill] sm:$0xff] %v4737_v42  ;;  %v6952_v5 = vand.u32 4294901760, %v4731_v40  ;;  %v6953_v41 = vand.u32 4294901760, %v4737_v42 }
  0x7f   :  { %v495_v30 = vand.u32 4294901760, %v494_v25 }
  0x80   :  { %v374_v49 = vsub.f32 %v4731_v40, %v6952_v5  ;;  %v502_v31 = vsub.f32 %v4737_v42, %v6953_v41  ;;  %v6961_v5 = vand.u32 4294901760, %v4763_v8 }
  0x82   :  { %597 = vmatmul.f32.gmra.mxu1 %v4654_v50  ;;  %661 = vmatmul.f32.gmra.mxu3 %v4657_v19  ;;  %v237_v19 = vsel %vm142_vm0, %v133_v62, 0 }
  0x84   :  { %360 = vmatmul.f32.gmra.mxu0 %v359_v1  ;;  %v4745_v1 = vand.u32 4294901760, %v237_v19 }
  0x85   :  { %488 = vmatmul.f32.gmra.mxu2 %v487_v7  ;;  %v1432_v7 = vld [vmem:[#allocation7 + $0x78] sm:$0xff] }
  0x86   :  { %7123 = vst [vmem:[#allocation30_spill] sm:$0xff] %v4745_v1  ;;  %v4747_v61 = vand.u32 4294901760, %v1432_v7  ;;  %v4766_v25 = vsub.f32 %v237_v19, %v4745_v1  ;;  %v382_v19 = vsub.f32 %v4763_v8, %v6961_v5  ;;  %v7128_v5 = vand.u32 4294901760, %v4413_v23 }
  0x88   :  { %7124 = vst [vmem:[#allocation31_spill] sm:$0xff] %v4747_v61  ;;  %1438 = vmatpush.msra.mxu2 %v4747_v61  ;;  %v4756_v62 = vsub.f32 %v1432_v7, %v4747_v61  ;;  %2161 = vmatpush.msra.mxu1 %v4747_v61  ;;  %v6959_v41 = vand.u32 4294901760, %v4766_v25  ;;  %v1428_v61 = vld [vmem:[#allocation7 + $0x58] sm:$0xff] }
  0x89   :  { %7125 = vst [vmem:[#allocation32_spill] sm:$0xff] %v4766_v25 }
  0x8a   :  { %601 = vmatmul.f32.gmra.mxu1 %v4677_v44  ;;  %665 = vmatmul.f32.gmra.mxu3 %v4679_v45  ;;  %v6956_v0 = vand.u32 4294901760, %v4756_v62  ;;  %v510_v57 = vsub.f32 %v4766_v25, %v6959_v41 }
  0x8b   :  { %1953 = vmatpush.msra.mxu0 %v4756_v62 }
  0x8c   :  { %368 = vmatmul.f32.gmra.mxu0 %v367_v26  ;;  %v1729_v7 = vsub.f32 %v4756_v62, %v6956_v0  ;;  %v375_v26 = vand.u32 4294901760, %v374_v49  ;;  %v383_v49 = vand.u32 4294901760, %v382_v19  ;;  %v1431_v0 = vld [vmem:[#allocation7 + $0x70] sm:$0xff] }
  0x8d   :  { %496 = vmatmul.f32.gmra.mxu2 %v495_v30  ;;  %v503_v30 = vand.u32 4294901760, %v502_v31  ;;  %v511_v31 = vand.u32 4294901760, %v510_v57  ;;  %v4783_v39 = vand.u32 4294901760, %v1431_v0 }
  0x8e   :  { %v1730_v42 = vand.u32 4294901760, %v1729_v7 }
  0x8f   :  { %7126 = vst [vmem:[#allocation33_spill] sm:$0xff] %v4783_v39  ;;  %1440 = vmatpush.msra.mxu2 %v4783_v39  ;;  %2163 = vmatpush.msra.mxu1 %v4783_v39 }
  0x90   :  { %1731 = vmatpush.msra.mxu3 %v1730_v42  ;;  %v4789_v42 = vsub.f32 %v1431_v0, %v4783_v39  ;;  %v4803_v0 = vld [vmem:[#allocation6] ss:$0 sm:$0xff]  ;;  %v7130_v39 = vand.u32 4294901760, %v4428_v35 }
  0x92   :  { %605 = vmatmul.f32.gmra.mxu1 %v4697_v56  ;;  %669 = vmatmul.f32.gmra.mxu3 %v4701_v20  ;;  %v6960_v7 = vand.u32 4294901760, %v4789_v42  ;;  %v1429_v20 = vld [vmem:[#allocation7 + $0x60] sm:$0xff] }
  0x93   :  { %1956 = vmatpush.msra.mxu0 %v4789_v42 }
  0x94   :  { %376 = vmatmul.f32.gmra.mxu0 %v375_v26  ;;  %v1735_v26 = vsub.f32 %v4789_v42, %v6960_v7 }
  0x95   :  { %504 = vmatmul.f32.gmra.mxu2 %v503_v30 }
  0x96   :  { %v1736_v19 = vand.u32 4294901760, %v1735_v26 }
  0x98   :  { %1737 = vmatpush.msra.mxu3 %v1736_v19 }
  0x9a   :  { %609 = vmatmul.f32.gmra.mxu1 %v4720_v32  ;;  %673 = vmatmul.f32.gmra.mxu3 %v4723_v22 }
  0x9c   :  { %384 = vmatmul.f32.gmra.mxu0 %v383_v49 }
  0x9d   :  { %512 = vmatmul.f32.gmra.mxu2 %v511_v31  ;;  %v1430_v31 = vld [vmem:[#allocation7 + $0x68] sm:$0xff] }
  0x9e   :  { %v4809_v7 = vand.u32 4294901760, %v1430_v31 }
  0xa0   :  { %7127 = vst [vmem:[#allocation34_spill] sm:$0xff] %v4809_v7  ;;  %1442 = vmatpush.msra.mxu2 %v4809_v7  ;;  %v4817_v19 = vsub.f32 %v1430_v31, %v4809_v7  ;;  %2165 = vmatpush.msra.mxu1 %v4809_v7 }
  0xa1   :  { %v4797_v30 = vpop.f32.mrf.mxu0 }
  0xa2   :  { %613 = vmatmul.f32.gmra.mxu1 %v4743_v43  ;;  %677 = vmatmul.f32.gmra.mxu3 %v4745_v1  ;;  %v6970_v25 = vand.u32 4294901760, %v4817_v19 }
  0xa3   :  { %1959 = vmatpush.msra.mxu0 %v4817_v19 }
  0xa4   :  { %1108 = vmatmul.f32.vlgmr.msrb.gmra.mxu0 %v4399_v15 }
  0xa5   :  { %707 = vmatmul.f32.vlgmr.msrb.gmra.mxu2 %v4413_v23 }
  0xa7   :  { %v4805_v49 = vpop.f32.mrf.mxu1 }
  0xa8   :  { %v393_v57 = vpop.f32.mrf.mxu2 }
  0xa9   :  { %v4807_v41 = vpop.f32.mrf.mxu0  ;;  %v394_v26 = vadd.f32 %v4803_v0, %v393_v57  ;;  %v1741_v57 = vsub.f32 %v4817_v19, %v6970_v25 }
  0xaa   :  { %889 = vmatmul.f32.vlgmr.msrb.gmra.mxu3 %v7128_v5  ;;  %1257 = vmatmul.f32.vlgmr.msrb.gmra.mxu1 %v4399_v15 }
  0xab   :  { %v1742_v22 = vand.u32 4294901760, %v1741_v57 }
  0xac   :  { %1112 = vmatmul.f32.gmra.mxu0 %v4419_v28 }
  0xad   :  { %712 = vmatmul.f32.gmra.mxu2 %v4428_v35  ;;  %v618_v1 = vpop.f32.mrf.mxu3  ;;  %1743 = vmatpush.msra.mxu3 %v1742_v22 }
  0xae   :  { %v4824_v23 = vadd.f32 %v618_v1, %v394_v26 }
  0xaf   :  { %v4826_v15 = vpop.f32.mrf.mxu1 }
  0xb0   :  { %7129 = vst [vmem:[#allocation35_spill] sm:$0xff] %v4824_v23  ;;  %v401_v5 = vpop.f32.mrf.mxu2 }
  0xb1   :  { %v4831_v31 = vpop.f32.mrf.mxu0  ;;  %v402_v7 = vadd.f32 %v4803_v0, %v401_v5  ;;  %v4845_v5 = vand.u32 4294901760, %v1429_v20 }
  0xb2   :  { %895 = vmatmul.f32.gmra.mxu3 %v7130_v39  ;;  %1261 = vmatmul.f32.gmra.mxu1 %v4419_v28  ;;  %v7133_v28 = vand.u32 4294901760, %v4460_v59 }
  0xb3   :  { %7132 = vst [vmem:[#allocation37_spill] sm:$0xff] %v4845_v5  ;;  %1444 = vmatpush.msra.mxu2 %v4845_v5  ;;  %v4853_v22 = vsub.f32 %v1429_v20, %v4845_v5  ;;  %2167 = vmatpush.msra.mxu1 %v4845_v5  ;;  %v7135_v5 = vand.u32 4294901760, %v4477_v10 }
  0xb4   :  { %1116 = vmatmul.f32.gmra.mxu0 %v4451_v54 }
  0xb5   :  { %717 = vmatmul.f32.gmra.mxu2 %v4460_v59  ;;  %v622_v1 = vpop.f32.mrf.mxu3  ;;  %1962 = vmatpush.msra.mxu0 %v4853_v22 }
  0xb6   :  { %v4839_v26 = vadd.f32 %v622_v1, %v402_v7  ;;  %v6974_v7 = vand.u32 4294901760, %v4853_v22 }
  0xb7   :  { %v4841_v25 = vpop.f32.mrf.mxu1 }
  0xb8   :  { %7131 = vst [vmem:[#allocation36_spill] sm:$0xff] %v4839_v26  ;;  %v409_v23 = vpop.f32.mrf.mxu2  ;;  %v1747_v20 = vsub.f32 %v4853_v22, %v6974_v7 }
  0xb9   :  { %v4843_v57 = vpop.f32.mrf.mxu0  ;;  %v410_v35 = vadd.f32 %v4803_v0, %v409_v23 }
  0xba   :  { %901 = vmatmul.f32.gmra.mxu3 %v7133_v28  ;;  %1265 = vmatmul.f32.gmra.mxu1 %v4451_v54  ;;  %v1748_v28 = vand.u32 4294901760, %v1747_v20 }
  0xbc   :  { %1120 = vmatmul.f32.gmra.mxu0 %v4466_v63  ;;  %1749 = vmatpush.msra.mxu3 %v1748_v28 }
  0xbd   :  { %722 = vmatmul.f32.gmra.mxu2 %v4477_v10  ;;  %v626_v39 = vpop.f32.mrf.mxu3 }
  0xbe   :  { %v4860_v59 = vadd.f32 %v626_v39, %v410_v35 }
  0xbf   :  { %v4862_v54 = vpop.f32.mrf.mxu1 }
  0xc0   :  { %7134 = vst [vmem:[#allocation38_spill] sm:$0xff] %v4860_v59  ;;  %v417_v23 = vpop.f32.mrf.mxu2 }
  0xc1   :  { %v4867_v1 = vpop.f32.mrf.mxu0  ;;  %v418_v26 = vadd.f32 %v4803_v0, %v417_v23  ;;  %v4881_v23 = vand.u32 4294901760, %v1428_v61 }
  0xc2   :  { %907 = vmatmul.f32.gmra.mxu3 %v7135_v5  ;;  %1269 = vmatmul.f32.gmra.mxu1 %v4466_v63  ;;  %v7138_v63 = vand.u32 4294901760, %v4507_v4 }
  0xc3   :  { %7137 = vst [vmem:[#allocation40_spill] sm:$0xff] %v4881_v23  ;;  %1446 = vmatpush.msra.mxu2 %v4881_v23  ;;  %2169 = vmatpush.msra.mxu1 %v4881_v23 }
  0xc4   :  { %1124 = vmatmul.f32.gmra.mxu0 %v4495_v3 }
  0xc5   :  { %727 = vmatmul.f32.gmra.mxu2 %v4507_v4  ;;  %v630_v35 = vpop.f32.mrf.mxu3 }
  0xc6   :  { %v4875_v39 = vadd.f32 %v630_v35, %v418_v26  ;;  %v4889_v26 = vsub.f32 %v1428_v61, %v4881_v23  ;;  %v7141_v23 = vand.u32 4294901760, %v4530_v46 }
  0xc7   :  { %v4877_v7 = vpop.f32.mrf.mxu1 }
  0xc8   :  { %7136 = vst [vmem:[#allocation39_spill] sm:$0xff] %v4875_v39  ;;  %v425_v59 = vpop.f32.mrf.mxu2  ;;  %v6977_v28 = vand.u32 4294901760, %v4889_v26  ;;  %1965 = vmatpush.msra.mxu0 %v4889_v26 }
  0xc9   :  { %v4879_v20 = vpop.f32.mrf.mxu0  ;;  %v426_v10 = vadd.f32 %v4803_v0, %v425_v59  ;;  %7139 = vst [vmem:[#allocation41_spill] sm:$0xff] %v4889_v26 }
  0xca   :  { %913 = vmatmul.f32.gmra.mxu3 %v7138_v63  ;;  %1273 = vmatmul.f32.gmra.mxu1 %v4495_v3  ;;  %v1753_v61 = vsub.f32 %v4889_v26, %v6977_v28  ;;  %v1427_v26 = vld [vmem:[#allocation7 + $0x50] sm:$0xff] }
  0xcc   :  { %1128 = vmatmul.f32.gmra.mxu0 %v4521_v37  ;;  %v1754_v63 = vand.u32 4294901760, %v1753_v61 }
  0xcd   :  { %732 = vmatmul.f32.gmra.mxu2 %v4530_v46  ;;  %v634_v5 = vpop.f32.mrf.mxu3 }
  0xce   :  { %v4896_v4 = vadd.f32 %v634_v5, %v426_v10  ;;  %1755 = vmatpush.msra.mxu3 %v1754_v63 }
  0xcf   :  { %v4898_v3 = vpop.f32.mrf.mxu1 }
  0xd0   :  { %7140 = vst [vmem:[#allocation42_spill] sm:$0xff] %v4896_v4  ;;  %v433_v59 = vpop.f32.mrf.mxu2 }
  0xd1   :  { %v4903_v35 = vpop.f32.mrf.mxu0  ;;  %v434_v39 = vadd.f32 %v4803_v0, %v433_v59  ;;  %v4917_v59 = vand.u32 4294901760, %v1427_v26 }
  0xd2   :  { %919 = vmatmul.f32.gmra.mxu3 %v7141_v23  ;;  %1277 = vmatmul.f32.gmra.mxu1 %v4521_v37  ;;  %v7144_v37 = vand.u32 4294901760, %v4558_v11 }
  0xd3   :  { %7143 = vst [vmem:[#allocation44_spill] sm:$0xff] %v4917_v59  ;;  %1448 = vmatpush.msra.mxu2 %v4917_v59  ;;  %2171 = vmatpush.msra.mxu1 %v4917_v59 }
  0xd4   :  { %1132 = vmatmul.f32.gmra.mxu0 %v4545_v58 }
  0xd5   :  { %737 = vmatmul.f32.gmra.mxu2 %v4558_v11  ;;  %v638_v10 = vpop.f32.mrf.mxu3 }
  0xd6   :  { %v4911_v5 = vadd.f32 %v638_v10, %v434_v39  ;;  %v4925_v39 = vsub.f32 %v1427_v26, %v4917_v59  ;;  %v7147_v59 = vand.u32 4294901760, %v4574_v9 }
  0xd7   :  { %v4913_v28 = vpop.f32.mrf.mxu1 }
  0xd8   :  { %7142 = vst [vmem:[#allocation43_spill] sm:$0xff] %v4911_v5  ;;  %v441_v4 = vpop.f32.mrf.mxu2  ;;  %v6980_v63 = vand.u32 4294901760, %v4925_v39  ;;  %1968 = vmatpush.msra.mxu0 %v4925_v39 }
  0xd9   :  { %v4915_v61 = vpop.f32.mrf.mxu0  ;;  %v442_v46 = vadd.f32 %v4803_v0, %v441_v4  ;;  %7145 = vst [vmem:[#allocation45_spill] sm:$0xff] %v4925_v39 }
  0xda   :  { %925 = vmatmul.f32.gmra.mxu3 %v7144_v37  ;;  %1281 = vmatmul.f32.gmra.mxu1 %v4545_v58  ;;  %v1759_v26 = vsub.f32 %v4925_v39, %v6980_v63  ;;  %v1426_v39 = vld [vmem:[#allocation7 + $0x48] sm:$0xff] }
  0xdc   :  { %1136 = vmatmul.f32.gmra.mxu0 %v4565_v21  ;;  %v1760_v37 = vand.u32 4294901760, %v1759_v26 }
  0xdd   :  { %742 = vmatmul.f32.gmra.mxu2 %v4574_v9  ;;  %v642_v23 = vpop.f32.mrf.mxu3 }
  0xde   :  { %v4932_v11 = vadd.f32 %v642_v23, %v442_v46  ;;  %1761 = vmatpush.msra.mxu3 %v1760_v37 }
  0xdf   :  { %v4934_v58 = vpop.f32.mrf.mxu1 }
  0xe0   :  { %7146 = vst [vmem:[#allocation46_spill] sm:$0xff] %v4932_v11  ;;  %v449_v4 = vpop.f32.mrf.mxu2 }
  0xe1   :  { %v4939_v10 = vpop.f32.mrf.mxu0  ;;  %v450_v5 = vadd.f32 %v4803_v0, %v449_v4  ;;  %v4953_v4 = vand.u32 4294901760, %v1426_v39 }
  0xe2   :  { %931 = vmatmul.f32.gmra.mxu3 %v7147_v59  ;;  %1285 = vmatmul.f32.gmra.mxu1 %v4565_v21  ;;  %v7150_v21 = vand.u32 4294901760, %v4599_v17 }
  0xe3   :  { %7149 = vst [vmem:[#allocation48_spill] sm:$0xff] %v4953_v4  ;;  %1450 = vmatpush.msra.mxu2 %v4953_v4  ;;  %2173 = vmatpush.msra.mxu1 %v4953_v4 }
  0xe4   :  { %1140 = vmatmul.f32.gmra.mxu0 %v4588_v51 }
  0xe5   :  { %747 = vmatmul.f32.gmra.mxu2 %v4599_v17  ;;  %v646_v46 = vpop.f32.mrf.mxu3 }
  0xe6   :  { %v4947_v23 = vadd.f32 %v646_v46, %v450_v5  ;;  %v4961_v5 = vsub.f32 %v1426_v39, %v4953_v4  ;;  %v7153_v4 = vand.u32 4294901760, %v4624_v13 }
  0xe7   :  { %v4949_v63 = vpop.f32.mrf.mxu1 }
  0xe8   :  { %7148 = vst [vmem:[#allocation47_spill] sm:$0xff] %v4947_v23  ;;  %v457_v11 = vpop.f32.mrf.mxu2  ;;  %v6983_v37 = vand.u32 4294901760, %v4961_v5  ;;  %1971 = vmatpush.msra.mxu0 %v4961_v5 }
  0xe9   :  { %v4951_v26 = vpop.f32.mrf.mxu0  ;;  %v458_v9 = vadd.f32 %v4803_v0, %v457_v11  ;;  %7151 = vst [vmem:[#allocation49_spill] sm:$0xff] %v4961_v5 }
  0xea   :  { %937 = vmatmul.f32.gmra.mxu3 %v7150_v21  ;;  %1289 = vmatmul.f32.gmra.mxu1 %v4588_v51  ;;  %v1765_v39 = vsub.f32 %v4961_v5, %v6983_v37  ;;  %v1425_v5 = vld [vmem:[#allocation7 + $0x40] sm:$0xff] }
  0xec   :  { %1144 = vmatmul.f32.gmra.mxu0 %v4611_v53  ;;  %v1766_v21 = vand.u32 4294901760, %v1765_v39 }
  0xed   :  { %752 = vmatmul.f32.gmra.mxu2 %v4624_v13  ;;  %v650_v59 = vpop.f32.mrf.mxu3 }
  0xee   :  { %v4968_v17 = vadd.f32 %v650_v59, %v458_v9  ;;  %1767 = vmatpush.msra.mxu3 %v1766_v21 }
  0xef   :  { %v4970_v51 = vpop.f32.mrf.mxu1 }
  0xf0   :  { %7152 = vst [vmem:[#allocation50_spill] sm:$0xff] %v4968_v17  ;;  %v465_v11 = vpop.f32.mrf.mxu2 }
  0xf1   :  { %v4975_v46 = vpop.f32.mrf.mxu0  ;;  %v466_v23 = vadd.f32 %v4803_v0, %v465_v11  ;;  %v4989_v11 = vand.u32 4294901760, %v1425_v5 }
  0xf2   :  { %943 = vmatmul.f32.gmra.mxu3 %v7153_v4  ;;  %1293 = vmatmul.f32.gmra.mxu1 %v4611_v53  ;;  %v7156_v53 = vand.u32 4294901760, %v4640_v34 }
  0xf3   :  { %7155 = vst [vmem:[#allocation52_spill] sm:$0xff] %v4989_v11  ;;  %1452 = vmatpush.msra.mxu2 %v4989_v11  ;;  %2175 = vmatpush.msra.mxu1 %v4989_v11 }
  0xf4   :  { %1148 = vmatmul.f32.gmra.mxu0 %v4631_v2 }
  0xf5   :  { %757 = vmatmul.f32.gmra.mxu2 %v4640_v34  ;;  %v654_v9 = vpop.f32.mrf.mxu3 }
  0xf6   :  { %v4983_v59 = vadd.f32 %v654_v9, %v466_v23  ;;  %v4997_v23 = vsub.f32 %v1425_v5, %v4989_v11  ;;  %v7159_v11 = vand.u32 4294901760, %v4665_v27 }
  0xf7   :  { %v4985_v37 = vpop.f32.mrf.mxu1 }
  0xf8   :  { %7154 = vst [vmem:[#allocation51_spill] sm:$0xff] %v4983_v59  ;;  %v473_v17 = vpop.f32.mrf.mxu2  ;;  %v6986_v21 = vand.u32 4294901760, %v4997_v23  ;;  %1974 = vmatpush.msra.mxu0 %v4997_v23 }
  0xf9   :  { %v4987_v39 = vpop.f32.mrf.mxu0  ;;  %v474_v13 = vadd.f32 %v4803_v0, %v473_v17  ;;  %7157 = vst [vmem:[#allocation53_spill] sm:$0xff] %v4997_v23 }
  0xfa   :  { %949 = vmatmul.f32.gmra.mxu3 %v7156_v53  ;;  %1297 = vmatmul.f32.gmra.mxu1 %v4631_v2  ;;  %v1771_v5 = vsub.f32 %v4997_v23, %v6986_v21  ;;  %v1424_v23 = vld [vmem:[#allocation7 + $0x38] sm:$0xff] }
  0xfc   :  { %1152 = vmatmul.f32.gmra.mxu0 %v4654_v50  ;;  %v1772_v53 = vand.u32 4294901760, %v1771_v5 }
  0xfd   :  { %762 = vmatmul.f32.gmra.mxu2 %v4665_v27  ;;  %v658_v4 = vpop.f32.mrf.mxu3 }
  0xfe   :  { %v5004_v34 = vadd.f32 %v658_v4, %v474_v13  ;;  %1773 = vmatpush.msra.mxu3 %v1772_v53 }
  0xff   :  { %v5006_v2 = vpop.f32.mrf.mxu1 }
 0x100   :  { %7158 = vst [vmem:[#allocation54_spill] sm:$0xff] %v5004_v34  ;;  %v481_v17 = vpop.f32.mrf.mxu2 }
 0x101   :  { %v5011_v9 = vpop.f32.mrf.mxu0  ;;  %v482_v59 = vadd.f32 %v4803_v0, %v481_v17  ;;  %v5025_v17 = vand.u32 4294901760, %v1424_v23 }
 0x102   :  { %955 = vmatmul.f32.gmra.mxu3 %v7159_v11  ;;  %1301 = vmatmul.f32.gmra.mxu1 %v4654_v50  ;;  %v7162_v50 = vand.u32 4294901760, %v4690_v48 }
 0x103   :  { %7161 = vst [vmem:[#allocation56_spill] sm:$0xff] %v5025_v17  ;;  %1454 = vmatpush.msra.mxu2 %v5025_v17  ;;  %2177 = vmatpush.msra.mxu1 %v5025_v17 }
 0x104   :  { %1156 = vmatmul.f32.gmra.mxu0 %v4677_v44 }
 0x105   :  { %767 = vmatmul.f32.gmra.mxu2 %v4690_v48  ;;  %v662_v13 = vpop.f32.mrf.mxu3 }
 0x106   :  { %v5019_v4 = vadd.f32 %v662_v13, %v482_v59  ;;  %v5033_v59 = vsub.f32 %v1424_v23, %v5025_v17  ;;  %v7165_v17 = vand.u32 4294901760, %v4706_v52 }
 0x107   :  { %v5021_v21 = vpop.f32.mrf.mxu1 }
 0x108   :  { %7160 = vst [vmem:[#allocation55_spill] sm:$0xff] %v5019_v4  ;;  %v489_v34 = vpop.f32.mrf.mxu2  ;;  %v6989_v53 = vand.u32 4294901760, %v5033_v59  ;;  %1977 = vmatpush.msra.mxu0 %v5033_v59 }
 0x109   :  { %v5023_v5 = vpop.f32.mrf.mxu0  ;;  %v490_v27 = vadd.f32 %v4803_v0, %v489_v34 }
 0x10a   :  { %961 = vmatmul.f32.gmra.mxu3 %v7162_v50  ;;  %1305 = vmatmul.f32.gmra.mxu1 %v4677_v44  ;;  %v1777_v23 = vsub.f32 %v5033_v59, %v6989_v53 }
 0x10c   :  { %1160 = vmatmul.f32.gmra.mxu0 %v4697_v56  ;;  %v1778_v50 = vand.u32 4294901760, %v1777_v23 }
 0x10d   :  { %772 = vmatmul.f32.gmra.mxu2 %v4706_v52  ;;  %v666_v11 = vpop.f32.mrf.mxu3  ;;  %v7167_v52 = vand.u32 4294901760, %v4731_v40 }
 0x10e   :  { %v5040_v48 = vadd.f32 %v666_v11, %v490_v27  ;;  %1779 = vmatpush.msra.mxu3 %v1778_v50  ;;  %v1423_v50 = vld [vmem:[#allocation7 + $0x30] sm:$0xff] }
 0x10f   :  { %v5042_v44 = vpop.f32.mrf.mxu1 }
 0x110   :  { %7163 = vst [vmem:[#allocation57_spill] sm:$0xff] %v5040_v48  ;;  %v497_v34 = vpop.f32.mrf.mxu2 }
 0x111   :  { %v5047_v13 = vpop.f32.mrf.mxu0  ;;  %v498_v4 = vadd.f32 %v4803_v0, %v497_v34 }
 0x112   :  { %7164 = vst [vmem:[#allocation58_spill] sm:$0xff] %v5047_v13  ;;  %967 = vmatmul.f32.gmra.mxu3 %v7165_v17  ;;  %1309 = vmatmul.f32.gmra.mxu1 %v4697_v56 }
 0x114   :  { %1164 = vmatmul.f32.gmra.mxu0 %v4720_v32 }
 0x115   :  { %777 = vmatmul.f32.gmra.mxu2 %v4731_v40  ;;  %v670_v27 = vpop.f32.mrf.mxu3 }
 0x116   :  { %v5055_v11 = vadd.f32 %v670_v27, %v498_v4 }
 0x117   :  { %v5057_v53 = vpop.f32.mrf.mxu1 }
 0x118   :  { %7166 = vst [vmem:[#allocation59_spill] sm:$0xff] %v5055_v11  ;;  %v505_v48 = vpop.f32.mrf.mxu2  ;;  %v5073_v11 = vand.u32 4294901760, %v1423_v50 }
 0x119   :  { %v5059_v13 = vpop.f32.mrf.mxu0  ;;  %v506_v34 = vadd.f32 %v4803_v0, %v505_v48  ;;  %v7171_v48 = vand.u32 4294901760, %v4763_v8 }
 0x11a   :  { %973 = vmatmul.f32.gmra.mxu3 %v7167_v52  ;;  %1313 = vmatmul.f32.gmra.mxu1 %v4720_v32  ;;  %7170 = vst [vmem:[#allocation62_spill] sm:$0xff] %v5073_v11  ;;  %v5081_v32 = vsub.f32 %v1423_v50, %v5073_v11 }
 0x11b   :  { %1456 = vmatpush.msra.mxu2 %v5073_v11  ;;  %2179 = vmatpush.msra.mxu1 %v5073_v11  ;;  %v7173_v11 = vand.u32 4294901760, %v4416_v24 }
 0x11c   :  { %1168 = vmatmul.f32.gmra.mxu0 %v4743_v43  ;;  %v6991_v52 = vand.u32 4294901760, %v5081_v32 }
 0x11d   :  { %782 = vmatmul.f32.gmra.mxu2 %v4763_v8  ;;  %v674_v56 = vpop.f32.mrf.mxu3  ;;  %1980 = vmatpush.msra.mxu0 %v5081_v32  ;;  %v266_v8 = vadd.f32 %v4803_v0, %v4797_v30 }
 0x11e   :  { %v5067_v17 = vadd.f32 %v674_v56, %v506_v34  ;;  %v1783_v50 = vsub.f32 %v5081_v32, %v6991_v52 }
 0x11f   :  { %v5069_v23 = vpop.f32.mrf.mxu1 }
 0x120   :  { %7168 = vst [vmem:[#allocation60_spill] sm:$0xff] %v5067_v17  ;;  %v513_v4 = vpop.f32.mrf.mxu2  ;;  %v1784_v17 = vand.u32 4294901760, %v1783_v50 }
 0x121   :  { %7169 = vst [vmem:[#allocation61_spill] sm:$0xff] %v5069_v23  ;;  %v5071_v27 = vpop.f32.mrf.mxu0  ;;  %v514_v40 = vadd.f32 %v4803_v0, %v513_v4  ;;  %v555_v23 = vadd.f32 %v4805_v49, %v266_v8  ;;  %v1422_v49 = vld [vmem:[#allocation7 + $0x28] sm:$0xff] }
 0x122   :  { %979 = vmatmul.f32.gmra.mxu3 %v7171_v48  ;;  %1317 = vmatmul.f32.gmra.mxu1 %v4743_v43 }
 0x123   :  { %1785 = vmatpush.msra.mxu3 %v1784_v17  ;;  %v7174_v17 = vand.u32 4294901760, %v4431_v36 }
 0x124   :  { %1172 = vmatmul.f32.gmra.mxu0 %v4401_v16 }
 0x125   :  { %787 = vmatmul.f32.gmra.mxu2 %v4416_v24  ;;  %v678_v34 = vpop.f32.mrf.mxu3 }
 0x126   :  { %v5090_v43 = vadd.f32 %v678_v34, %v514_v40  ;;  %v274_v34 = vadd.f32 %v4803_v0, %v4807_v41 }
 0x127   :  { %v5092_v4 = vpop.f32.mrf.mxu1 }
 0x128   :  { %7172 = vst [vmem:[#allocation63_spill] sm:$0xff] %v5090_v43  ;;  %v708_v56 = vpop.f32.mrf.mxu2 }
 0x129   :  { %v5097_v48 = vpop.f32.mrf.mxu0  ;;  %v709_v30 = vadd.f32 %v708_v56, %v555_v23 }
 0x12a   :  { %985 = vmatmul.f32.gmra.mxu3 %v7173_v11  ;;  %1321 = vmatmul.f32.gmra.mxu1 %v4401_v16  ;;  %v5113_v11 = vand.u32 4294901760, %v1422_v49  ;;  %v559_v16 = vadd.f32 %v4826_v15, %v274_v34 }
 0x12c   :  { %1176 = vmatmul.f32.gmra.mxu0 %v4421_v29  ;;  %1458 = vmatpush.msra.mxu2 %v5113_v11  ;;  %v5121_v41 = vsub.f32 %v1422_v49, %v5113_v11 }
 0x12d   :  { %792 = vmatmul.f32.gmra.mxu2 %v4431_v36  ;;  %v890_v40 = vpop.f32.mrf.mxu3  ;;  %2181 = vmatpush.msra.mxu1 %v5113_v11 }
 0x12e   :  { %v5107_v52 = vadd.f32 %v890_v40, %v709_v30  ;;  %v6992_v15 = vand.u32 4294901760, %v5121_v41  ;;  %1983 = vmatpush.msra.mxu0 %v5121_v41 }
 0x12f   :  { %v5109_v43 = vpop.f32.mrf.mxu1 }
 0x130   :  { %v713_v50 = vpop.f32.mrf.mxu2  ;;  %v1789_v40 = vsub.f32 %v5121_v41, %v6992_v15 }
 0x131   :  { %v5111_v24 = vpop.f32.mrf.mxu0  ;;  %v714_v23 = vadd.f32 %v713_v50, %v559_v16  ;;  %v7175_v16 = vand.u32 4294901760, %v4463_v60 }
 0x132   :  { %991 = vmatmul.f32.gmra.mxu3 %v7174_v17  ;;  %1325 = vmatmul.f32.gmra.mxu1 %v4421_v29  ;;  %v282_v29 = vadd.f32 %v4803_v0, %v4831_v31  ;;  %v1790_v50 = vand.u32 4294901760, %v1789_v40 }
 0x134   :  { %1180 = vmatmul.f32.gmra.mxu0 %v4453_v55  ;;  %v563_v49 = vadd.f32 %v4841_v25, %v282_v29  ;;  %1791 = vmatpush.msra.mxu3 %v1790_v50  ;;  %v1421_v25 = vld [vmem:[#allocation7 + $0x20] sm:$0xff] }
 0x135   :  { %797 = vmatmul.f32.gmra.mxu2 %v4463_v60  ;;  %v896_v8 = vpop.f32.mrf.mxu3  ;;  %v5153_v29 = vand.u32 4294901760, %v1421_v25 }
 0x136   :  { %v5130_v36 = vadd.f32 %v896_v8, %v714_v23  ;;  %v290_v23 = vadd.f32 %v4803_v0, %v4843_v57 }
 0x137   :  { %v5132_v30 = vpop.f32.mrf.mxu1  ;;  %1460 = vmatpush.msra.mxu2 %v5153_v29  ;;  %v5161_v57 = vsub.f32 %v1421_v25, %v5153_v29  ;;  %2183 = vmatpush.msra.mxu1 %v5153_v29 }
 0x138   :  { %v718_v56 = vpop.f32.mrf.mxu2 }
 0x139   :  { %v5137_v34 = vpop.f32.mrf.mxu0  ;;  %v719_v31 = vadd.f32 %v718_v56, %v563_v49  ;;  %v7176_v56 = vand.u32 4294901760, %v4488_v14  ;;  %1986 = vmatpush.msra.mxu0 %v5161_v57 }
 0x13a   :  { %997 = vmatmul.f32.gmra.mxu3 %v7175_v16  ;;  %1329 = vmatmul.f32.gmra.mxu1 %v4453_v55  ;;  %v567_v55 = vadd.f32 %v4862_v54, %v290_v23  ;;  %v6993_v54 = vand.u32 4294901760, %v5161_v57 }
 0x13c   :  { %1184 = vmatmul.f32.gmra.mxu0 %v4470_v6 }
 0x13d   :  { %802 = vmatmul.f32.gmra.mxu2 %v4488_v14  ;;  %v902_v17 = vpop.f32.mrf.mxu3 }
 0x13e   :  { %v5147_v8 = vadd.f32 %v902_v17, %v719_v31  ;;  %v1795_v17 = vsub.f32 %v5161_v57, %v6993_v54 }
 0x13f   :  { %v5149_v15 = vpop.f32.mrf.mxu1 }
 0x140   :  { %v723_v40 = vpop.f32.mrf.mxu2 }
 0x141   :  { %v5151_v60 = vpop.f32.mrf.mxu0  ;;  %v724_v50 = vadd.f32 %v723_v40, %v567_v55  ;;  %v1796_v40 = vand.u32 4294901760, %v1795_v17  ;;  %v7177_v55 = vand.u32 4294901760, %v4518_v33 }
 0x142   :  { %1003 = vmatmul.f32.gmra.mxu3 %v7176_v56  ;;  %1333 = vmatmul.f32.gmra.mxu1 %v4470_v6  ;;  %v298_v6 = vadd.f32 %v4803_v0, %v4867_v1 }
 0x143   :  { %1797 = vmatpush.msra.mxu3 %v1796_v40 }
 0x144   :  { %1188 = vmatmul.f32.gmra.mxu0 %v4497_v18  ;;  %v571_v25 = vadd.f32 %v4877_v7, %v298_v6  ;;  %v1420_v7 = vld [vmem:[#allocation7 + $0x18] sm:$0xff] }
 0x145   :  { %807 = vmatmul.f32.gmra.mxu2 %v4518_v33  ;;  %v908_v49 = vpop.f32.mrf.mxu3  ;;  %v5193_v6 = vand.u32 4294901760, %v1420_v7 }
 0x146   :  { %v5170_v14 = vadd.f32 %v908_v49, %v724_v50  ;;  %v306_v50 = vadd.f32 %v4803_v0, %v4879_v20 }
 0x147   :  { %v5172_v31 = vpop.f32.mrf.mxu1  ;;  %1462 = vmatpush.msra.mxu2 %v5193_v6  ;;  %v5201_v20 = vsub.f32 %v1420_v7, %v5193_v6  ;;  %2185 = vmatpush.msra.mxu1 %v5193_v6 }
 0x148   :  { %v728_v16 = vpop.f32.mrf.mxu2 }
 0x149   :  { %v5177_v23 = vpop.f32.mrf.mxu0  ;;  %v729_v1 = vadd.f32 %v728_v16, %v571_v25  ;;  %v7179_v16 = vand.u32 4294901760, %v4533_v47  ;;  %v7180_v25 = vld [vmem:[#allocation14_spill] sm:$0xff]  ;;  %1989 = vmatpush.msra.mxu0 %v5201_v20 }
 0x14a   :  { %1009 = vmatmul.f32.gmra.mxu3 %v7177_v55  ;;  %1337 = vmatmul.f32.gmra.mxu1 %v4497_v18  ;;  %v575_v18 = vadd.f32 %v4898_v3, %v306_v50  ;;  %v6994_v3 = vand.u32 4294901760, %v5201_v20 }
 0x14c   :  { %1192 = vmatmul.f32.gmra.mxu0 %v4523_v38  ;;  %v1801_v50 = vsub.f32 %v5201_v20, %v6994_v3  ;;  %v322_v3 = vadd.f32 %v4803_v0, %v4915_v61 }
 0x14d   :  { %812 = vmatmul.f32.gmra.mxu2 %v4533_v47  ;;  %v914_v56 = vpop.f32.mrf.mxu3 }
 0x14e   :  { %v5187_v49 = vadd.f32 %v914_v56, %v729_v1  ;;  %v1802_v7 = vand.u32 4294901760, %v1801_v50 }
 0x14f   :  { %v5189_v54 = vpop.f32.mrf.mxu1 }
 0x150   :  { %v733_v17 = vpop.f32.mrf.mxu2  ;;  %1803 = vmatpush.msra.mxu3 %v1802_v7  ;;  %v7189_v7 = vld [vmem:[#allocation18_spill] sm:$0xff] }
 0x151   :  { %v5191_v33 = vpop.f32.mrf.mxu0  ;;  %v734_v40 = vadd.f32 %v733_v17, %v575_v18 }
 0x152   :  { %7178 = vst [vmem:[#allocation64_spill] sm:$0xff] %v5191_v33  ;;  %1015 = vmatmul.f32.gmra.mxu3 %v7179_v16  ;;  %1341 = vmatmul.f32.gmra.mxu1 %v4523_v38  ;;  %v314_v38 = vadd.f32 %v4803_v0, %v4903_v35  ;;  %v7183_v16 = vand.u32 4294901760, %v4561_v12 }
 0x154   :  { %1196 = vmatmul.f32.gmra.mxu0 %v7180_v25  ;;  %v579_v18 = vadd.f32 %v4913_v28, %v314_v38  ;;  %v1419_v28 = vld [vmem:[#allocation7 + $0x10] sm:$0xff] }
 0x155   :  { %817 = vmatmul.f32.gmra.mxu2 %v4561_v12  ;;  %v920_v55 = vpop.f32.mrf.mxu3  ;;  %v5233_v38 = vand.u32 4294901760, %v1419_v28 }
 0x156   :  { %v5210_v47 = vadd.f32 %v920_v55, %v734_v40  ;;  %v7184_v40 = vld [vmem:[#allocation16_spill] sm:$0xff]  ;;  %v7185_v55 = vld [vmem:[#allocation15_spill] sm:$0xff] }
 0x157   :  { %v5212_v56 = vpop.f32.mrf.mxu1  ;;  %1464 = vmatpush.msra.mxu2 %v5233_v38  ;;  %v5241_v61 = vsub.f32 %v1419_v28, %v5233_v38  ;;  %2187 = vmatpush.msra.mxu1 %v5233_v38 }
 0x158   :  { %v738_v1 = vpop.f32.mrf.mxu2  ;;  %7181 = vst [vmem:[#allocation14_spill] sm:$0xff] %v5212_v56 }
 0x159   :  { %v5217_v17 = vpop.f32.mrf.mxu0  ;;  %v739_v35 = vadd.f32 %v738_v1, %v579_v18  ;;  %v7188_v1 = vand.u32 4294901760, %v7184_v40  ;;  %v7190_v18 = vld [vmem:[#allocation17_spill] sm:$0xff]  ;;  %1992 = vmatpush.msra.mxu0 %v5241_v61 }
 0x15a   :  { %7182 = vst [vmem:[#allocation65_spill] sm:$0xff] %v5217_v17  ;;  %1021 = vmatmul.f32.gmra.mxu3 %v7183_v16  ;;  %1345 = vmatmul.f32.gmra.mxu1 %v7180_v25  ;;  %v583_v25 = vadd.f32 %v4934_v58, %v322_v3  ;;  %v6995_v58 = vand.u32 4294901760, %v5241_v61  ;;  %v330_v3 = vadd.f32 %v4803_v0, %v4939_v10 }
 0x15c   :  { %1200 = vmatmul.f32.gmra.mxu0 %v7185_v55 }
 0x15d   :  { %822 = vmatmul.f32.gmra.mxu2 %v7184_v40  ;;  %v926_v56 = vpop.f32.mrf.mxu3 }
 0x15e   :  { %v5227_v33 = vadd.f32 %v926_v56, %v739_v35 }
 0x15f   :  { %v5229_v17 = vpop.f32.mrf.mxu1 }
 0x160   :  { %v743_v50 = vpop.f32.mrf.mxu2  ;;  %7186 = vst [vmem:[#allocation16_spill] sm:$0xff] %v5229_v17 }
 0x161   :  { %v5231_v12 = vpop.f32.mrf.mxu0  ;;  %v744_v56 = vadd.f32 %v743_v50, %v583_v25  ;;  %v1807_v50 = vsub.f32 %v5241_v61, %v6995_v58  ;;  %v338_v58 = vadd.f32 %v4803_v0, %v4951_v26 }
 0x162   :  { %7187 = vst [vmem:[#allocation15_spill] sm:$0xff] %v5231_v12  ;;  %1027 = vmatmul.f32.gmra.mxu3 %v7188_v1  ;;  %1349 = vmatmul.f32.gmra.mxu1 %v7185_v55  ;;  %v587_v1 = vadd.f32 %v4949_v63, %v330_v3  ;;  %v7193_v12 = vand.u32 4294901760, %v7189_v7  ;;  %v1418_v63 = vld [vmem:[#allocation7 + $0x8] sm:$0xff] }
 0x163   :  { %v1808_v25 = vand.u32 4294901760, %v1807_v50 }
 0x164   :  { %1204 = vmatmul.f32.gmra.mxu0 %v7190_v18 }
 0x165   :  { %827 = vmatmul.f32.gmra.mxu2 %v7189_v7  ;;  %v932_v16 = vpop.f32.mrf.mxu3  ;;  %1809 = vmatpush.msra.mxu3 %v1808_v25  ;;  %v7200_v25 = vld [vmem:[#allocation21_spill] sm:$0xff] }
 0x166   :  { %v5250_v35 = vadd.f32 %v932_v16, %v744_v56  ;;  %v7194_v56 = vld [vmem:[#allocation20_spill] sm:$0xff]  ;;  %v7195_v16 = vld [vmem:[#allocation19_spill] sm:$0xff] }
 0x167   :  { %v5252_v55 = vpop.f32.mrf.mxu1  ;;  %v7198_v3 = vand.u32 4294901760, %v7194_v56 }
 0x168   :  { %v748_v40 = vpop.f32.mrf.mxu2  ;;  %7191 = vst [vmem:[#allocation18_spill] sm:$0xff] %v5252_v55 }
 0x169   :  { %v5257_v28 = vpop.f32.mrf.mxu0  ;;  %v749_v10 = vadd.f32 %v748_v40, %v587_v1 }
 0x16a   :  { %7192 = vst [vmem:[#allocation17_spill] sm:$0xff] %v5257_v28  ;;  %1033 = vmatmul.f32.gmra.mxu3 %v7193_v12  ;;  %1353 = vmatmul.f32.gmra.mxu1 %v7190_v18  ;;  %v5273_v12 = vand.u32 4294901760, %v1418_v63  ;;  %v591_v18 = vadd.f32 %v4970_v51, %v338_v58  ;;  %v346_v58 = vadd.f32 %v4803_v0, %v4975_v46 }
 0x16c   :  { %1208 = vmatmul.f32.gmra.mxu0 %v7195_v16  ;;  %1466 = vmatpush.msra.mxu2 %v5273_v12  ;;  %v5281_v26 = vsub.f32 %v1418_v63, %v5273_v12 }
 0x16d   :  { %832 = vmatmul.f32.gmra.mxu2 %v7194_v56  ;;  %v938_v55 = vpop.f32.mrf.mxu3  ;;  %2189 = vmatpush.msra.mxu1 %v5273_v12 }
 0x16e   :  { %v5267_v17 = vadd.f32 %v938_v55, %v749_v10  ;;  %v7199_v55 = vld [vmem:[#allocation22_spill] sm:$0xff]  ;;  %v6996_v51 = vand.u32 4294901760, %v5281_v26  ;;  %1995 = vmatpush.msra.mxu0 %v5281_v26 }
 0x16f   :  { %v5269_v28 = vpop.f32.mrf.mxu1 }
 0x170   :  { %v753_v50 = vpop.f32.mrf.mxu2  ;;  %7196 = vst [vmem:[#allocation20_spill] sm:$0xff] %v5269_v28 }
 0x171   :  { %v5271_v7 = vpop.f32.mrf.mxu0  ;;  %v754_v40 = vadd.f32 %v753_v50, %v591_v18  ;;  %v1813_v50 = vsub.f32 %v5281_v26, %v6996_v51  ;;  %v354_v51 = vadd.f32 %v4803_v0, %v4987_v39 }
 0x172   :  { %7197 = vst [vmem:[#allocation19_spill] sm:$0xff] %v5271_v7  ;;  %1039 = vmatmul.f32.gmra.mxu3 %v7198_v3  ;;  %1357 = vmatmul.f32.gmra.mxu1 %v7195_v16  ;;  %v595_v3 = vadd.f32 %v4985_v37, %v346_v58  ;;  %v7203_v7 = vand.u32 4294901760, %v7199_v55 }
 0x173   :  { %v1814_v18 = vand.u32 4294901760, %v1813_v50  ;;  %v1417_v50 = vld [vmem:[#allocation7] sm:$0xff]  ;;  %v599_v58 = vadd.f32 %v5006_v2, %v354_v51  ;;  %v7209_v51 = vand.u32 4294901760, %v4789_v42  ;;  %v7211_v42 = vand.u32 4294901760, %v4853_v22 }
 0x174   :  { %1212 = vmatmul.f32.gmra.mxu0 %v7200_v25 }
 0x175   :  { %837 = vmatmul.f32.gmra.mxu2 %v7199_v55  ;;  %v944_v1 = vpop.f32.mrf.mxu3  ;;  %1815 = vmatpush.msra.mxu3 %v1814_v18  ;;  %v5311_v55 = vand.u32 4294901760, %v1417_v50 }
 0x176   :  { %v5290_v10 = vadd.f32 %v944_v1, %v754_v40  ;;  %v7204_v40 = vld [vmem:[#allocation24_spill] sm:$0xff]  ;;  %v7205_v1 = vld [vmem:[#allocation23_spill] sm:$0xff] }
 0x177   :  { %v5292_v16 = vpop.f32.mrf.mxu1  ;;  %1468 = vmatpush.msra.mxu2 %v5311_v55  ;;  %2191 = vmatpush.msra.mxu1 %v5311_v55  ;;  %v7206_v39 = vand.u32 4294901760, %v7204_v40 }
 0x178   :  { %v758_v56 = vpop.f32.mrf.mxu2  ;;  %7201 = vst [vmem:[#allocation22_spill] sm:$0xff] %v5292_v16 }
 0x179   :  { %v5297_v63 = vpop.f32.mrf.mxu0  ;;  %v759_v46 = vadd.f32 %v758_v56, %v595_v3  ;;  %v7208_v3 = vld [vmem:[#allocation25_spill] sm:$0xff] }
 0x17a   :  { %7202 = vst [vmem:[#allocation21_spill] sm:$0xff] %v5297_v63  ;;  %1045 = vmatmul.f32.gmra.mxu3 %v7203_v7  ;;  %1361 = vmatmul.f32.gmra.mxu1 %v7200_v25  ;;  %v5317_v25 = vsub.f32 %v1417_v50, %v5311_v55 }
 0x17c   :  { %1216 = vmatmul.f32.gmra.mxu0 %v7205_v1  ;;  %v1818_v56 = vand.u32 4294901760, %v5317_v25 }
 0x17d   :  { %842 = vmatmul.f32.gmra.mxu2 %v7204_v40  ;;  %v950_v16 = vpop.f32.mrf.mxu3  ;;  %1998 = vmatpush.msra.mxu0 %v5317_v25  ;;  %v362_v40 = vadd.f32 %v4803_v0, %v5011_v9 }
 0x17e   :  { %v5307_v28 = vadd.f32 %v950_v16, %v759_v46  ;;  %v7207_v16 = vand.u32 4294901760, %v4756_v62  ;;  %v1819_v2 = vsub.f32 %v5317_v25, %v1818_v56  ;;  %v1110_v62 = vadd.f32 %v5071_v27, %v5107_v52  ;;  %v7213_v52 = vld [vmem:[#allocation31_spill] sm:$0xff] }
 0x17f   :  { %v5309_v37 = vpop.f32.mrf.mxu1  ;;  %v603_v9 = vadd.f32 %v5021_v21, %v362_v40  ;;  %v7212_v27 = vand.u32 4294901760, %v7208_v3  ;;  %v7219_v21 = vld [vmem:[#allocation45_spill] sm:$0xff]  ;;  %v1114_v40 = vadd.f32 %v5097_v48, %v5130_v36 }
 0x180   :  { %v763_v63 = vpop.f32.mrf.mxu2  ;;  %2388 = vmatpush.msrb.mxu2 %v7207_v16 }
 0x181   :  { %v5313_v7 = vpop.f32.mrf.mxu0  ;;  %v764_v18 = vadd.f32 %v763_v63, %v599_v58  ;;  %v1820_v58 = vand.u32 4294901760, %v1819_v2  ;;  %v7216_v2 = vld [vmem:[#allocation27_spill] sm:$0xff]  ;;  %v1263_v36 = vadd.f32 %v5109_v43, %v1114_v40  ;;  %v7233_v43 = vld [vmem:[#allocation44_spill] sm:$0xff] }
 0x182   :  { %1051 = vmatmul.f32.gmra.mxu3 %v7206_v39  ;;  %1365 = vmatmul.f32.gmra.mxu1 %v7205_v1  ;;  %v7210_v39 = vand.u32 4294901760, %v4817_v19 }
 0x183   :  { %2392 = vmatpush.msrb.mxu2 %v7209_v51  ;;  %1821 = vmatpush.msra.mxu3 %v1820_v58  ;;  %v1259_v51 = vadd.f32 %v5092_v4, %v1110_v62  ;;  %v7217_v58 = vld [vmem:[#allocation26_spill] sm:$0xff]  ;;  %v7220_v4 = vand.u32 4294901760, %v7219_v21  ;;  %v7229_v21 = vand.u32 4294901760, %v5033_v59  ;;  %v1386_v40 = vmax.f32 %v1263_v36, 0.0 }
 0x184   :  { %1220 = vmatmul.f32.gmra.mxu0 %v4679_v45  ;;  %v1118_v59 = vadd.f32 %v5111_v24, %v5147_v8 }
 0x185   :  { %847 = vmatmul.f32.gmra.mxu2 %v7208_v3  ;;  %v956_v46 = vpop.f32.mrf.mxu3  ;;  %2579 = vmatpush.msrb.mxu3 %v7213_v52  ;;  %v370_v3 = vadd.f32 %v4803_v0, %v5023_v5  ;;  %v5414_v8 = vand.u32 4294901760, %v1386_v40 }
 0x186   :  { %v5339_v1 = vadd.f32 %v956_v46, %v764_v18  ;;  %2396 = vmatpush.msrb.mxu2 %v7210_v39  ;;  %v7214_v18 = vld [vmem:[#allocation41_spill] sm:$0xff] }
 0x187   :  { %v5341_v50 = vpop.f32.mrf.mxu1  ;;  %v7215_v19 = vand.u32 4294901760, %v7214_v18  ;;  %v7218_v39 = vld [vmem:[#allocation33_spill] sm:$0xff] }
 0x188   :  { %v768_v63 = vpop.f32.mrf.mxu2  ;;  %2400 = vmatpush.msrb.mxu2 %v7211_v42  ;;  %2581 = vmatpush.msrb.mxu3 %v7218_v39  ;;  %v7225_v39 = vld [vmem:[#allocation53_spill] sm:$0xff] }
 0x189   :  { %v5345_v16 = vpop.f32.mrf.mxu0  ;;  %v769_v46 = vadd.f32 %v768_v63, %v603_v9  ;;  %v7221_v9 = vld [vmem:[#allocation34_spill] sm:$0xff]  ;;  %v7226_v5 = vand.u32 4294901760, %v7225_v39 }
 0x18a   :  { %1057 = vmatmul.f32.gmra.mxu3 %v7212_v27  ;;  %1369 = vmatmul.f32.gmra.mxu1 %v4679_v45  ;;  %v1385_v45 = vmax.f32 %v1259_v51, 0.0  ;;  %v7222_v27 = vld [vmem:[#allocation49_spill] sm:$0xff]  ;;  %v607_v51 = vadd.f32 %v5042_v44, %v370_v3  ;;  %v7232_v44 = vld [vmem:[#allocation58_spill] sm:$0xff] }
 0x18b   :  { %2404 = vmatpush.msrb.mxu2 %v7215_v19  ;;  %2583 = vmatpush.msrb.mxu3 %v7221_v9  ;;  %v7223_v52 = vand.u32 4294901760, %v7222_v27  ;;  %v7224_v19 = vld [vmem:[#allocation37_spill] sm:$0xff]  ;;  %v7231_v27 = vld [vmem:[#allocation28_spill] sm:$0xff]  ;;  %v378_v3 = vadd.f32 %v4803_v0, %v7232_v44  ;;  %v7236_v0 = vand.u32 4294901760, %v5121_v41 }
 0x18c   :  { %1224 = vmatmul.f32.gmra.mxu0 %v7217_v58  ;;  %v5379_v48 = vand.u32 4294901760, %v1385_v45  ;;  %v7230_v9 = vld [vmem:[#allocation29_spill] sm:$0xff]  ;;  %v7240_v41 = vld [vmem:[#allocation56_spill] sm:$0xff] }
 0x18d   :  { %852 = vmatmul.f32.gmra.mxu2 %v7216_v2  ;;  %v962_v22 = vpop.f32.mrf.mxu3  ;;  %2585 = vmatpush.msrb.mxu3 %v7224_v19  ;;  %v611_v36 = vadd.f32 %v5057_v53, %v378_v3  ;;  %v7243_v53 = vld [vmem:[#allocation30_spill] sm:$0xff]  ;;  %v4196_v44 = vld [vmem:[#allocation6] ss:$0 sm:$0xff] }
 0x18e   :  { %2408 = vmatpush.msrb.mxu2 %v7220_v4  ;;  %v5366_v62 = vadd.f32 %v962_v22, %v769_v46  ;;  %v7227_v46 = vand.u32 4294901760, %v7216_v2  ;;  %v7228_v22 = vld [vmem:[#allocation40_spill] sm:$0xff]  ;;  %v7234_v2 = vand.u32 4294901760, %v5081_v32  ;;  %v386_v3 = vadd.f32 %v4196_v44, %v5059_v13 }
 0x18f   :  { %v5368_v42 = vpop.f32.mrf.mxu1  ;;  %2587 = vmatpush.msrb.mxu3 %v7228_v22  ;;  %v7237_v32 = vld [vmem:[#allocation52_spill] sm:$0xff]  ;;  %v7239_v22 = vand.u32 4294901760, %v7230_v9  ;;  %v7246_v13 = vand.u32 4294901760, %v5281_v26  ;;  %v1130_v44 = vadd.f32 %v5177_v23, %v5210_v47 }
 0x190   :  { %v773_v63 = vpop.f32.mrf.mxu2  ;;  %2412 = vmatpush.msrb.mxu2 %v7223_v52 }
 0x191   :  { %v5373_v18 = vpop.f32.mrf.mxu0  ;;  %v774_v4 = vadd.f32 %v773_v63, %v607_v51  ;;  %2589 = vmatpush.msrb.mxu3 %v7233_v43 }
 0x192   :  { %2416 = vmatpush.msrb.mxu2 %v7226_v5  ;;  %1063 = vmatmul.f32.gmra.mxu3 %v7227_v46  ;;  %v7235_v5 = vld [vmem:[#allocation48_spill] sm:$0xff]  ;;  %v1267_v46 = vadd.f32 %v5132_v30, %v1118_v59  ;;  %v1122_v30 = vadd.f32 %v5137_v34, %v5170_v14 }
 0x193   :  { %1373 = vmatmul.f32.gmra.mxu1 %v7217_v58  ;;  %v5396_v58 = vsub.f32 %v1385_v45, %v5379_v48  ;;  %2591 = vmatpush.msrb.mxu3 %v7235_v5  ;;  %v7238_v45 = vand.u32 4294901760, %v5161_v57 }
 0x194   :  { %2420 = vmatpush.msrb.mxu2 %v7229_v21  ;;  %1228 = vmatmul.f32.gmra.mxu0 %v7231_v27  ;;  %v7241_v21 = vand.u32 4294901760, %v5201_v20  ;;  %v1478_v20 = vsub.f32 %v1386_v40, %v5414_v8  ;;  %v1387_v43 = vmax.f32 %v1267_v46, 0.0  ;;  %v1271_v34 = vadd.f32 %v5149_v15, %v1122_v30 }
 0x195   :  { %857 = vmatmul.f32.gmra.mxu2 %v7230_v9  ;;  %v968_v52 = vpop.f32.mrf.mxu3  ;;  %2593 = vmatpush.msrb.mxu3 %v7237_v32  ;;  %v1471_v24 = vand.u32 4294901760, %v5396_v58 }
 0x196   :  { %2424 = vmatpush.msrb.mxu2 %v7234_v2  ;;  %v5400_v63 = vadd.f32 %v968_v52, %v774_v4  ;;  %v7242_v4 = vld [vmem:[#allocation32_spill] sm:$0xff]  ;;  %v7244_v52 = vld [vmem:[#allocation62_spill] sm:$0xff]  ;;  %v1479_v26 = vand.u32 4294901760, %v1478_v20 }
 0x197   :  { %v5402_v39 = vpop.f32.mrf.mxu1  ;;  %2595 = vmatpush.msrb.mxu3 %v7240_v41  ;;  %v1472_v59 = vsub.f32 %v5396_v58, %v1471_v24  ;;  %v7248_v32 = vand.u32 4294901760, %v7242_v4 }
 0x198   :  { %v778_v19 = vpop.f32.mrf.mxu2  ;;  %2428 = vmatpush.msrb.mxu2 %v7236_v0  ;;  %v5447_v0 = vand.u32 4294901760, %v1387_v43  ;;  %v1480_v46 = vsub.f32 %v1478_v20, %v1479_v26 }
 0x199   :  { %v5407_v51 = vpop.f32.mrf.mxu0  ;;  %v779_v57 = vadd.f32 %v778_v19, %v611_v36  ;;  %2597 = vmatpush.msrb.mxu3 %v7244_v52 }
 0x19a   :  { %2432 = vmatpush.msrb.mxu2 %v7238_v45  ;;  %1069 = vmatmul.f32.gmra.mxu3 %v7239_v22  ;;  %v1126_v45 = vadd.f32 %v5151_v60, %v5187_v49  ;;  %v1481_v60 = vand.u32 4294901760, %v1480_v46 }
 0x19b   :  { %1377 = vmatmul.f32.gmra.mxu1 %v7231_v27  ;;  %v7245_v27 = vand.u32 4294901760, %v5241_v61  ;;  %2599 = vmatpush.msrb.mxu3 %v5113_v11  ;;  %v7247_v61 = vld [vmem:[#allocation61_spill] sm:$0xff]  ;;  %v1473_v11 = vand.u32 4294901760, %v1472_v59 }
 0x19c   :  { %2436 = vmatpush.msrb.mxu2 %v7241_v21  ;;  %1232 = vmatmul.f32.gmra.mxu0 %v7243_v53  ;;  %v615_v40 = vadd.f32 %v7247_v61, %v386_v3 }
 0x19d   :  { %862 = vmatmul.f32.gmra.mxu2 %v7242_v4  ;;  %v974_v9 = vpop.f32.mrf.mxu3  ;;  %2601 = vmatpush.msrb.mxu3 %v5153_v29  ;;  %v1388_v29 = vmax.f32 %v1271_v34, 0.0  ;;  %v7252_v34 = vld [vmem:[#allocation64_spill] sm:$0xff] }
 0x19e   :  { %2440 = vmatpush.msrb.mxu2 %v7245_v27  ;;  %v5432_v2 = vadd.f32 %v974_v9, %v779_v57  ;;  %v1134_v61 = vadd.f32 %v7252_v34, %v5227_v33  ;;  %v7256_v33 = vld [vmem:[#allocation65_spill] sm:$0xff] }
 0x19f   :  { %v5435_v5 = vpop.f32.mrf.mxu1  ;;  %2603 = vmatpush.msrb.mxu3 %v5193_v6  ;;  %v7249_v6 = vld [vmem:[#allocation35_spill] sm:$0xff] }
 0x1a0   :  { %v783_v19 = vpop.f32.mrf.mxu2  ;;  %2444 = vmatpush.msrb.mxu2 %v7246_v13 }
 0x1a1   :  { %v5441_v14 = vpop.f32.mrf.mxu0  ;;  %v784_v15 = vadd.f32 %v783_v19, %v615_v40  ;;  %2605 = vmatpush.msrb.mxu3 %v5233_v38  ;;  %v1275_v38 = vadd.f32 %v5172_v31, %v1126_v45  ;;  %v7250_v31 = vld [vmem:[#allocation36_spill] sm:$0xff] }
 0x1a2   :  { %2448 = vmatpush.msrb.mxu2 %v1818_v56  ;;  %1075 = vmatmul.f32.gmra.mxu3 %v7248_v32  ;;  %v1486_v56 = vsub.f32 %v1387_v43, %v5447_v0 }
 0x1a3   :  { %1381 = vmatmul.f32.gmra.mxu1 %v7243_v53  ;;  %2607 = vmatpush.msrb.mxu3 %v5273_v12  ;;  %v1389_v53 = vmax.f32 %v1275_v38, 0.0 }
 0x1a4   :  { %2001 = vmatmul.f32.vlgmr.msra.gmra.mxu0 %v5396_v58  ;;  %v5464_v58 = vand.u32 4294901760, %v1388_v29  ;;  %v1487_v49 = vand.u32 4294901760, %v1486_v56 }
 0x1a5   :  { %1474 = vmatmul.f32.vlgmr.msra.gmra.mxu2 %v1473_v11  ;;  %v980_v25 = vpop.f32.mrf.mxu3  ;;  %2609 = vmatpush.msrb.mxu3 %v5311_v55  ;;  %v5481_v43 = vand.u32 4294901760, %v1389_v53 }
 0x1a6   :  { %v5458_v36 = vadd.f32 %v980_v25, %v784_v15  ;;  %v1494_v4 = vsub.f32 %v1388_v29, %v5464_v58  ;;  %v1488_v30 = vsub.f32 %v1486_v56, %v1487_v49  ;;  %v7255_v25 = vld [vmem:[#allocation14_spill] sm:$0xff] }
 0x1a7   :  { %v5460_v41 = vpop.f32.mrf.mxu1  ;;  %7251 = vst [vmem:[#allocation24_spill] sm:$0xff] %v5481_v43  ;;  %v1502_v19 = vsub.f32 %v1389_v53, %v5481_v43 }
 0x1a8   :  { %v788_v22 = vpop.f32.mrf.mxu2  ;;  %v1495_v27 = vand.u32 4294901760, %v1494_v4  ;;  %v1489_v59 = vand.u32 4294901760, %v1488_v30  ;;  %v7257_v30 = vld [vmem:[#allocation39_spill] sm:$0xff] }
 0x1a9   :  { %v789_v21 = vadd.f32 %v788_v22, %v7249_v6  ;;  %v5466_v57 = vpop.f32.mrf.mxu0  ;;  %v1503_v46 = vand.u32 4294901760, %v1502_v19  ;;  %v1138_v22 = vadd.f32 %v7256_v33, %v5250_v35 }
 0x1aa   :  { %1823 = vmatmul.f32.vlgmr.msra.gmra.mxu3 %v5379_v48  ;;  %v1496_v47 = vsub.f32 %v1494_v4, %v1495_v27 }
 0x1ab   :  { %2195 = vmatmul.f32.vlgmr.msra.gmra.mxu1 %v1471_v24 }
 0x1ac   :  { %2006 = vmatmul.f32.gmra.mxu0 %v1478_v20  ;;  %v1279_v20 = vadd.f32 %v5189_v54, %v1130_v44  ;;  %v7253_v54 = vld [vmem:[#allocation38_spill] sm:$0xff]  ;;  %v1497_v45 = vand.u32 4294901760, %v1496_v47 }
 0x1ad   :  { %1482 = vmatmul.f32.gmra.mxu2 %v1481_v60  ;;  %v986_v12 = vpop.f32.mrf.mxu3 }
 0x1ae   :  { %v5474_v3 = vadd.f32 %v986_v12, %v789_v21  ;;  %v1390_v13 = vmax.f32 %v1279_v20, 0.0  ;;  %v1504_v12 = vsub.f32 %v1502_v19, %v1503_v46 }
 0x1af   :  { %v5476_v9 = vpop.f32.mrf.mxu1 }
 0x1b0   :  { %v793_v55 = vpop.f32.mrf.mxu2  ;;  %v1505_v35 = vand.u32 4294901760, %v1504_v12 }
 0x1b1   :  { %v794_v52 = vadd.f32 %v793_v55, %v7250_v31  ;;  %v5479_v24 = vpop.f32.mrf.mxu0 }
 0x1b2   :  { %1827 = vmatmul.f32.gmra.mxu3 %v5414_v8 }
 0x1b3   :  { %2201 = vmatmul.f32.gmra.mxu1 %v1479_v26  ;;  %v5495_v26 = vand.u32 4294901760, %v1390_v13 }
 0x1b4   :  { %2011 = vmatmul.f32.gmra.mxu0 %v1486_v56  ;;  %v1283_v56 = vadd.f32 %v7255_v25, %v1134_v61  ;;  %v7261_v25 = vld [vmem:[#allocation42_spill] sm:$0xff] }
 0x1b5   :  { %1490 = vmatmul.f32.gmra.mxu2 %v1489_v59  ;;  %v992_v23 = vpop.f32.mrf.mxu3  ;;  %7254 = vst [vmem:[#allocation23_spill] sm:$0xff] %v5495_v26  ;;  %v1510_v21 = vsub.f32 %v1390_v13, %v5495_v26  ;;  %v7260_v13 = vld [vmem:[#allocation15_spill] sm:$0xff] }
 0x1b6   :  { %v5488_v40 = vadd.f32 %v992_v23, %v794_v52  ;;  %v1391_v38 = vmax.f32 %v1283_v56, 0.0  ;;  %v1142_v34 = vadd.f32 %v7260_v13, %v5267_v17 }
 0x1b7   :  { %v5490_v11 = vpop.f32.mrf.mxu1  ;;  %v1511_v20 = vand.u32 4294901760, %v1510_v21 }
 0x1b8   :  { %v798_v32 = vpop.f32.mrf.mxu2 }
 0x1b9   :  { %v799_v15 = vadd.f32 %v798_v32, %v7253_v54  ;;  %v5493_v29 = vpop.f32.mrf.mxu0  ;;  %v1512_v32 = vsub.f32 %v1510_v21, %v1511_v20 }
 0x1ba   :  { %1831 = vmatmul.f32.gmra.mxu3 %v5447_v0 }
 0x1bb   :  { %2207 = vmatmul.f32.gmra.mxu1 %v1487_v49  ;;  %v7258_v49 = vld [vmem:[#allocation16_spill] sm:$0xff] }
 0x1bc   :  { %2016 = vmatmul.f32.gmra.mxu0 %v1494_v4  ;;  %v1287_v31 = vadd.f32 %v7258_v49, %v1138_v22  ;;  %v5510_v4 = vand.u32 4294901760, %v1391_v38  ;;  %v1513_v22 = vand.u32 4294901760, %v1512_v32 }
 0x1bd   :  { %1498 = vmatmul.f32.gmra.mxu2 %v1497_v45  ;;  %v998_v6 = vpop.f32.mrf.mxu3 }
 0x1be   :  { %v5502_v60 = vadd.f32 %v998_v6, %v799_v15  ;;  %7259 = vst [vmem:[#allocation25_spill] sm:$0xff] %v5510_v4  ;;  %v1392_v59 = vmax.f32 %v1287_v31, 0.0  ;;  %v1518_v47 = vsub.f32 %v1391_v38, %v5510_v4 }
 0x1bf   :  { %v5504_v44 = vpop.f32.mrf.mxu1 }
 0x1c0   :  { %v803_v53 = vpop.f32.mrf.mxu2  ;;  %v1519_v6 = vand.u32 4294901760, %v1518_v47 }
 0x1c1   :  { %v804_v55 = vadd.f32 %v803_v53, %v7257_v30  ;;  %v5508_v52 = vpop.f32.mrf.mxu0  ;;  %v7264_v53 = vld [vmem:[#allocation17_spill] sm:$0xff] }
 0x1c2   :  { %1835 = vmatmul.f32.gmra.mxu3 %v5464_v58  ;;  %v1146_v30 = vadd.f32 %v7264_v53, %v5290_v10  ;;  %v1520_v49 = vsub.f32 %v1518_v47, %v1519_v6 }
 0x1c3   :  { %2213 = vmatmul.f32.gmra.mxu1 %v1495_v27  ;;  %v5521_v27 = vand.u32 4294901760, %v1392_v59 }
 0x1c4   :  { %2021 = vmatmul.f32.gmra.mxu0 %v1502_v19  ;;  %v7263_v19 = vld [vmem:[#allocation18_spill] sm:$0xff] }
 0x1c5   :  { %1506 = vmatmul.f32.gmra.mxu2 %v1505_v35  ;;  %v1004_v23 = vpop.f32.mrf.mxu3  ;;  %7262 = vst [vmem:[#allocation31_spill] sm:$0xff] %v5521_v27  ;;  %v1291_v33 = vadd.f32 %v7263_v19, %v1142_v34  ;;  %v1526_v17 = vsub.f32 %v1392_v59, %v5521_v27 }
 0x1c6   :  { %v5516_v61 = vadd.f32 %v1004_v23, %v804_v55  ;;  %v7265_v23 = vld [vmem:[#allocation43_spill] sm:$0xff] }
 0x1c7   :  { %v5518_v15 = vpop.f32.mrf.mxu1  ;;  %v1393_v12 = vmax.f32 %v1291_v33, 0.0  ;;  %v1527_v34 = vand.u32 4294901760, %v1526_v17  ;;  %v7268_v33 = vld [vmem:[#allocation19_spill] sm:$0xff] }
 0x1c8   :  { %v808_v54 = vpop.f32.mrf.mxu2 }
 0x1c9   :  { %v809_v56 = vadd.f32 %v808_v54, %v7261_v25  ;;  %v5523_v45 = vpop.f32.mrf.mxu0  ;;  %v5537_v32 = vand.u32 4294901760, %v1393_v12  ;;  %v1521_v54 = vand.u32 4294901760, %v1520_v49  ;;  %v1528_v25 = vsub.f32 %v1526_v17, %v1527_v34 }
 0x1ca   :  { %1839 = vmatmul.f32.gmra.mxu3 %v5481_v43 }
 0x1cb   :  { %2219 = vmatmul.f32.gmra.mxu1 %v1503_v46  ;;  %7266 = vst [vmem:[#allocation41_spill] sm:$0xff] %v5537_v32 }
 0x1cc   :  { %2026 = vmatmul.f32.gmra.mxu0 %v1510_v21  ;;  %v7267_v21 = vld [vmem:[#allocation20_spill] sm:$0xff] }
 0x1cd   :  { %1514 = vmatmul.f32.gmra.mxu2 %v1513_v22  ;;  %v1010_v38 = vpop.f32.mrf.mxu3  ;;  %v1295_v59 = vadd.f32 %v7267_v21, %v1146_v30  ;;  %v1150_v22 = vadd.f32 %v7268_v33, %v5307_v28  ;;  %v7269_v30 = vld [vmem:[#allocation46_spill] sm:$0xff]  ;;  %v7272_v28 = vld [vmem:[#allocation21_spill] sm:$0xff] }
 0x1ce   :  { %v5530_v55 = vadd.f32 %v1010_v38, %v809_v56  ;;  %v1534_v56 = vsub.f32 %v1393_v12, %v5537_v32  ;;  %v1529_v12 = vand.u32 4294901760, %v1528_v25 }
 0x1cf   :  { %v5532_v35 = vpop.f32.mrf.mxu1  ;;  %v1394_v19 = vmax.f32 %v1295_v59, 0.0 }
 0x1d0   :  { %v813_v31 = vpop.f32.mrf.mxu2  ;;  %v1535_v59 = vand.u32 4294901760, %v1534_v56 }
 0x1d1   :  { %v814_v13 = vadd.f32 %v813_v31, %v7265_v23  ;;  %v5535_v46 = vpop.f32.mrf.mxu0 }
 0x1d2   :  { %1843 = vmatmul.f32.gmra.mxu3 %v5495_v26 }
 0x1d3   :  { %2225 = vmatmul.f32.gmra.mxu1 %v1511_v20  ;;  %v5551_v20 = vand.u32 4294901760, %v1394_v19 }
 0x1d4   :  { %2031 = vmatmul.f32.gmra.mxu0 %v1518_v47  ;;  %v7271_v47 = vld [vmem:[#allocation22_spill] sm:$0xff] }
 0x1d5   :  { %1522 = vmatmul.f32.gmra.mxu2 %v1521_v54  ;;  %v1016_v10 = vpop.f32.mrf.mxu3  ;;  %7270 = vst [vmem:[#allocation27_spill] sm:$0xff] %v5551_v20  ;;  %v1299_v49 = vadd.f32 %v7271_v47, %v1150_v22  ;;  %v7273_v22 = vld [vmem:[#allocation47_spill] sm:$0xff] }
 0x1d6   :  { %v5544_v38 = vadd.f32 %v1016_v10, %v814_v13  ;;  %v1154_v13 = vadd.f32 %v7272_v28, %v5339_v1  ;;  %v1542_v10 = vsub.f32 %v1394_v19, %v5551_v20 }
 0x1d7   :  { %v5546_v31 = vpop.f32.mrf.mxu1  ;;  %v1395_v33 = vmax.f32 %v1299_v49, 0.0 }
 0x1d8   :  { %v818_v53 = vpop.f32.mrf.mxu2  ;;  %v1543_v19 = vand.u32 4294901760, %v1542_v10 }
 0x1d9   :  { %v819_v23 = vadd.f32 %v818_v53, %v7269_v30  ;;  %v5549_v21 = vpop.f32.mrf.mxu0  ;;  %v1536_v30 = vsub.f32 %v1534_v56, %v1535_v59 }
 0x1da   :  { %1847 = vmatmul.f32.gmra.mxu3 %v5510_v4 }
 0x1db   :  { %2231 = vmatmul.f32.gmra.mxu1 %v1519_v6  ;;  %v1303_v6 = vadd.f32 %v5309_v37, %v1154_v13  ;;  %v1537_v1 = vand.u32 4294901760, %v1536_v30  ;;  %v1544_v37 = vsub.f32 %v1542_v10, %v1543_v19 }
 0x1dc   :  { %2036 = vmatmul.f32.gmra.mxu0 %v1526_v17  ;;  %v5566_v17 = vand.u32 4294901760, %v1395_v33 }
 0x1dd   :  { %1530 = vmatmul.f32.gmra.mxu2 %v1529_v12  ;;  %v1022_v54 = vpop.f32.mrf.mxu3 }
 0x1de   :  { %v5558_v53 = vadd.f32 %v1022_v54, %v819_v23  ;;  %7274 = vst [vmem:[#allocation26_spill] sm:$0xff] %v5566_v17  ;;  %v1396_v23 = vmax.f32 %v1303_v6, 0.0  ;;  %v1550_v12 = vsub.f32 %v1395_v33, %v5566_v17  ;;  %v1545_v33 = vand.u32 4294901760, %v1544_v37 }
 0x1df   :  { %v5560_v43 = vpop.f32.mrf.mxu1 }
 0x1e0   :  { %v823_v26 = vpop.f32.mrf.mxu2  ;;  %v1551_v6 = vand.u32 4294901760, %v1550_v12 }
 0x1e1   :  { %v824_v47 = vadd.f32 %v823_v26, %v7273_v22  ;;  %v5564_v25 = vpop.f32.mrf.mxu0  ;;  %v1158_v26 = vadd.f32 %v5313_v7, %v5366_v62  ;;  %v7275_v22 = vld [vmem:[#allocation50_spill] sm:$0xff] }
 0x1e2   :  { %1851 = vmatmul.f32.gmra.mxu3 %v5521_v27 }
 0x1e3   :  { %2237 = vmatmul.f32.gmra.mxu1 %v1527_v34  ;;  %v5577_v34 = vand.u32 4294901760, %v1396_v23 }
 0x1e4   :  { %2041 = vmatmul.f32.gmra.mxu0 %v1534_v56  ;;  %v1307_v56 = vadd.f32 %v5341_v50, %v1158_v26  ;;  %v7277_v50 = vld [vmem:[#allocation51_spill] sm:$0xff] }
 0x1e5   :  { %1538 = vmatmul.f32.gmra.mxu2 %v1537_v1  ;;  %v1028_v49 = vpop.f32.mrf.mxu3  ;;  %7276 = vst [vmem:[#allocation33_spill] sm:$0xff] %v5577_v34  ;;  %v1558_v7 = vsub.f32 %v1396_v23, %v5577_v34  ;;  %v1162_v1 = vadd.f32 %v5345_v16, %v5400_v63 }
 0x1e6   :  { %v5572_v28 = vadd.f32 %v1028_v49, %v824_v47  ;;  %v1397_v47 = vmax.f32 %v1307_v56, 0.0 }
 0x1e7   :  { %v5574_v54 = vpop.f32.mrf.mxu1  ;;  %v1559_v37 = vand.u32 4294901760, %v1558_v7 }
 0x1e8   :  { %v828_v13 = vpop.f32.mrf.mxu2 }
 0x1e9   :  { %v829_v27 = vadd.f32 %v828_v13, %v7275_v22  ;;  %v5579_v30 = vpop.f32.mrf.mxu0  ;;  %v1552_v13 = vsub.f32 %v1550_v12, %v1551_v6  ;;  %v1560_v63 = vsub.f32 %v1558_v7, %v1559_v37 }
 0x1ea   :  { %1855 = vmatmul.f32.gmra.mxu3 %v5537_v32 }
 0x1eb   :  { %2243 = vmatmul.f32.gmra.mxu1 %v1535_v59  ;;  %v1553_v23 = vand.u32 4294901760, %v1552_v13 }
 0x1ec   :  { %2046 = vmatmul.f32.gmra.mxu0 %v1542_v10  ;;  %v1311_v10 = vadd.f32 %v5368_v42, %v1162_v1  ;;  %v7279_v42 = vld [vmem:[#allocation54_spill] sm:$0xff] }
 0x1ed   :  { %1546 = vmatmul.f32.gmra.mxu2 %v1545_v33  ;;  %v1034_v62 = vpop.f32.mrf.mxu3  ;;  %v5593_v33 = vand.u32 4294901760, %v1397_v47 }
 0x1ee   :  { %v5586_v49 = vadd.f32 %v1034_v62, %v829_v27  ;;  %v1398_v56 = vmax.f32 %v1311_v10, 0.0  ;;  %v1166_v62 = vadd.f32 %v5373_v18, %v5432_v2  ;;  %v1170_v18 = vadd.f32 %v5407_v51, %v5458_v36 }
 0x1ef   :  { %v5588_v4 = vpop.f32.mrf.mxu1  ;;  %7278 = vst [vmem:[#allocation45_spill] sm:$0xff] %v5593_v33  ;;  %v1566_v27 = vsub.f32 %v1397_v47, %v5593_v33  ;;  %v1561_v47 = vand.u32 4294901760, %v1560_v63 }
 0x1f0   :  { %v833_v22 = vpop.f32.mrf.mxu2 }
 0x1f1   :  { %v834_v26 = vadd.f32 %v833_v22, %v7277_v50  ;;  %v5591_v59 = vpop.f32.mrf.mxu0  ;;  %v1567_v13 = vand.u32 4294901760, %v1566_v27 }
 0x1f2   :  { %1859 = vmatmul.f32.gmra.mxu3 %v5551_v20 }
 0x1f3   :  { %2249 = vmatmul.f32.gmra.mxu1 %v1543_v19  ;;  %v5607_v19 = vand.u32 4294901760, %v1398_v56 }
 0x1f4   :  { %2051 = vmatmul.f32.gmra.mxu0 %v1550_v12  ;;  %v1315_v12 = vadd.f32 %v5402_v39, %v1166_v62  ;;  %v7281_v39 = vld [vmem:[#allocation55_spill] sm:$0xff] }
 0x1f5   :  { %1554 = vmatmul.f32.gmra.mxu2 %v1553_v23  ;;  %v1040_v16 = vpop.f32.mrf.mxu3  ;;  %7280 = vst [vmem:[#allocation34_spill] sm:$0xff] %v5607_v19 }
 0x1f6   :  { %v5600_v22 = vadd.f32 %v1040_v16, %v834_v26  ;;  %v1574_v26 = vsub.f32 %v1398_v56, %v5607_v19  ;;  %v1399_v10 = vmax.f32 %v1315_v12, 0.0  ;;  %v1568_v16 = vsub.f32 %v1566_v27, %v1567_v13 }
 0x1f7   :  { %v5602_v32 = vpop.f32.mrf.mxu1 }
 0x1f8   :  { %v838_v50 = vpop.f32.mrf.mxu2  ;;  %v1569_v51 = vand.u32 4294901760, %v1568_v16  ;;  %v1575_v36 = vand.u32 4294901760, %v1574_v26 }
 0x1f9   :  { %v839_v1 = vadd.f32 %v838_v50, %v7279_v42  ;;  %v5605_v20 = vpop.f32.mrf.mxu0 }
 0x1fa   :  { %1863 = vmatmul.f32.gmra.mxu3 %v5566_v17 }
 0x1fb   :  { %2255 = vmatmul.f32.gmra.mxu1 %v1551_v6  ;;  %v1319_v6 = vadd.f32 %v5435_v5, %v1170_v18  ;;  %v1576_v5 = vsub.f32 %v1574_v26, %v1575_v36 }
 0x1fc   :  { %2056 = vmatmul.f32.gmra.mxu0 %v1558_v7  ;;  %v5622_v7 = vand.u32 4294901760, %v1399_v10 }
 0x1fd   :  { %1562 = vmatmul.f32.gmra.mxu2 %v1561_v47  ;;  %v1046_v2 = vpop.f32.mrf.mxu3  ;;  %v1400_v56 = vmax.f32 %v1319_v6, 0.0  ;;  %v1174_v47 = vadd.f32 %v5441_v14, %v5474_v3 }
 0x1fe   :  { %v5614_v23 = vadd.f32 %v1046_v2, %v839_v1  ;;  %7282 = vst [vmem:[#allocation49_spill] sm:$0xff] %v5622_v7  ;;  %v1582_v12 = vsub.f32 %v1399_v10, %v5622_v7  ;;  %v1577_v10 = vand.u32 4294901760, %v1576_v5 }
 0x1ff   :  { %v5616_v42 = vpop.f32.mrf.mxu1 }
 0x200   :  { %v843_v50 = vpop.f32.mrf.mxu2  ;;  %v1583_v6 = vand.u32 4294901760, %v1582_v12 }
 0x201   :  { %v844_v62 = vadd.f32 %v843_v50, %v7281_v39  ;;  %v5620_v63 = vpop.f32.mrf.mxu0  ;;  %v7283_v39 = vld [vmem:[#allocation57_spill] sm:$0xff] }
 0x202   :  { %1867 = vmatmul.f32.gmra.mxu3 %v5577_v34 }
 0x203   :  { %2261 = vmatmul.f32.gmra.mxu1 %v1559_v37  ;;  %v5633_v37 = vand.u32 4294901760, %v1400_v56 }
 0x204   :  { %2061 = vmatmul.f32.gmra.mxu0 %v1566_v27  ;;  %v1323_v27 = vadd.f32 %v5460_v41, %v1174_v47  ;;  %v7285_v41 = vld [vmem:[#allocation59_spill] sm:$0xff] }
 0x205   :  { %1570 = vmatmul.f32.gmra.mxu2 %v1569_v51  ;;  %v1052_v1 = vpop.f32.mrf.mxu3  ;;  %7284 = vst [vmem:[#allocation37_spill] sm:$0xff] %v5633_v37  ;;  %v1590_v14 = vsub.f32 %v1400_v56, %v5633_v37  ;;  %v1178_v51 = vadd.f32 %v5466_v57, %v5488_v40 }
 0x206   :  { %v5628_v2 = vadd.f32 %v1052_v1, %v844_v62  ;;  %v1401_v62 = vmax.f32 %v1323_v27, 0.0 }
 0x207   :  { %v5630_v50 = vpop.f32.mrf.mxu1  ;;  %v1591_v5 = vand.u32 4294901760, %v1590_v14 }
 0x208   :  { %v848_v18 = vpop.f32.mrf.mxu2 }
 0x209   :  { %v849_v34 = vadd.f32 %v848_v18, %v7283_v39  ;;  %v5635_v16 = vpop.f32.mrf.mxu0  ;;  %v1584_v18 = vsub.f32 %v1582_v12, %v1583_v6  ;;  %v1592_v40 = vsub.f32 %v1590_v14, %v1591_v5 }
 0x20a   :  { %1871 = vmatmul.f32.gmra.mxu3 %v5593_v33 }
 0x20b   :  { %2267 = vmatmul.f32.gmra.mxu1 %v1567_v13  ;;  %v1585_v56 = vand.u32 4294901760, %v1584_v18 }
 0x20c   :  { %2066 = vmatmul.f32.gmra.mxu0 %v1574_v26  ;;  %v1327_v26 = vadd.f32 %v5476_v9, %v1178_v51  ;;  %v7287_v9 = vld [vmem:[#allocation60_spill] sm:$0xff] }
 0x20d   :  { %1578 = vmatmul.f32.gmra.mxu2 %v1577_v10  ;;  %v1058_v3 = vpop.f32.mrf.mxu3  ;;  %v5649_v10 = vand.u32 4294901760, %v1401_v62 }
 0x20e   :  { %v5642_v1 = vadd.f32 %v1058_v3, %v849_v34  ;;  %v1402_v27 = vmax.f32 %v1327_v26, 0.0  ;;  %v1182_v3 = vadd.f32 %v5479_v24, %v5502_v60  ;;  %v2786_v24 = vld [vmem:[#allocation9 + $0x78] sm:$0xff]  ;;  %v1186_v60 = vadd.f32 %v5493_v29, %v5516_v61  ;;  %v7290_v29 = vld [vmem:[#allocation63_spill] sm:$0xff] }
 0x20f   :  { %7286 = vst [vmem:[#allocation53_spill] sm:$0xff] %v5649_v10  ;;  %v1598_v34 = vsub.f32 %v1401_v62, %v5649_v10  ;;  %v1593_v62 = vand.u32 4294901760, %v1592_v40  ;;  %v5669_v26 = vand.u32 4294901760, %v2786_v24 }
 0x210   :  { %v853_v39 = vpop.f32.mrf.mxu2  ;;  %v5644_v17 = vpop.f32.mrf.mxu1 }
 0x211   :  { %v854_v47 = vadd.f32 %v853_v39, %v7285_v41  ;;  %v5647_v13 = vpop.f32.mrf.mxu0  ;;  %v1599_v18 = vand.u32 4294901760, %v1598_v34  ;;  %7289 = vst [vmem:[#allocation29_spill] sm:$0xff] %v5669_v26  ;;  %2792 = vmatpush.msrb.mxu0 %v5669_v26  ;;  %3515 = vmatpush.msra.mxu3 %v5669_v26 }
 0x212   :  { %1875 = vmatmul.f32.gmra.mxu3 %v5607_v19 }
 0x213   :  { %2273 = vmatmul.f32.gmra.mxu1 %v1575_v36  ;;  %v5663_v36 = vand.u32 4294901760, %v1402_v27 }
 0x214   :  { %2071 = vmatmul.f32.gmra.mxu0 %v1582_v12  ;;  %v1331_v12 = vadd.f32 %v5490_v11, %v1182_v3  ;;  %v1600_v11 = vsub.f32 %v1598_v34, %v1599_v18 }
 0x215   :  { %1586 = vmatmul.f32.gmra.mxu2 %v1585_v56  ;;  %v1064_v57 = vpop.f32.mrf.mxu3  ;;  %7288 = vst [vmem:[#allocation40_spill] sm:$0xff] %v5663_v36  ;;  %v1606_v56 = vsub.f32 %v1402_v27, %v5663_v36 }
 0x216   :  { %v5656_v39 = vadd.f32 %v1064_v57, %v854_v47  ;;  %v1403_v57 = vmax.f32 %v1331_v12, 0.0  ;;  %v1601_v12 = vand.u32 4294901760, %v1600_v11 }
 0x218   :  { %v858_v41 = vpop.f32.mrf.mxu2  ;;  %v5658_v33 = vpop.f32.mrf.mxu1 }
 0x219   :  { %v859_v51 = vadd.f32 %v858_v41, %v7287_v9  ;;  %v5661_v19 = vpop.f32.mrf.mxu0 }
 0x21a   :  { %1879 = vmatmul.f32.gmra.mxu3 %v5622_v7 }
 0x21b   :  { %2279 = vmatmul.f32.gmra.mxu1 %v1583_v6  ;;  %v5678_v6 = vsub.f32 %v2786_v24, %v5669_v26 }
 0x21c   :  { %2076 = vmatmul.f32.gmra.mxu0 %v1590_v14  ;;  %v1335_v14 = vadd.f32 %v5504_v44, %v1186_v60 }
 0x21d   :  { %1594 = vmatmul.f32.gmra.mxu2 %v1593_v62  ;;  %v1070_v47 = vpop.f32.mrf.mxu3  ;;  %v7020_v27 = vand.u32 4294901760, %v5678_v6  ;;  %v1607_v62 = vand.u32 4294901760, %v1606_v56 }
 0x21e   :  { %v5672_v41 = vadd.f32 %v1070_v47, %v859_v51  ;;  %3307 = vmatpush.msra.mxu2 %v5678_v6  ;;  %v5685_v51 = vand.u32 4294901760, %v1403_v57  ;;  %v1404_v47 = vmax.f32 %v1335_v14, 0.0 }
 0x21f   :  { %v3083_v24 = vsub.f32 %v5678_v6, %v7020_v27  ;;  %v5699_v27 = vld [vmem:[%s6896_s4] ss:$0 sm:$0xff] }
 0x220   :  { %v863_v3 = vpop.f32.mrf.mxu2  ;;  %v5674_v9 = vpop.f32.mrf.mxu1 }
 0x221   :  { %v864_v61 = vadd.f32 %v863_v3, %v7290_v29  ;;  %v2002_v40 = vpop.f32.mrf.mxu0  ;;  %v3084_v60 = vand.u32 4294901760, %v3083_v24  ;;  %v1614_v3 = vsub.f32 %v1403_v57, %v5685_v51  ;;  %v1190_v29 = vadd.f32 %v5508_v52, %v5530_v55 }
 0x222   :  { %1883 = vmatmul.f32.gmra.mxu3 %v5633_v37  ;;  %v1608_v37 = vsub.f32 %v1606_v56, %v1607_v62 }
 0x223   :  { %2285 = vmatmul.f32.gmra.mxu1 %v1591_v5  ;;  %v1339_v14 = vadd.f32 %v5518_v15, %v1190_v29  ;;  %v1615_v52 = vand.u32 4294901760, %v1614_v3 }
 0x224   :  { %2081 = vmatmul.f32.gmra.mxu0 %v1598_v34  ;;  %3085 = vmatpush.msrb.mxu1 %v3084_v60  ;;  %v5701_v34 = vand.u32 4294901760, %v1404_v47  ;;  %v1609_v57 = vand.u32 4294901760, %v1608_v37 }
 0x225   :  { %1602 = vmatmul.f32.gmra.mxu2 %v1601_v12  ;;  %v1076_v44 = vpop.f32.mrf.mxu3  ;;  %v2785_v12 = vld [vmem:[#allocation9 + $0x70] sm:$0xff]  ;;  %v1405_v15 = vmax.f32 %v1339_v14, 0.0 }
 0x226   :  { %v5694_v26 = vadd.f32 %v1076_v44, %v864_v61  ;;  %v5707_v24 = vsub.f32 %v1404_v47, %v5701_v34  ;;  %v1194_v44 = vadd.f32 %v5523_v45, %v5544_v38  ;;  %v5711_v7 = vand.u32 4294901760, %v2785_v12 }
 0x227   :  { %v5720_v38 = vand.u32 4294901760, %v1405_v15 }
 0x228   :  { %v1475_v5 = vpop.f32.mrf.mxu2  ;;  %v2196_v11 = vpop.f32.mrf.mxu1  ;;  %7291 = vst [vmem:[#allocation28_spill] sm:$0xff] %v5711_v7  ;;  %2794 = vmatpush.msrb.mxu0 %v5711_v7  ;;  %3517 = vmatpush.msra.mxu3 %v5711_v7  ;;  %v1343_v47 = vadd.f32 %v5532_v35, %v1194_v44  ;;  %v1623_v45 = vand.u32 4294901760, %v5707_v24 }
 0x229   :  { %v2007_v55 = vpop.f32.mrf.mxu0  ;;  %v1476_v61 = vadd.f32 %v5699_v27, %v1475_v5  ;;  %v5716_v5 = vsub.f32 %v2785_v12, %v5711_v7 }
 0x22a   :  { %1887 = vmatmul.f32.gmra.mxu3 %v5649_v10  ;;  %v1406_v12 = vmax.f32 %v1343_v47, 0.0 }
 0x22b   :  { %2291 = vmatmul.f32.gmra.mxu1 %v1599_v18  ;;  %v1616_v18 = vsub.f32 %v1614_v3, %v1615_v52  ;;  %3310 = vmatpush.msra.mxu2 %v5716_v5 }
 0x22c   :  { %2086 = vmatmul.f32.gmra.mxu0 %v1606_v56 }
 0x22d   :  { %1610 = vmatmul.f32.gmra.mxu2 %v1609_v57  ;;  %v1824_v60 = vpop.f32.mrf.mxu3  ;;  %v1617_v14 = vand.u32 4294901760, %v1616_v18  ;;  %v7027_v57 = vand.u32 4294901760, %v5716_v5 }
 0x22e   :  { %v1825_v29 = vadd.f32 %v1824_v60, %v1476_v61 }
 0x22f   :  { %v3089_v35 = vsub.f32 %v5716_v5, %v7027_v57 }
 0x230   :  { %v1483_v37 = vpop.f32.mrf.mxu2  ;;  %v2202_v10 = vpop.f32.mrf.mxu1  ;;  %v2003_v56 = vadd.f32 %v2002_v40, %v1825_v29  ;;  %v1630_v29 = vsub.f32 %v1405_v15, %v5720_v38 }
 0x231   :  { %v1484_v40 = vadd.f32 %v5699_v27, %v1483_v37  ;;  %v2012_v44 = vpop.f32.mrf.mxu0 }
 0x232   :  { %1891 = vmatmul.f32.gmra.mxu3 %v5663_v36  ;;  %v5724_v61 = vadd.f32 %v2196_v11, %v2003_v56  ;;  %v1198_v11 = vadd.f32 %v5535_v46, %v5558_v53  ;;  %v3090_v56 = vand.u32 4294901760, %v3089_v35  ;;  %v2784_v46 = vld [vmem:[#allocation9 + $0x68] sm:$0xff] }
 0x233   :  { %2297 = vmatmul.f32.gmra.mxu1 %v1607_v62  ;;  %v1624_v62 = vsub.f32 %v5707_v24, %v1623_v45 }
 0x234   :  { %7292 = vst [vmem:[#allocation58_spill] sm:$0xff] %v5724_v61  ;;  %2091 = vmatmul.f32.gmra.mxu0 %v1614_v3  ;;  %3091 = vmatpush.msrb.mxu1 %v3090_v56  ;;  %v5735_v3 = vand.u32 4294901760, %v1406_v12  ;;  %v1347_v57 = vadd.f32 %v5546_v31, %v1198_v11  ;;  %v1631_v61 = vand.u32 4294901760, %v1630_v29 }
 0x235   :  { %1618 = vmatmul.f32.gmra.mxu2 %v1617_v14  ;;  %v1828_v60 = vpop.f32.mrf.mxu3  ;;  %v1625_v47 = vand.u32 4294901760, %v1624_v62 }
 0x236   :  { %v1829_v18 = vadd.f32 %v1828_v60, %v1484_v40  ;;  %v5744_v53 = vsub.f32 %v1406_v12, %v5735_v3  ;;  %v5748_v40 = vand.u32 4294901760, %v2784_v46  ;;  %v1632_v60 = vsub.f32 %v1630_v29, %v1631_v61 }
 0x238   :  { %v1491_v36 = vpop.f32.mrf.mxu2  ;;  %v2208_v37 = vpop.f32.mrf.mxu1  ;;  %v2008_v14 = vadd.f32 %v2007_v55, %v1829_v18  ;;  %v1202_v55 = vadd.f32 %v5549_v21, %v5572_v28  ;;  %2796 = vmatpush.msrb.mxu0 %v5748_v40  ;;  %3519 = vmatpush.msra.mxu3 %v5748_v40  ;;  %v1639_v21 = vand.u32 4294901760, %v5744_v53 }
 0x239   :  { %v1492_v15 = vadd.f32 %v5699_v27, %v1491_v36 }
 0x23a   :  { %1895 = vmatmul.f32.gmra.mxu3 %v5685_v51  ;;  %v5739_v7 = vadd.f32 %v2202_v10, %v2008_v14  ;;  %v2017_v10 = vpop.f32.mrf.mxu0  ;;  %v1351_v12 = vadd.f32 %v5560_v43, %v1202_v55 }
 0x23b   :  { %2303 = vmatmul.f32.gmra.mxu1 %v1615_v52  ;;  %v1407_v52 = vmax.f32 %v1347_v57, 0.0  ;;  %v1633_v57 = vand.u32 4294901760, %v1632_v60 }
 0x23c   :  { %2096 = vmatmul.f32.gmra.mxu0 %v5707_v24  ;;  %v5753_v24 = vsub.f32 %v2784_v46, %v5748_v40  ;;  %v1408_v14 = vmax.f32 %v1351_v12, 0.0 }
 0x23d   :  { %1626 = vmatmul.f32.gmra.mxu2 %v1625_v47  ;;  %v1832_v31 = vpop.f32.mrf.mxu3  ;;  %v5757_v28 = vand.u32 4294901760, %v1407_v52 }
 0x23e   :  { %v1833_v35 = vadd.f32 %v1832_v31, %v1492_v15  ;;  %v7035_v18 = vand.u32 4294901760, %v5753_v24  ;;  %3313 = vmatpush.msra.mxu2 %v5753_v24  ;;  %v1640_v15 = vsub.f32 %v5744_v53, %v1639_v21  ;;  %v5772_v60 = vand.u32 4294901760, %v1408_v14 }
 0x240   :  { %v1499_v62 = vpop.f32.mrf.mxu2  ;;  %v2013_v36 = vadd.f32 %v2012_v44, %v1833_v35  ;;  %v2214_v11 = vpop.f32.mrf.mxu1  ;;  %v3095_v43 = vsub.f32 %v5753_v24, %v7035_v18 }
 0x241   :  { %v1500_v44 = vadd.f32 %v5699_v27, %v1499_v62 }
 0x242   :  { %1899 = vmatmul.f32.gmra.mxu3 %v5701_v34  ;;  %v5761_v56 = vadd.f32 %v2208_v37, %v2013_v36  ;;  %v1206_v37 = vadd.f32 %v5564_v25, %v5586_v49  ;;  %v3096_v55 = vand.u32 4294901760, %v3095_v43  ;;  %v1641_v36 = vand.u32 4294901760, %v1640_v15  ;;  %v2783_v49 = vld [vmem:[#allocation9 + $0x60] sm:$0xff] }
 0x243   :  { %2309 = vmatmul.f32.gmra.mxu1 %v1623_v45  ;;  %v1646_v45 = vsub.f32 %v1407_v52, %v5757_v28  ;;  %v5785_v43 = vand.u32 4294901760, %v2783_v49 }
 0x244   :  { %2101 = vmatmul.f32.gmra.mxu0 %v1630_v29  ;;  %3097 = vmatpush.msrb.mxu1 %v3096_v55  ;;  %v2022_v29 = vpop.f32.mrf.mxu0  ;;  %v1355_v62 = vadd.f32 %v5574_v54, %v1206_v37  ;;  %v1210_v54 = vadd.f32 %v5579_v30, %v5600_v22 }
 0x245   :  { %1634 = vmatmul.f32.gmra.mxu2 %v1633_v57  ;;  %v1836_v47 = vpop.f32.mrf.mxu3  ;;  %v1647_v12 = vand.u32 4294901760, %v1646_v45  ;;  %2798 = vmatpush.msrb.mxu0 %v5785_v43 }
 0x246   :  { %v1837_v46 = vadd.f32 %v1836_v47, %v1500_v44  ;;  %3521 = vmatpush.msra.mxu3 %v5785_v43 }
 0x248   :  { %v1507_v31 = vpop.f32.mrf.mxu2  ;;  %v2018_v35 = vadd.f32 %v2017_v10, %v1837_v46  ;;  %v2220_v52 = vpop.f32.mrf.mxu1  ;;  %v5781_v10 = vsub.f32 %v1408_v14, %v5772_v60  ;;  %v1359_v14 = vadd.f32 %v5588_v4, %v1210_v54 }
 0x249   :  { %v1508_v25 = vadd.f32 %v5699_v27, %v1507_v31 }
 0x24a   :  { %1903 = vmatmul.f32.gmra.mxu3 %v5720_v38  ;;  %v5776_v57 = vadd.f32 %v2214_v11, %v2018_v35  ;;  %v1648_v11 = vsub.f32 %v1646_v45, %v1647_v12  ;;  %v1655_v46 = vand.u32 4294901760, %v5781_v10 }
 0x24b   :  { %2315 = vmatmul.f32.gmra.mxu1 %v1631_v61  ;;  %v1409_v61 = vmax.f32 %v1355_v62, 0.0  ;;  %v1410_v62 = vmax.f32 %v1359_v14, 0.0 }
 0x24c   :  { %2106 = vmatmul.f32.gmra.mxu0 %v5744_v53  ;;  %v5790_v53 = vsub.f32 %v2783_v49, %v5785_v43  ;;  %v1649_v22 = vand.u32 4294901760, %v1648_v11  ;;  %v2027_v35 = vpop.f32.mrf.mxu0 }
 0x24d   :  { %1642 = vmatmul.f32.gmra.mxu2 %v1641_v36  ;;  %v1840_v44 = vpop.f32.mrf.mxu3  ;;  %v5794_v30 = vand.u32 4294901760, %v1409_v61 }
 0x24e   :  { %v1841_v47 = vadd.f32 %v1840_v44, %v1508_v25  ;;  %v7034_v55 = vand.u32 4294901760, %v5790_v53  ;;  %3316 = vmatpush.msra.mxu2 %v5790_v53 }
 0x24f   :  { %v1662_v49 = vsub.f32 %v1409_v61, %v5794_v30 }
 0x250   :  { %v1515_v15 = vpop.f32.mrf.mxu2  ;;  %v2023_v37 = vadd.f32 %v2022_v29, %v1841_v47  ;;  %v3101_v4 = vsub.f32 %v5790_v53, %v7034_v55  ;;  %v2226_v36 = vpop.f32.mrf.mxu1 }
 0x251   :  { %v1516_v29 = vadd.f32 %v5699_v27, %v1515_v15  ;;  %v1663_v14 = vand.u32 4294901760, %v1662_v49 }
 0x252   :  { %1907 = vmatmul.f32.gmra.mxu3 %v5735_v3  ;;  %v5798_v31 = vadd.f32 %v2220_v52, %v2023_v37  ;;  %v1214_v52 = vadd.f32 %v5591_v59, %v5614_v23  ;;  %v3102_v44 = vand.u32 4294901760, %v3101_v4  ;;  %v2782_v59 = vld [vmem:[#allocation9 + $0x58] sm:$0xff] }
 0x253   :  { %2321 = vmatmul.f32.gmra.mxu1 %v1639_v21  ;;  %v1656_v21 = vsub.f32 %v5781_v10, %v1655_v46  ;;  %v5822_v4 = vand.u32 4294901760, %v2782_v59 }
 0x254   :  { %2111 = vmatmul.f32.gmra.mxu0 %v1646_v45  ;;  %3103 = vmatpush.msrb.mxu1 %v3102_v44  ;;  %v5809_v45 = vand.u32 4294901760, %v1410_v62  ;;  %v1363_v15 = vadd.f32 %v5602_v32, %v1214_v52  ;;  %v2032_v32 = vpop.f32.mrf.mxu0 }
 0x255   :  { %1650 = vmatmul.f32.gmra.mxu2 %v1649_v22  ;;  %v1844_v25 = vpop.f32.mrf.mxu3  ;;  %v1657_v37 = vand.u32 4294901760, %v1656_v21  ;;  %2800 = vmatpush.msrb.mxu0 %v5822_v4 }
 0x256   :  { %v1845_v54 = vadd.f32 %v1844_v25, %v1516_v29  ;;  %v5818_v23 = vsub.f32 %v1410_v62, %v5809_v45  ;;  %3523 = vmatpush.msra.mxu3 %v5822_v4  ;;  %v5827_v62 = vsub.f32 %v2782_v59, %v5822_v4 }
 0x258   :  { %v1523_v47 = vpop.f32.mrf.mxu2  ;;  %v2028_v11 = vadd.f32 %v2027_v35, %v1845_v54  ;;  %v1218_v35 = vadd.f32 %v5605_v20, %v5628_v2  ;;  %v2232_v21 = vpop.f32.mrf.mxu1  ;;  %v1671_v20 = vand.u32 4294901760, %v5818_v23  ;;  %3319 = vmatpush.msra.mxu2 %v5827_v62 }
 0x259   :  { %v1524_v61 = vadd.f32 %v5699_v27, %v1523_v47  ;;  %v7032_v47 = vand.u32 4294901760, %v5827_v62 }
 0x25a   :  { %1911 = vmatmul.f32.gmra.mxu3 %v5757_v28  ;;  %v5813_v22 = vadd.f32 %v2226_v36, %v2028_v11  ;;  %v1664_v36 = vsub.f32 %v1662_v49, %v1663_v14  ;;  %v1367_v54 = vadd.f32 %v5616_v42, %v1218_v35  ;;  %v1672_v59 = vsub.f32 %v5818_v23, %v1671_v20 }
 0x25b   :  { %2327 = vmatmul.f32.gmra.mxu1 %v1647_v12  ;;  %v1411_v12 = vmax.f32 %v1363_v15, 0.0  ;;  %v3107_v42 = vsub.f32 %v5827_v62, %v7032_v47  ;;  %v1222_v35 = vadd.f32 %v5620_v63, %v5642_v1  ;;  %v2781_v1 = vld [vmem:[#allocation9 + $0x50] sm:$0xff] }
 0x25c   :  { %2116 = vmatmul.f32.gmra.mxu0 %v5781_v10  ;;  %v1665_v44 = vand.u32 4294901760, %v1664_v36 }
 0x25d   :  { %1658 = vmatmul.f32.gmra.mxu2 %v1657_v37  ;;  %v1848_v29 = vpop.f32.mrf.mxu3  ;;  %v5831_v2 = vand.u32 4294901760, %v1411_v12  ;;  %v1412_v37 = vmax.f32 %v1367_v54, 0.0  ;;  %v1673_v54 = vand.u32 4294901760, %v1672_v59 }
 0x25e   :  { %v1849_v25 = vadd.f32 %v1848_v29, %v1524_v61  ;;  %v3108_v29 = vand.u32 4294901760, %v3107_v42  ;;  %v1226_v42 = vadd.f32 %v5635_v16, %v5656_v39 }
 0x260   :  { %v1531_v52 = vpop.f32.mrf.mxu2  ;;  %v2033_v10 = vadd.f32 %v2032_v32, %v1849_v25  ;;  %v2037_v25 = vpop.f32.mrf.mxu0  ;;  %3109 = vmatpush.msrb.mxu1 %v3108_v29 }
 0x261   :  { %v1532_v15 = vadd.f32 %v5699_v27, %v1531_v52  ;;  %v2238_v52 = vpop.f32.mrf.mxu1 }
 0x262   :  { %1915 = vmatmul.f32.gmra.mxu3 %v5772_v60  ;;  %v5835_v11 = vadd.f32 %v2232_v21, %v2033_v10  ;;  %v1371_v10 = vadd.f32 %v5630_v50, %v1222_v35  ;;  %v5857_v50 = vand.u32 4294901760, %v2781_v1 }
 0x263   :  { %2333 = vmatmul.f32.gmra.mxu1 %v1655_v46  ;;  %v1678_v46 = vsub.f32 %v1411_v12, %v5831_v2 }
 0x264   :  { %2121 = vmatmul.f32.gmra.mxu0 %v1662_v49  ;;  %v5846_v49 = vand.u32 4294901760, %v1412_v37  ;;  %v1413_v35 = vmax.f32 %v1371_v10, 0.0  ;;  %3525 = vmatpush.msra.mxu3 %v5857_v50 }
 0x265   :  { %1666 = vmatmul.f32.gmra.mxu2 %v1665_v44  ;;  %v1852_v61 = vpop.f32.mrf.mxu3  ;;  %v1679_v44 = vand.u32 4294901760, %v1678_v46  ;;  %2802 = vmatpush.msrb.mxu0 %v5857_v50 }
 0x266   :  { %v1853_v32 = vadd.f32 %v1852_v61, %v1532_v15  ;;  %7293 = vst [vmem:[#allocation44_spill] sm:$0xff] %v5846_v49  ;;  %v1686_v15 = vsub.f32 %v1412_v37, %v5846_v49  ;;  %v1375_v37 = vadd.f32 %v5644_v17, %v1226_v42 }
 0x267   :  { %v1680_v59 = vsub.f32 %v1678_v46, %v1679_v44 }
 0x268   :  { %v1539_v36 = vpop.f32.mrf.mxu2  ;;  %v2038_v21 = vadd.f32 %v2037_v25, %v1853_v32  ;;  %v1687_v29 = vand.u32 4294901760, %v1686_v15  ;;  %v5867_v25 = vand.u32 4294901760, %v1413_v35  ;;  %v1414_v17 = vmax.f32 %v1375_v37, 0.0 }
 0x269   :  { %v1540_v63 = vadd.f32 %v5699_v27, %v1539_v36  ;;  %v1681_v16 = vand.u32 4294901760, %v1680_v59 }
 0x26a   :  { %1919 = vmatmul.f32.gmra.mxu3 %v5794_v30  ;;  %v5850_v12 = vadd.f32 %v2238_v52, %v2038_v21  ;;  %7294 = vst [vmem:[#allocation48_spill] sm:$0xff] %v5867_v25  ;;  %v1688_v10 = vsub.f32 %v1686_v15, %v1687_v29 }
 0x26b   :  { %2339 = vmatmul.f32.gmra.mxu1 %v1663_v14 }
 0x26c   :  { %2126 = vmatmul.f32.gmra.mxu0 %v5818_v23  ;;  %v5864_v23 = vsub.f32 %v2781_v1, %v5857_v50  ;;  %v1689_v59 = vand.u32 4294901760, %v1688_v10 }
 0x26d   :  { %1674 = vmatmul.f32.gmra.mxu2 %v1673_v54  ;;  %v1856_v61 = vpop.f32.mrf.mxu3  ;;  %v1694_v54 = vsub.f32 %v1413_v35, %v5867_v25  ;;  %v2780_v35 = vld [vmem:[#allocation9 + $0x48] sm:$0xff] }
 0x26e   :  { %v5859_v14 = vadd.f32 %v1856_v61, %v1540_v63  ;;  %v7030_v39 = vand.u32 4294901760, %v5864_v23  ;;  %3322 = vmatpush.msra.mxu2 %v5864_v23  ;;  %v5881_v61 = vand.u32 4294901760, %v1414_v17 }
 0x270   :  { %v1547_v32 = vpop.f32.mrf.mxu2  ;;  %v3113_v21 = vsub.f32 %v5864_v23, %v7030_v39  ;;  %7295 = vst [vmem:[#allocation52_spill] sm:$0xff] %v5881_v61 }
 0x271   :  { %v1548_v36 = vadd.f32 %v5699_v27, %v1547_v32  ;;  %v1695_v32 = vand.u32 4294901760, %v1694_v54 }
 0x272   :  { %1923 = vmatmul.f32.gmra.mxu3 %v5809_v45  ;;  %v3114_v1 = vand.u32 4294901760, %v3113_v21  ;;  %v1234_v21 = vadd.f32 %v5661_v19, %v5694_v26 }
 0x273   :  { %2345 = vmatmul.f32.gmra.mxu1 %v1671_v20  ;;  %v1230_v20 = vadd.f32 %v5647_v13, %v5672_v41  ;;  %v1702_v13 = vsub.f32 %v1414_v17, %v5881_v61 }
 0x274   :  { %2131 = vmatmul.f32.gmra.mxu0 %v1678_v46  ;;  %3115 = vmatpush.msrb.mxu1 %v3114_v1 }
 0x275   :  { %1682 = vmatmul.f32.gmra.mxu2 %v1681_v16  ;;  %v1860_v52 = vpop.f32.mrf.mxu3  ;;  %v1379_v46 = vadd.f32 %v5658_v33, %v1230_v20  ;;  %v5887_v16 = vand.u32 4294901760, %v2780_v35  ;;  %v1703_v10 = vand.u32 4294901760, %v1702_v13  ;;  %v1383_v20 = vadd.f32 %v5674_v9, %v1234_v21 }
 0x276   :  { %v5879_v63 = vadd.f32 %v1860_v52, %v1548_v36  ;;  %v1696_v52 = vsub.f32 %v1694_v54, %v1695_v32 }
 0x277   :  { %v1415_v36 = vmax.f32 %v1379_v46, 0.0  ;;  %2804 = vmatpush.msrb.mxu0 %v5887_v16  ;;  %3527 = vmatpush.msra.mxu3 %v5887_v16 }
 0x278   :  { %v1555_v42 = vpop.f32.mrf.mxu2  ;;  %v1697_v19 = vand.u32 4294901760, %v1696_v52 }
 0x279   :  { %v1556_v37 = vadd.f32 %v5699_v27, %v1555_v42  ;;  %v5898_v17 = vand.u32 4294901760, %v1415_v36 }
 0x27a   :  { %1927 = vmatmul.f32.gmra.mxu3 %v5831_v2 }
 0x27b   :  { %2351 = vmatmul.f32.gmra.mxu1 %v1679_v44  ;;  %7297 = vst [vmem:[#allocation32_spill] sm:$0xff] %v5898_v17  ;;  %v1710_v9 = vsub.f32 %v1415_v36, %v5898_v17 }
 0x27c   :  { %2136 = vmatmul.f32.gmra.mxu0 %v1686_v15  ;;  %v5896_v15 = vsub.f32 %v2780_v35, %v5887_v16 }
 0x27d   :  { %1690 = vmatmul.f32.gmra.mxu2 %v1689_v59  ;;  %v1864_v41 = vpop.f32.mrf.mxu3  ;;  %v1704_v59 = vsub.f32 %v1702_v13, %v1703_v10  ;;  %v1711_v52 = vand.u32 4294901760, %v1710_v9 }
 0x27e   :  { %v5891_v33 = vadd.f32 %v1864_v41, %v1556_v37  ;;  %v7029_v26 = vand.u32 4294901760, %v5896_v15  ;;  %3325 = vmatpush.msra.mxu2 %v5896_v15  ;;  %v1416_v37 = vmax.f32 %v1383_v20, 0.0 }
 0x280   :  { %7296 = vst [vmem:[#allocation56_spill] sm:$0xff] %v5891_v33  ;;  %v1563_v44 = vpop.f32.mrf.mxu2  ;;  %v3119_v42 = vsub.f32 %v5896_v15, %v7029_v26  ;;  %v5911_v21 = vand.u32 4294901760, %v1416_v37 }
 0x281   :  { %v1564_v1 = vadd.f32 %v5699_v27, %v1563_v44 }
 0x282   :  { %1931 = vmatmul.f32.gmra.mxu3 %v5846_v49  ;;  %7299 = vst [vmem:[#allocation62_spill] sm:$0xff] %v5911_v21  ;;  %v1718_v20 = vsub.f32 %v1416_v37, %v5911_v21 }
 0x283   :  { %2357 = vmatmul.f32.gmra.mxu1 %v1687_v29  ;;  %v3120_v29 = vand.u32 4294901760, %v3119_v42  ;;  %v1712_v42 = vsub.f32 %v1710_v9, %v1711_v52 }
 0x284   :  { %2141 = vmatmul.f32.gmra.mxu0 %v1694_v54  ;;  %v1705_v54 = vand.u32 4294901760, %v1704_v59  ;;  %v1719_v59 = vand.u32 4294901760, %v1718_v20 }
 0x285   :  { %1698 = vmatmul.f32.gmra.mxu2 %v1697_v19  ;;  %v1868_v46 = vpop.f32.mrf.mxu3  ;;  %3121 = vmatpush.msrb.mxu1 %v3120_v29  ;;  %v2779_v19 = vld [vmem:[#allocation9 + $0x40] sm:$0xff] }
 0x286   :  { %v5909_v35 = vadd.f32 %v1868_v46, %v1564_v1  ;;  %v5915_v36 = vand.u32 4294901760, %v2779_v19 }
 0x288   :  { %7298 = vst [vmem:[#allocation30_spill] sm:$0xff] %v5909_v35  ;;  %v1571_v41 = vpop.f32.mrf.mxu2  ;;  %2806 = vmatpush.msrb.mxu0 %v5915_v36  ;;  %3529 = vmatpush.msra.mxu3 %v5915_v36  ;;  %v2773_v35 = vld [vmem:[#allocation9 + $0x10] sm:$0xff] }
 0x289   :  { %v1572_v44 = vadd.f32 %v5699_v27, %v1571_v41 }
 0x28a   :  { %1935 = vmatmul.f32.gmra.mxu3 %v5867_v25 }
 0x28b   :  { %2363 = vmatmul.f32.gmra.mxu1 %v1695_v32  ;;  %v5923_v32 = vsub.f32 %v2779_v19, %v5915_v36 }
 0x28c   :  { %2146 = vmatmul.f32.gmra.mxu0 %v1702_v13  ;;  %v1713_v13 = vand.u32 4294901760, %v1712_v42 }
 0x28d   :  { %1706 = vmatmul.f32.gmra.mxu2 %v1705_v54  ;;  %v1872_v26 = vpop.f32.mrf.mxu3  ;;  %v7031_v29 = vand.u32 4294901760, %v5923_v32 }
 0x28e   :  { %v5918_v1 = vadd.f32 %v1872_v26, %v1572_v44  ;;  %3328 = vmatpush.msra.mxu2 %v5923_v32  ;;  %v1720_v44 = vsub.f32 %v1718_v20, %v1719_v59 }
 0x28f   :  { %v3125_v37 = vsub.f32 %v5923_v32, %v7031_v29 }
 0x290   :  { %7300 = vst [vmem:[#allocation61_spill] sm:$0xff] %v5918_v1  ;;  %v1579_v46 = vpop.f32.mrf.mxu2  ;;  %v1721_v42 = vand.u32 4294901760, %v1720_v44 }
 0x291   :  { %v1580_v26 = vadd.f32 %v5699_v27, %v1579_v46  ;;  %v3126_v19 = vand.u32 4294901760, %v3125_v37 }
 0x292   :  { %1939 = vmatmul.f32.gmra.mxu3 %v5881_v61 }
 0x293   :  { %2369 = vmatmul.f32.gmra.mxu1 %v1703_v10 }
 0x294   :  { %2151 = vmatmul.f32.gmra.mxu0 %v1710_v9  ;;  %3127 = vmatpush.msrb.mxu1 %v3126_v19  ;;  %v2778_v9 = vld [vmem:[#allocation9 + $0x38] sm:$0xff] }
 0x295   :  { %1714 = vmatmul.f32.gmra.mxu2 %v1713_v13  ;;  %v1876_v41 = vpop.f32.mrf.mxu3  ;;  %v5936_v13 = vand.u32 4294901760, %v2778_v9 }
 0x296   :  { %v5932_v54 = vadd.f32 %v1876_v41, %v1580_v26 }
 0x297   :  { %2808 = vmatpush.msrb.mxu0 %v5936_v13  ;;  %3531 = vmatpush.msra.mxu3 %v5936_v13  ;;  %v5943_v37 = vsub.f32 %v2778_v9, %v5936_v13 }
 0x298   :  { %7301 = vst [vmem:[#allocation35_spill] sm:$0xff] %v5932_v54  ;;  %v1587_v10 = vpop.f32.mrf.mxu2 }
 0x299   :  { %v1588_v39 = vadd.f32 %v5699_v27, %v1587_v10  ;;  %3331 = vmatpush.msra.mxu2 %v5943_v37 }
 0x29a   :  { %1943 = vmatmul.f32.gmra.mxu3 %v5898_v17  ;;  %v2774_v17 = vld [vmem:[#allocation9 + $0x18] sm:$0xff] }
 0x29b   :  { %2375 = vmatmul.f32.gmra.mxu1 %v1711_v52  ;;  %v7033_v52 = vand.u32 4294901760, %v5943_v37  ;;  %v6034_v61 = vand.u32 4294901760, %v2774_v17 }
 0x29c   :  { %2156 = vmatmul.f32.gmra.mxu0 %v1718_v20 }
 0x29d   :  { %1722 = vmatmul.f32.gmra.mxu2 %v1721_v42  ;;  %v1880_v46 = vpop.f32.mrf.mxu3  ;;  %v2777_v42 = vld [vmem:[#allocation9 + $0x30] sm:$0xff] }
 0x29e   :  { %v5938_v29 = vadd.f32 %v1880_v46, %v1588_v39  ;;  %v3131_v39 = vsub.f32 %v5943_v37, %v7033_v52  ;;  %v5958_v46 = vand.u32 4294901760, %v2777_v42 }
 0x2a0   :  { %7302 = vst [vmem:[#allocation36_spill] sm:$0xff] %v5938_v29  ;;  %v1595_v26 = vpop.f32.mrf.mxu2  ;;  %v3132_v19 = vand.u32 4294901760, %v3131_v39  ;;  %2810 = vmatpush.msrb.mxu0 %v5958_v46  ;;  %3533 = vmatpush.msra.mxu3 %v5958_v46  ;;  %v7314_v29 = vld [vmem:[#allocation31_spill] sm:$0xff] }
 0x2a1   :  { %v1596_v20 = vadd.f32 %v5699_v27, %v1595_v26 }
 0x2a2   :  { %1947 = vmatmul.f32.gmra.mxu3 %v5911_v21  ;;  %3133 = vmatpush.msrb.mxu1 %v3132_v19 }
 0x2a3   :  { %2381 = vmatmul.f32.gmra.mxu1 %v1719_v59 }
 0x2a5   :  { %2450 = vmatmul.f32.vlgmr.msrb.gmra.mxu2 %v5379_v48  ;;  %v1884_v41 = vpop.f32.mrf.mxu3 }
 0x2a6   :  { %v5953_v44 = vadd.f32 %v1884_v41, %v1596_v20  ;;  %v5965_v20 = vsub.f32 %v2777_v42, %v5958_v46 }
 0x2a8   :  { %7303 = vst [vmem:[#allocation64_spill] sm:$0xff] %v5953_v44  ;;  %v1603_v10 = vpop.f32.mrf.mxu2  ;;  %3334 = vmatpush.msra.mxu2 %v5965_v20 }
 0x2a9   :  { %v1604_v59 = vadd.f32 %v5699_v27, %v1603_v10 }
 0x2aa   :  { %2611 = vmatmul.f32.vlgmr.msrb.gmra.mxu3 %v5379_v48  ;;  %v7036_v48 = vand.u32 4294901760, %v5965_v20 }
 0x2ac   :  { %v3137_v41 = vsub.f32 %v5965_v20, %v7036_v48 }
 0x2ad   :  { %2454 = vmatmul.f32.gmra.mxu2 %v5414_v8  ;;  %v1888_v9 = vpop.f32.mrf.mxu3 }
 0x2ae   :  { %v5960_v26 = vadd.f32 %v1888_v9, %v1604_v59  ;;  %v3138_v59 = vand.u32 4294901760, %v3137_v41  ;;  %v2776_v9 = vld [vmem:[#allocation9 + $0x28] sm:$0xff]  ;;  %v5992_v41 = vpop.f32.mrf.mxu1 }
 0x2af   :  { %v5980_v52 = vand.u32 4294901760, %v2776_v9 }
 0x2b0   :  { %7304 = vst [vmem:[#allocation38_spill] sm:$0xff] %v5960_v26  ;;  %v1611_v47 = vpop.f32.mrf.mxu2  ;;  %3139 = vmatpush.msrb.mxu1 %v3138_v59  ;;  %v7307_v59 = vld [vmem:[#allocation24_spill] sm:$0xff] }
 0x2b1   :  { %v1612_v39 = vadd.f32 %v5699_v27, %v1611_v47  ;;  %2812 = vmatpush.msrb.mxu0 %v5980_v52  ;;  %3535 = vmatpush.msra.mxu3 %v5980_v52 }
 0x2b2   :  { %2615 = vmatmul.f32.gmra.mxu3 %v5414_v8 }
 0x2b5   :  { %2458 = vmatmul.f32.gmra.mxu2 %v5447_v0  ;;  %v1892_v19 = vpop.f32.mrf.mxu3 }
 0x2b6   :  { %v5975_v10 = vadd.f32 %v1892_v19, %v1612_v39  ;;  %v5987_v39 = vsub.f32 %v2776_v9, %v5980_v52  ;;  %v6006_v26 = vpop.f32.mrf.mxu1 }
 0x2b8   :  { %7305 = vst [vmem:[#allocation14_spill] sm:$0xff] %v5975_v10  ;;  %v1619_v42 = vpop.f32.mrf.mxu2  ;;  %3337 = vmatpush.msra.mxu2 %v5987_v39  ;;  %v7309_v10 = vld [vmem:[#allocation23_spill] sm:$0xff] }
 0x2b9   :  { %v1620_v8 = vadd.f32 %v5699_v27, %v1619_v42 }
 0x2ba   :  { %2619 = vmatmul.f32.gmra.mxu3 %v5447_v0  ;;  %v7039_v0 = vand.u32 4294901760, %v5987_v39 }
 0x2bc   :  { %v3143_v42 = vsub.f32 %v5987_v39, %v7039_v0 }
 0x2bd   :  { %2462 = vmatmul.f32.gmra.mxu2 %v5464_v58  ;;  %v1896_v47 = vpop.f32.mrf.mxu3 }
 0x2be   :  { %v5982_v55 = vadd.f32 %v1896_v47, %v1620_v8  ;;  %v3144_v9 = vand.u32 4294901760, %v3143_v42 }
 0x2c0   :  { %7306 = vst [vmem:[#allocation65_spill] sm:$0xff] %v5982_v55  ;;  %v1627_v18 = vpop.f32.mrf.mxu2  ;;  %3145 = vmatpush.msrb.mxu1 %v3144_v9 }
 0x2c1   :  { %v1628_v19 = vadd.f32 %v5699_v27, %v1627_v18  ;;  %v2775_v18 = vld [vmem:[#allocation9 + $0x20] sm:$0xff] }
 0x2c2   :  { %2623 = vmatmul.f32.gmra.mxu3 %v5464_v58  ;;  %v6002_v58 = vpop.f32.mrf.mxu0  ;;  %v6008_v21 = vand.u32 4294901760, %v2775_v18 }
 0x2c4   :  { %2814 = vmatpush.msrb.mxu0 %v6008_v21  ;;  %3537 = vmatpush.msra.mxu3 %v6008_v21 }
 0x2c5   :  { %2466 = vmatmul.f32.gmra.mxu2 %v7307_v59  ;;  %v1900_v8 = vpop.f32.mrf.mxu3 }
 0x2c6   :  { %v5999_v47 = vadd.f32 %v1900_v8, %v1628_v19  ;;  %v7311_v8 = vld [vmem:[#allocation25_spill] sm:$0xff]  ;;  %2816 = vmatpush.msrb.mxu0 %v6034_v61  ;;  %3539 = vmatpush.msra.mxu3 %v6034_v61 }
 0x2c8   :  { %7308 = vst [vmem:[#allocation39_spill] sm:$0xff] %v5999_v47  ;;  %v1635_v48 = vpop.f32.mrf.mxu2  ;;  %v6029_v47 = vpop.f32.mrf.mxu1 }
 0x2c9   :  { %v1636_v55 = vadd.f32 %v5699_v27, %v1635_v48  ;;  %7313 = vst [vmem:[#allocation42_spill] sm:$0xff] %v6029_v47  ;;  %v6064_v47 = vand.u32 4294901760, %v2773_v35 }
 0x2ca   :  { %2627 = vmatmul.f32.gmra.mxu3 %v7307_v59  ;;  %v6015_v59 = vsub.f32 %v2775_v18, %v6008_v21 }
 0x2cb   :  { %2818 = vmatpush.msrb.mxu0 %v6064_v47  ;;  %3541 = vmatpush.msra.mxu3 %v6064_v47 }
 0x2cc   :  { %v7044_v48 = vand.u32 4294901760, %v6015_v59  ;;  %3340 = vmatpush.msra.mxu2 %v6015_v59 }
 0x2cd   :  { %2470 = vmatmul.f32.gmra.mxu2 %v7309_v10  ;;  %v1904_v44 = vpop.f32.mrf.mxu3 }
 0x2ce   :  { %v6010_v0 = vadd.f32 %v1904_v44, %v1636_v55  ;;  %v3149_v55 = vsub.f32 %v6015_v59, %v7044_v48  ;;  %v6025_v44 = vpop.f32.mrf.mxu0 }
 0x2d0   :  { %7310 = vst [vmem:[#allocation16_spill] sm:$0xff] %v6010_v0  ;;  %v1643_v19 = vpop.f32.mrf.mxu2  ;;  %v3150_v18 = vand.u32 4294901760, %v3149_v55  ;;  %v6043_v55 = vsub.f32 %v2774_v17, %v6034_v61 }
 0x2d1   :  { %v1644_v42 = vadd.f32 %v5699_v27, %v1643_v19 }
 0x2d2   :  { %2631 = vmatmul.f32.gmra.mxu3 %v7309_v10  ;;  %3151 = vmatpush.msrb.mxu1 %v3150_v18  ;;  %v7318_v18 = vld [vmem:[#allocation41_spill] sm:$0xff] }
 0x2d3   :  { %3343 = vmatpush.msra.mxu2 %v6043_v55 }
 0x2d5   :  { %2474 = vmatmul.f32.gmra.mxu2 %v7311_v8  ;;  %v1908_v9 = vpop.f32.mrf.mxu3 }
 0x2d6   :  { %v6027_v0 = vadd.f32 %v1908_v9, %v1644_v42  ;;  %v6038_v1 = vpop.f32.mrf.mxu0  ;;  %v7049_v9 = vand.u32 4294901760, %v6043_v55 }
 0x2d7   :  { %7316 = vst [vmem:[#allocation17_spill] sm:$0xff] %v6038_v1 }
 0x2d8   :  { %7312 = vst [vmem:[#allocation15_spill] sm:$0xff] %v6027_v0  ;;  %v1651_v10 = vpop.f32.mrf.mxu2 }
 0x2d9   :  { %v1652_v19 = vadd.f32 %v5699_v27, %v1651_v10  ;;  %v3155_v10 = vsub.f32 %v6043_v55, %v7049_v9 }
 0x2da   :  { %2635 = vmatmul.f32.gmra.mxu3 %v7311_v8  ;;  %v6045_v8 = vpop.f32.mrf.mxu1 }
 0x2db   :  { %7317 = vst [vmem:[#allocation43_spill] sm:$0xff] %v6045_v8  ;;  %v3156_v17 = vand.u32 4294901760, %v3155_v10  ;;  %v7322_v8 = vld [vmem:[#allocation27_spill] sm:$0xff]  ;;  %v6071_v10 = vsub.f32 %v2773_v35, %v6064_v47 }
 0x2dd   :  { %2478 = vmatmul.f32.gmra.mxu2 %v7314_v29  ;;  %v1912_v54 = vpop.f32.mrf.mxu3  ;;  %3157 = vmatpush.msrb.mxu1 %v3156_v17 }
 0x2de   :  { %v6036_v48 = vadd.f32 %v1912_v54, %v1652_v19  ;;  %v6057_v25 = vpop.f32.mrf.mxu0  ;;  %3346 = vmatpush.msra.mxu2 %v6071_v10 }
 0x2df   :  { %7320 = vst [vmem:[#allocation19_spill] sm:$0xff] %v6057_v25 }
 0x2e0   :  { %7315 = vst [vmem:[#allocation18_spill] sm:$0xff] %v6036_v48  ;;  %v1659_v42 = vpop.f32.mrf.mxu2 }
 0x2e1   :  { %v1660_v54 = vadd.f32 %v5699_v27, %v1659_v42 }
 0x2e2   :  { %2639 = vmatmul.f32.gmra.mxu3 %v7314_v29  ;;  %v6060_v29 = vpop.f32.mrf.mxu1 }
 0x2e3   :  { %7321 = vst [vmem:[#allocation46_spill] sm:$0xff] %v6060_v29 }
 0x2e5   :  { %2482 = vmatmul.f32.gmra.mxu2 %v7318_v18  ;;  %v1916_v19 = vpop.f32.mrf.mxu3 }
 0x2e6   :  { %v6055_v48 = vadd.f32 %v1916_v19, %v1660_v54 }
 0x2e8   :  { %7319 = vst [vmem:[#allocation20_spill] sm:$0xff] %v6055_v48  ;;  %v1667_v0 = vpop.f32.mrf.mxu2 }
 0x2e9   :  { %v1668_v42 = vadd.f32 %v5699_v27, %v1667_v0  ;;  %v7050_v0 = vand.u32 4294901760, %v6071_v10 }
 0x2ea   :  { %2643 = vmatmul.f32.gmra.mxu3 %v7318_v18  ;;  %v6076_v18 = vpop.f32.mrf.mxu0 }
 0x2eb   :  { %7324 = vst [vmem:[#allocation21_spill] sm:$0xff] %v6076_v18  ;;  %v3161_v17 = vsub.f32 %v6071_v10, %v7050_v0  ;;  %v7328_v18 = vld [vmem:[#allocation33_spill] sm:$0xff] }
 0x2ed   :  { %2486 = vmatmul.f32.gmra.mxu2 %v7322_v8  ;;  %v1920_v49 = vpop.f32.mrf.mxu3 }
 0x2ee   :  { %v6066_v9 = vadd.f32 %v1920_v49, %v1668_v42  ;;  %v7325_v49 = vld [vmem:[#allocation26_spill] sm:$0xff]  ;;  %v6083_v42 = vpop.f32.mrf.mxu1 }
 0x2ef   :  { %7326 = vst [vmem:[#allocation47_spill] sm:$0xff] %v6083_v42 }
 0x2f0   :  { %7323 = vst [vmem:[#allocation22_spill] sm:$0xff] %v6066_v9  ;;  %v1675_v54 = vpop.f32.mrf.mxu2 }
 0x2f1   :  { %v1676_v19 = vadd.f32 %v5699_v27, %v1675_v54  ;;  %v2772_v54 = vld [vmem:[#allocation9 + $0x8] sm:$0xff] }
 0x2f2   :  { %2647 = vmatmul.f32.gmra.mxu3 %v7322_v8  ;;  %v3162_v8 = vand.u32 4294901760, %v3161_v17  ;;  %v6090_v25 = vpop.f32.mrf.mxu0  ;;  %v6092_v33 = vand.u32 4294901760, %v2772_v54 }
 0x2f3   :  { %7329 = vst [vmem:[#allocation51_spill] sm:$0xff] %v6090_v25 }
 0x2f4   :  { %3163 = vmatpush.msrb.mxu1 %v3162_v8  ;;  %2820 = vmatpush.msrb.mxu0 %v6092_v33 }
 0x2f5   :  { %2490 = vmatmul.f32.gmra.mxu2 %v7325_v49  ;;  %v1924_v35 = vpop.f32.mrf.mxu3  ;;  %3543 = vmatpush.msra.mxu3 %v6092_v33 }
 0x2f6   :  { %v6085_v9 = vadd.f32 %v1924_v35, %v1676_v19  ;;  %v6096_v42 = vpop.f32.mrf.mxu1 }
 0x2f7   :  { %7331 = vst [vmem:[#allocation55_spill] sm:$0xff] %v6096_v42 }
 0x2f8   :  { %7327 = vst [vmem:[#allocation50_spill] sm:$0xff] %v6085_v9  ;;  %v1683_v48 = vpop.f32.mrf.mxu2 }
 0x2f9   :  { %v1684_v29 = vadd.f32 %v5699_v27, %v1683_v48 }
 0x2fa   :  { %2651 = vmatmul.f32.gmra.mxu3 %v7325_v49  ;;  %v6101_v49 = vsub.f32 %v2772_v54, %v6092_v33  ;;  %v6113_v54 = vpop.f32.mrf.mxu0 }
 0x2fb   :  { %7334 = vst [vmem:[#allocation59_spill] sm:$0xff] %v6113_v54 }
 0x2fc   :  { %v7051_v48 = vand.u32 4294901760, %v6101_v49  ;;  %3349 = vmatpush.msra.mxu2 %v6101_v49 }
 0x2fd   :  { %2494 = vmatmul.f32.gmra.mxu2 %v7328_v18  ;;  %v1928_v1 = vpop.f32.mrf.mxu3 }
 0x2fe   :  { %v6094_v0 = vadd.f32 %v1928_v1, %v1684_v29  ;;  %v7332_v1 = vld [vmem:[#allocation45_spill] sm:$0xff]  ;;  %v3167_v29 = vsub.f32 %v6101_v49, %v7051_v48  ;;  %v6115_v42 = vpop.f32.mrf.mxu1 }
 0x2ff   :  { %7335 = vst [vmem:[#allocation60_spill] sm:$0xff] %v6115_v42 }
 0x300   :  { %7330 = vst [vmem:[#allocation54_spill] sm:$0xff] %v6094_v0  ;;  %v1691_v19 = vpop.f32.mrf.mxu2  ;;  %v3168_v0 = vand.u32 4294901760, %v3167_v29  ;;  %v7336_v29 = vld [vmem:[#allocation34_spill] sm:$0xff] }
 0x301   :  { %v1692_v17 = vadd.f32 %v5699_v27, %v1691_v19 }
 0x302   :  { %2655 = vmatmul.f32.gmra.mxu3 %v7328_v18  ;;  %3169 = vmatpush.msrb.mxu1 %v3168_v0  ;;  %v2771_v18 = vld [vmem:[#allocation9] sm:$0xff]  ;;  %v7337_v0 = vand.u32 4294901760, %v5678_v6 }
 0x303   :  { %v6117_v25 = vand.u32 4294901760, %v2771_v18 }
 0x305   :  { %2498 = vmatmul.f32.gmra.mxu2 %v7332_v1  ;;  %v1932_v35 = vpop.f32.mrf.mxu3  ;;  %2822 = vmatpush.msrb.mxu0 %v6117_v25  ;;  %v6122_v19 = vsub.f32 %v2771_v18, %v6117_v25 }
 0x306   :  { %v6111_v8 = vadd.f32 %v1932_v35, %v1692_v17  ;;  %3545 = vmatpush.msra.mxu3 %v6117_v25  ;;  %v6143_v54 = vpop.f32.mrf.mxu1 }
 0x307   :  { %3742 = vmatpush.msra.mxu0 %v7337_v0  ;;  %v3172_v48 = vand.u32 4294901760, %v6122_v19  ;;  %3352 = vmatpush.msra.mxu2 %v6122_v19  ;;  %v7340_v0 = vand.u32 4294901760, %v5790_v53  ;;  %v7344_v53 = vld [vmem:[#allocation28_spill] sm:$0xff] }
 0x308   :  { %7333 = vst [vmem:[#allocation57_spill] sm:$0xff] %v6111_v8  ;;  %v1699_v9 = vpop.f32.mrf.mxu2  ;;  %v7338_v8 = vand.u32 4294901760, %v5716_v5  ;;  %v4197_v5 = vld [vmem:[%s6896_s4] ss:$0 sm:$0xff] }
 0x309   :  { %v1700_v17 = vadd.f32 %v5699_v27, %v1699_v9  ;;  %v3173_v42 = vsub.f32 %v6122_v19, %v3172_v48  ;;  %v7339_v27 = vand.u32 4294901760, %v5753_v24  ;;  %v6138_v9 = vpop.f32.mrf.mxu0  ;;  %v7341_v19 = vld [vmem:[#allocation49_spill] sm:$0xff] }
 0x30a   :  { %2659 = vmatmul.f32.gmra.mxu3 %v7332_v1  ;;  %3746 = vmatpush.msra.mxu0 %v7338_v8  ;;  %v7342_v24 = vld [vmem:[#allocation29_spill] sm:$0xff] }
 0x30b   :  { %v3174_v6 = vand.u32 4294901760, %v3173_v42  ;;  %v7343_v42 = vand.u32 4294901760, %v5827_v62  ;;  %v7347_v62 = vand.u32 4294901760, %v5923_v32  ;;  %v7351_v32 = vand.u32 4294901760, %v5987_v39 }
 0x30c   :  { %3750 = vmatpush.msra.mxu0 %v7339_v27  ;;  %v7345_v27 = vand.u32 4294901760, %v5864_v23 }
 0x30d   :  { %2502 = vmatmul.f32.gmra.mxu2 %v7336_v29  ;;  %v1936_v35 = vpop.f32.mrf.mxu3  ;;  %3175 = vmatpush.msrb.mxu1 %v3174_v6 }
 0x30e   :  { %v6131_v1 = vadd.f32 %v1936_v35, %v1700_v17  ;;  %3754 = vmatpush.msra.mxu0 %v7340_v0  ;;  %v6168_v23 = vpop.f32.mrf.mxu1 }
 0x30f   :  { %3933 = vmatpush.msra.mxu1 %v7342_v24 }
 0x310   :  { %v1707_v18 = vpop.f32.mrf.mxu2  ;;  %3758 = vmatpush.msra.mxu0 %v7343_v42 }
 0x311   :  { %v1708_v8 = vadd.f32 %v4197_v5, %v1707_v18  ;;  %3935 = vmatpush.msra.mxu1 %v7344_v53  ;;  %v7346_v18 = vand.u32 4294901760, %v5896_v15  ;;  %v6162_v6 = vpop.f32.mrf.mxu0  ;;  %v7349_v15 = vand.u32 4294901760, %v5943_v37  ;;  %v7358_v53 = vld [vmem:[#allocation40_spill] sm:$0xff] }
 0x312   :  { %2663 = vmatmul.f32.gmra.mxu3 %v7336_v29  ;;  %3762 = vmatpush.msra.mxu0 %v7345_v27 }
 0x313   :  { %3937 = vmatpush.msra.mxu1 %v5748_v40 }
 0x314   :  { %3766 = vmatpush.msra.mxu0 %v7346_v18 }
 0x315   :  { %2506 = vmatmul.f32.gmra.mxu2 %v7341_v19  ;;  %v1940_v17 = vpop.f32.mrf.mxu3  ;;  %3939 = vmatpush.msra.mxu1 %v5785_v43 }
 0x316   :  { %v6152_v29 = vadd.f32 %v1940_v17, %v1708_v8  ;;  %3770 = vmatpush.msra.mxu0 %v7347_v62  ;;  %v7348_v8 = vld [vmem:[#allocation37_spill] sm:$0xff]  ;;  %v6193_v42 = vpop.f32.mrf.mxu1 }
 0x317   :  { %3941 = vmatpush.msra.mxu1 %v5822_v4  ;;  %v7352_v4 = vand.u32 4294901760, %v6015_v59  ;;  %v7353_v17 = vld [vmem:[#allocation53_spill] sm:$0xff]  ;;  %v7355_v59 = vand.u32 4294901760, %v6071_v10 }
 0x318   :  { %v1715_v35 = vpop.f32.mrf.mxu2  ;;  %3774 = vmatpush.msra.mxu0 %v7349_v15 }
 0x319   :  { %v1716_v0 = vadd.f32 %v4197_v5, %v1715_v35  ;;  %3943 = vmatpush.msra.mxu1 %v5857_v50  ;;  %v6186_v50 = vpop.f32.mrf.mxu0 }
 0x31a   :  { %2667 = vmatmul.f32.gmra.mxu3 %v7341_v19  ;;  %v7350_v19 = vand.u32 4294901760, %v5965_v20 }
 0x31b   :  { %3945 = vmatpush.msra.mxu1 %v5887_v16  ;;  %v7354_v16 = vand.u32 4294901760, %v6043_v55  ;;  %v7357_v55 = vld [vmem:[#allocation58_spill] sm:$0xff] }
 0x31c   :  { %3778 = vmatpush.msra.mxu0 %v7350_v19 }
 0x31d   :  { %2510 = vmatmul.f32.gmra.mxu2 %v7348_v8  ;;  %v1944_v40 = vpop.f32.mrf.mxu3  ;;  %3947 = vmatpush.msra.mxu1 %v5915_v36 }
 0x31e   :  { %v6172_v24 = vadd.f32 %v1944_v40, %v1716_v0  ;;  %3782 = vmatpush.msra.mxu0 %v7351_v32  ;;  %v6209_v27 = vpop.f32.mrf.mxu1 }
 0x31f   :  { %3949 = vmatpush.msra.mxu1 %v5936_v13  ;;  %v7356_v13 = vand.u32 4294901760, %v6101_v49 }
 0x320   :  { %v1723_v43 = vpop.f32.mrf.mxu2  ;;  %3786 = vmatpush.msra.mxu0 %v7352_v4 }
 0x321   :  { %v1724_v37 = vadd.f32 %v4197_v5, %v1723_v43  ;;  %3951 = vmatpush.msra.mxu1 %v5958_v46  ;;  %v6206_v10 = vpop.f32.mrf.mxu0 }
 0x322   :  { %2671 = vmatmul.f32.gmra.mxu3 %v7348_v8  ;;  %3790 = vmatpush.msra.mxu0 %v7354_v16 }
 0x323   :  { %3953 = vmatpush.msra.mxu1 %v5980_v52 }
 0x324   :  { %3794 = vmatpush.msra.mxu0 %v7355_v59 }
 0x325   :  { %2514 = vmatmul.f32.gmra.mxu2 %v7353_v17  ;;  %v1948_v20 = vpop.f32.mrf.mxu3  ;;  %3955 = vmatpush.msra.mxu1 %v6008_v21 }
 0x326   :  { %v6190_v39 = vadd.f32 %v1948_v20, %v1724_v37  ;;  %3798 = vmatpush.msra.mxu0 %v7356_v13 }
 0x327   :  { %3957 = vmatpush.msra.mxu1 %v6034_v61 }
 0x328   :  { %v2451_v36 = vpop.f32.mrf.mxu2  ;;  %3802 = vmatpush.msra.mxu0 %v3172_v48 }
 0x329   :  { %v2452_v5 = vadd.f32 %v2451_v36, %v7357_v55  ;;  %3959 = vmatpush.msra.mxu1 %v6064_v47 }
 0x32a   :  { %2675 = vmatmul.f32.gmra.mxu3 %v7353_v17 }
 0x32b   :  { %3961 = vmatpush.msra.mxu1 %v6092_v33 }
 0x32d   :  { %2518 = vmatmul.f32.gmra.mxu2 %v7358_v53  ;;  %v2612_v46 = vpop.f32.mrf.mxu3  ;;  %3963 = vmatpush.msra.mxu1 %v6117_v25  ;;  %v6225_v25 = vpop.f32.mrf.mxu0 }
 0x32e   :  { %v2613_v35 = vadd.f32 %v2612_v46, %v2452_v5 }
 0x330   :  { %v2455_v52 = vpop.f32.mrf.mxu2  ;;  %v2739_v49 = vmax.f32 %v2613_v35, 0.0 }
 0x331   :  { %v2456_v48 = vadd.f32 %v2455_v52, %v5739_v7  ;;  %v6230_v7 = vpop.f32.mrf.mxu1 }
 0x332   :  { %v6211_v21 = vand.u32 4294901760, %v2739_v49  ;;  %2679 = vmatmul.f32.gmra.mxu3 %v7358_v53 }
 0x334   :  { %v6216_v61 = vsub.f32 %v2739_v49, %v6211_v21  ;;  %3177 = vmatmul.f32.vlgmr.msrb.gmra.mxu1 %v6211_v21 }
 0x335   :  { %2522 = vmatmul.f32.gmra.mxu2 %v5685_v51  ;;  %v2616_v47 = vpop.f32.mrf.mxu3  ;;  %v6245_v36 = vpop.f32.mrf.mxu0 }
 0x336   :  { %v7061_v33 = vand.u32 4294901760, %v6216_v61  ;;  %v2617_v18 = vadd.f32 %v2616_v47, %v2456_v48 }
 0x338   :  { %v2459_v62 = vpop.f32.mrf.mxu2  ;;  %v2826_v0 = vsub.f32 %v6216_v61, %v7061_v33  ;;  %v2740_v8 = vmax.f32 %v2617_v18, 0.0 }
 0x339   :  { %v2460_v19 = vadd.f32 %v2459_v62, %v5761_v56  ;;  %v6252_v55 = vpop.f32.mrf.mxu1 }
 0x33a   :  { %v2827_v40 = vand.u32 4294901760, %v2826_v0  ;;  %v6227_v15 = vand.u32 4294901760, %v2740_v8  ;;  %2683 = vmatmul.f32.gmra.mxu3 %v5685_v51 }
 0x33c   :  { %7359 = vst [vmem:[#allocation63_spill] sm:$0xff] %v6227_v15  ;;  %v6233_v43 = vsub.f32 %v2740_v8, %v6227_v15  ;;  %2828 = vmatmul.f32.vlgmr.msrb.gmra.mxu0 %v2827_v40  ;;  %3181 = vmatmul.f32.gmra.mxu1 %v6227_v15 }
 0x33d   :  { %2526 = vmatmul.f32.gmra.mxu2 %v5701_v34  ;;  %v2620_v32 = vpop.f32.mrf.mxu3  ;;  %v6267_v18 = vpop.f32.mrf.mxu0 }
 0x33e   :  { %v2621_v4 = vadd.f32 %v2620_v32, %v2460_v19  ;;  %v7060_v37 = vand.u32 4294901760, %v6233_v43 }
 0x340   :  { %v2463_v17 = vpop.f32.mrf.mxu2  ;;  %v2741_v20 = vmax.f32 %v2621_v4, 0.0  ;;  %v2834_v51 = vsub.f32 %v6233_v43, %v7060_v37  ;;  %v7378_v37 = vld [vmem:[#allocation21_spill] sm:$0xff] }
 0x341   :  { %v2464_v13 = vadd.f32 %v2463_v17, %v5776_v57  ;;  %v6271_v40 = vpop.f32.mrf.mxu1 }
 0x342   :  { %v6242_v16 = vand.u32 4294901760, %v2741_v20  ;;  %2687 = vmatmul.f32.gmra.mxu3 %v5701_v34  ;;  %v2835_v56 = vand.u32 4294901760, %v2834_v51 }
 0x344   :  { %7360 = vst [vmem:[#allocation24_spill] sm:$0xff] %v6242_v16  ;;  %v6248_v59 = vsub.f32 %v2741_v20, %v6242_v16  ;;  %2836 = vmatmul.f32.gmra.mxu0 %v2835_v56  ;;  %3185 = vmatmul.f32.gmra.mxu1 %v6242_v16 }
 0x345   :  { %2530 = vmatmul.f32.gmra.mxu2 %v5720_v38  ;;  %v2624_v5 = vpop.f32.mrf.mxu3 }
 0x346   :  { %v2625_v53 = vadd.f32 %v2624_v5, %v2464_v13  ;;  %v7058_v46 = vand.u32 4294901760, %v6248_v59  ;;  %v6286_v5 = vpop.f32.mrf.mxu0 }
 0x348   :  { %v2467_v34 = vpop.f32.mrf.mxu2  ;;  %v2742_v35 = vmax.f32 %v2625_v53, 0.0  ;;  %v2842_v52 = vsub.f32 %v6248_v59, %v7058_v46 }
 0x349   :  { %v2468_v47 = vadd.f32 %v2467_v34, %v5798_v31 }
 0x34a   :  { %v6259_v49 = vand.u32 4294901760, %v2742_v35  ;;  %2691 = vmatmul.f32.gmra.mxu3 %v5720_v38  ;;  %v2843_v57 = vand.u32 4294901760, %v2842_v52 }
 0x34c   :  { %7361 = vst [vmem:[#allocation23_spill] sm:$0xff] %v6259_v49  ;;  %v6263_v48 = vsub.f32 %v2742_v35, %v6259_v49  ;;  %2844 = vmatmul.f32.gmra.mxu0 %v2843_v57  ;;  %3189 = vmatmul.f32.gmra.mxu1 %v6259_v49  ;;  %v6291_v35 = vpop.f32.mrf.mxu1 }
 0x34d   :  { %2534 = vmatmul.f32.gmra.mxu2 %v5735_v3  ;;  %v2628_v62 = vpop.f32.mrf.mxu3 }
 0x34e   :  { %v2629_v0 = vadd.f32 %v2628_v62, %v2468_v47  ;;  %v7057_v8 = vand.u32 4294901760, %v6263_v48 }
 0x350   :  { %v2471_v38 = vpop.f32.mrf.mxu2  ;;  %v2743_v19 = vmax.f32 %v2629_v0, 0.0  ;;  %v2850_v32 = vsub.f32 %v6263_v48, %v7057_v8 }
 0x351   :  { %v2472_v20 = vadd.f32 %v2471_v38, %v5813_v22 }
 0x352   :  { %v6276_v31 = vand.u32 4294901760, %v2743_v19  ;;  %2695 = vmatmul.f32.gmra.mxu3 %v5735_v3  ;;  %v2851_v4 = vand.u32 4294901760, %v2850_v32 }
 0x354   :  { %7362 = vst [vmem:[#allocation25_spill] sm:$0xff] %v6276_v31  ;;  %v6280_v17 = vsub.f32 %v2743_v19, %v6276_v31  ;;  %2852 = vmatmul.f32.gmra.mxu0 %v2851_v4  ;;  %3193 = vmatmul.f32.gmra.mxu1 %v6276_v31  ;;  %v6306_v4 = vpop.f32.mrf.mxu0 }
 0x355   :  { %2538 = vmatmul.f32.gmra.mxu2 %v5757_v28  ;;  %v2632_v51 = vpop.f32.mrf.mxu3 }
 0x356   :  { %v2633_v56 = vadd.f32 %v2632_v51, %v2472_v20  ;;  %v7055_v13 = vand.u32 4294901760, %v6280_v17  ;;  %v6311_v51 = vpop.f32.mrf.mxu1 }
 0x358   :  { %v2475_v53 = vpop.f32.mrf.mxu2  ;;  %v2744_v34 = vmax.f32 %v2633_v56, 0.0  ;;  %v2858_v3 = vsub.f32 %v6280_v17, %v7055_v13  ;;  %v7373_v13 = vld [vmem:[#allocation19_spill] sm:$0xff] }
 0x359   :  { %v2476_v47 = vadd.f32 %v2475_v53, %v5835_v11 }
 0x35a   :  { %v6293_v22 = vand.u32 4294901760, %v2744_v34  ;;  %2699 = vmatmul.f32.gmra.mxu3 %v5757_v28  ;;  %v2859_v52 = vand.u32 4294901760, %v2858_v3  ;;  %v2043_v3 = vadd.f32 %v6002_v58, %v5859_v14 }
 0x35c   :  { %7363 = vst [vmem:[#allocation31_spill] sm:$0xff] %v6293_v22  ;;  %v6297_v57 = vsub.f32 %v2744_v34, %v6293_v22  ;;  %2860 = vmatmul.f32.gmra.mxu0 %v2859_v52  ;;  %3197 = vmatmul.f32.gmra.mxu1 %v6293_v22  ;;  %v7388_v22 = vld [vmem:[#allocation59_spill] sm:$0xff] }
 0x35d   :  { %2542 = vmatmul.f32.gmra.mxu2 %v5772_v60  ;;  %v2636_v62 = vpop.f32.mrf.mxu3 }
 0x35e   :  { %v2637_v0 = vadd.f32 %v2636_v62, %v2476_v47  ;;  %v7054_v38 = vand.u32 4294901760, %v6297_v57 }
 0x360   :  { %v2479_v19 = vpop.f32.mrf.mxu2  ;;  %v2745_v32 = vmax.f32 %v2637_v0, 0.0  ;;  %v2866_v28 = vsub.f32 %v6297_v57, %v7054_v38 }
 0x361   :  { %v2480_v53 = vadd.f32 %v2479_v19, %v5850_v12  ;;  %v2245_v12 = vadd.f32 %v5992_v41, %v2043_v3  ;;  %v2048_v41 = vadd.f32 %v6025_v44, %v5879_v63 }
 0x362   :  { %v6308_v20 = vand.u32 4294901760, %v2745_v32  ;;  %2703 = vmatmul.f32.gmra.mxu3 %v5772_v60  ;;  %v2867_v11 = vand.u32 4294901760, %v2866_v28  ;;  %v6329_v28 = vpop.f32.mrf.mxu0 }
 0x364   :  { %7364 = vst [vmem:[#allocation41_spill] sm:$0xff] %v6308_v20  ;;  %v6314_v56 = vsub.f32 %v2745_v32, %v6308_v20  ;;  %2868 = vmatmul.f32.gmra.mxu0 %v2867_v11  ;;  %3201 = vmatmul.f32.gmra.mxu1 %v6308_v20  ;;  %v6335_v11 = vpop.f32.mrf.mxu1 }
 0x365   :  { %2546 = vmatmul.f32.gmra.mxu2 %v5794_v30  ;;  %v2640_v34 = vpop.f32.mrf.mxu3 }
 0x366   :  { %v2641_v52 = vadd.f32 %v2640_v34, %v2480_v53  ;;  %v7053_v60 = vand.u32 4294901760, %v6314_v56 }
 0x368   :  { %v2483_v47 = vpop.f32.mrf.mxu2  ;;  %v2746_v62 = vmax.f32 %v2641_v52, 0.0  ;;  %v2874_v0 = vsub.f32 %v6314_v56, %v7053_v60 }
 0x369   :  { %v2484_v58 = vadd.f32 %v2483_v47, %v2245_v12 }
 0x36a   :  { %v6325_v32 = vand.u32 4294901760, %v2746_v62  ;;  %2707 = vmatmul.f32.gmra.mxu3 %v5794_v30  ;;  %v2875_v19 = vand.u32 4294901760, %v2874_v0  ;;  %v2251_v0 = vadd.f32 %v6006_v26, %v2048_v41  ;;  %v6352_v44 = vpop.f32.mrf.mxu0 }
 0x36c   :  { %7365 = vst [vmem:[#allocation27_spill] sm:$0xff] %v6325_v32  ;;  %v6332_v14 = vsub.f32 %v2746_v62, %v6325_v32  ;;  %2876 = vmatmul.f32.gmra.mxu0 %v2875_v19  ;;  %3205 = vmatmul.f32.gmra.mxu1 %v6325_v32 }
 0x36d   :  { %2550 = vmatmul.f32.gmra.mxu2 %v5809_v45  ;;  %v2644_v53 = vpop.f32.mrf.mxu3 }
 0x36e   :  { %v2645_v34 = vadd.f32 %v2644_v53, %v2484_v58  ;;  %v7052_v30 = vand.u32 4294901760, %v6332_v14  ;;  %v7367_v53 = vld [vmem:[#allocation56_spill] sm:$0xff] }
 0x370   :  { %v2487_v3 = vpop.f32.mrf.mxu2  ;;  %v2747_v52 = vmax.f32 %v2645_v34, 0.0  ;;  %v2882_v47 = vsub.f32 %v6332_v14, %v7052_v30  ;;  %v7368_v34 = vld [vmem:[#allocation17_spill] sm:$0xff] }
 0x371   :  { %v2488_v63 = vadd.f32 %v2487_v3, %v2251_v0  ;;  %v2053_v30 = vadd.f32 %v7368_v34, %v7367_v53  ;;  %v7370_v0 = vld [vmem:[#allocation42_spill] sm:$0xff] }
 0x372   :  { %v6344_v62 = vand.u32 4294901760, %v2747_v52  ;;  %2711 = vmatmul.f32.gmra.mxu3 %v5809_v45  ;;  %v2883_v12 = vand.u32 4294901760, %v2882_v47  ;;  %v6358_v45 = vpop.f32.mrf.mxu1  ;;  %v7372_v34 = vld [vmem:[#allocation30_spill] sm:$0xff] }
 0x374   :  { %7366 = vst [vmem:[#allocation26_spill] sm:$0xff] %v6344_v62  ;;  %v6349_v19 = vsub.f32 %v2747_v52, %v6344_v62  ;;  %2884 = vmatmul.f32.gmra.mxu0 %v2883_v12  ;;  %3209 = vmatmul.f32.gmra.mxu1 %v6344_v62  ;;  %v2257_v12 = vadd.f32 %v7370_v0, %v2053_v30  ;;  %v6375_v30 = vpop.f32.mrf.mxu0  ;;  %v7375_v0 = vld [vmem:[#allocation43_spill] sm:$0xff] }
 0x375   :  { %2554 = vmatmul.f32.gmra.mxu2 %v5831_v2  ;;  %v2648_v58 = vpop.f32.mrf.mxu3 }
 0x376   :  { %v2649_v60 = vadd.f32 %v2648_v58, %v2488_v63  ;;  %v7056_v26 = vand.u32 4294901760, %v6349_v19  ;;  %v7371_v58 = vld [vmem:[#allocation44_spill] sm:$0xff] }
 0x378   :  { %v2491_v41 = vpop.f32.mrf.mxu2  ;;  %v2748_v52 = vmax.f32 %v2649_v60, 0.0  ;;  %v2890_v3 = vsub.f32 %v6349_v19, %v7056_v26  ;;  %v2058_v26 = vadd.f32 %v7373_v13, %v7372_v34  ;;  %v7376_v34 = vld [vmem:[#allocation48_spill] sm:$0xff] }
 0x379   :  { %v2492_v63 = vadd.f32 %v2491_v41, %v2257_v12 }
 0x37a   :  { %v6363_v47 = vand.u32 4294901760, %v2748_v52  ;;  %2715 = vmatmul.f32.gmra.mxu3 %v5831_v2  ;;  %v2891_v38 = vand.u32 4294901760, %v2890_v3  ;;  %v2263_v12 = vadd.f32 %v7375_v0, %v2058_v26 }
 0x37c   :  { %7369 = vst [vmem:[#allocation33_spill] sm:$0xff] %v6363_v47  ;;  %v6368_v53 = vsub.f32 %v2748_v52, %v6363_v47  ;;  %2892 = vmatmul.f32.gmra.mxu0 %v2891_v38  ;;  %3213 = vmatmul.f32.gmra.mxu1 %v6363_v47  ;;  %v6380_v52 = vpop.f32.mrf.mxu1 }
 0x37d   :  { %2558 = vmatmul.f32.gmra.mxu2 %v7371_v58  ;;  %v2652_v60 = vpop.f32.mrf.mxu3 }
 0x37e   :  { %v2653_v8 = vadd.f32 %v2652_v60, %v2492_v63  ;;  %v7059_v46 = vand.u32 4294901760, %v6368_v53 }
 0x380   :  { %v2495_v2 = vpop.f32.mrf.mxu2  ;;  %v2749_v3 = vmax.f32 %v2653_v8, 0.0  ;;  %v2898_v41 = vsub.f32 %v6368_v53, %v7059_v46  ;;  %v7377_v46 = vld [vmem:[#allocation61_spill] sm:$0xff] }
 0x381   :  { %v2496_v60 = vadd.f32 %v2495_v2, %v2263_v12  ;;  %v2063_v33 = vadd.f32 %v7378_v37, %v7377_v46 }
 0x382   :  { %v6382_v38 = vand.u32 4294901760, %v2749_v3  ;;  %2719 = vmatmul.f32.gmra.mxu3 %v7371_v58  ;;  %v2899_v13 = vand.u32 4294901760, %v2898_v41  ;;  %v7380_v41 = vld [vmem:[#allocation46_spill] sm:$0xff] }
 0x383   :  { %v2269_v12 = vadd.f32 %v7380_v41, %v2063_v33 }
 0x384   :  { %7374 = vst [vmem:[#allocation45_spill] sm:$0xff] %v6382_v38  ;;  %v6387_v63 = vsub.f32 %v2749_v3, %v6382_v38  ;;  %2900 = vmatmul.f32.gmra.mxu0 %v2899_v13  ;;  %3217 = vmatmul.f32.gmra.mxu1 %v6382_v38  ;;  %v6397_v3 = vpop.f32.mrf.mxu0  ;;  %v6403_v38 = vpop.f32.mrf.mxu1 }
 0x385   :  { %2562 = vmatmul.f32.gmra.mxu2 %v7376_v34  ;;  %v2656_v8 = vpop.f32.mrf.mxu3 }
 0x386   :  { %v2657_v47 = vadd.f32 %v2656_v8, %v2496_v60  ;;  %v7068_v62 = vand.u32 4294901760, %v6387_v63  ;;  %v7382_v8 = vld [vmem:[#allocation35_spill] sm:$0xff] }
 0x388   :  { %v2499_v26 = vpop.f32.mrf.mxu2  ;;  %v2750_v0 = vmax.f32 %v2657_v47, 0.0  ;;  %v2906_v58 = vsub.f32 %v6387_v63, %v7068_v62  ;;  %v7381_v47 = vld [vmem:[#allocation52_spill] sm:$0xff]  ;;  %v7383_v62 = vld [vmem:[#allocation51_spill] sm:$0xff] }
 0x389   :  { %v2500_v46 = vadd.f32 %v2499_v26, %v2269_v12  ;;  %v2068_v32 = vadd.f32 %v7383_v62, %v7382_v8  ;;  %v7385_v26 = vld [vmem:[#allocation47_spill] sm:$0xff] }
 0x38a   :  { %v6399_v2 = vand.u32 4294901760, %v2750_v0  ;;  %2723 = vmatmul.f32.gmra.mxu3 %v7376_v34  ;;  %v2907_v13 = vand.u32 4294901760, %v2906_v58 }
 0x38b   :  { %v2275_v12 = vadd.f32 %v7385_v26, %v2068_v32 }
 0x38c   :  { %7379 = vst [vmem:[#allocation34_spill] sm:$0xff] %v6399_v2  ;;  %v6406_v37 = vsub.f32 %v2750_v0, %v6399_v2  ;;  %2908 = vmatmul.f32.gmra.mxu0 %v2907_v13  ;;  %3221 = vmatmul.f32.gmra.mxu1 %v6399_v2  ;;  %v6420_v2 = vpop.f32.mrf.mxu0 }
 0x38d   :  { %2566 = vmatmul.f32.gmra.mxu2 %v7381_v47  ;;  %v2660_v60 = vpop.f32.mrf.mxu3 }
 0x38e   :  { %v2661_v20 = vadd.f32 %v2660_v60, %v2500_v46  ;;  %v7075_v33 = vand.u32 4294901760, %v6406_v37  ;;  %v7386_v60 = vld [vmem:[#allocation32_spill] sm:$0xff] }
 0x390   :  { %v2503_v34 = vpop.f32.mrf.mxu2  ;;  %v2751_v58 = vmax.f32 %v2661_v20, 0.0  ;;  %v2914_v0 = vsub.f32 %v6406_v37, %v7075_v33  ;;  %v6426_v20 = vpop.f32.mrf.mxu1  ;;  %v7387_v33 = vld [vmem:[#allocation36_spill] sm:$0xff] }
 0x391   :  { %v2504_v46 = vadd.f32 %v2503_v34, %v2275_v12  ;;  %v2073_v32 = vadd.f32 %v7388_v22, %v7387_v33  ;;  %v7390_v12 = vld [vmem:[#allocation55_spill] sm:$0xff]  ;;  %v7391_v33 = vld [vmem:[#allocation62_spill] sm:$0xff] }
 0x392   :  { %v6416_v41 = vand.u32 4294901760, %v2751_v58  ;;  %2727 = vmatmul.f32.gmra.mxu3 %v7381_v47  ;;  %v2915_v13 = vand.u32 4294901760, %v2914_v0 }
 0x394   :  { %7384 = vst [vmem:[#allocation49_spill] sm:$0xff] %v6416_v41  ;;  %v6423_v62 = vsub.f32 %v2751_v58, %v6416_v41  ;;  %2916 = vmatmul.f32.gmra.mxu0 %v2915_v13  ;;  %3225 = vmatmul.f32.gmra.mxu1 %v6416_v41  ;;  %v2281_v13 = vadd.f32 %v7390_v12, %v2073_v32  ;;  %v7394_v12 = vld [vmem:[#allocation60_spill] sm:$0xff] }
 0x395   :  { %2570 = vmatmul.f32.gmra.mxu2 %v7386_v60  ;;  %v2664_v8 = vpop.f32.mrf.mxu3 }
 0x396   :  { %v2665_v26 = vadd.f32 %v2664_v8, %v2504_v46  ;;  %v7084_v47 = vand.u32 4294901760, %v6423_v62  ;;  %v6443_v46 = vpop.f32.mrf.mxu0 }
 0x398   :  { %v2507_v0 = vpop.f32.mrf.mxu2  ;;  %v2752_v31 = vmax.f32 %v2665_v26, 0.0  ;;  %v2922_v34 = vsub.f32 %v6423_v62, %v7084_v47  ;;  %v7392_v26 = vld [vmem:[#allocation64_spill] sm:$0xff] }
 0x399   :  { %v2508_v22 = vadd.f32 %v2507_v0, %v2281_v13  ;;  %v2078_v47 = vadd.f32 %v6138_v9, %v7392_v26 }
 0x39a   :  { %v6435_v58 = vand.u32 4294901760, %v2752_v31  ;;  %2731 = vmatmul.f32.gmra.mxu3 %v7386_v60  ;;  %v2923_v41 = vand.u32 4294901760, %v2922_v34  ;;  %v6449_v60 = vpop.f32.mrf.mxu1 }
 0x39b   :  { %v2287_v13 = vadd.f32 %v7394_v12, %v2078_v47 }
 0x39c   :  { %7389 = vst [vmem:[#allocation29_spill] sm:$0xff] %v6435_v58  ;;  %v6440_v49 = vsub.f32 %v2752_v31, %v6435_v58  ;;  %2924 = vmatmul.f32.gmra.mxu0 %v2923_v41  ;;  %3229 = vmatmul.f32.gmra.mxu1 %v6435_v58 }
 0x39d   :  { %2574 = vmatmul.f32.gmra.mxu2 %v7391_v33  ;;  %v2668_v8 = vpop.f32.mrf.mxu3 }
 0x39e   :  { %v2669_v16 = vadd.f32 %v2668_v8, %v2508_v22  ;;  %v7089_v32 = vand.u32 4294901760, %v6440_v49  ;;  %v7395_v8 = vld [vmem:[#allocation38_spill] sm:$0xff]  ;;  %v6466_v47 = vpop.f32.mrf.mxu0 }
 0x39f   :  { %v2083_v26 = vadd.f32 %v6162_v6, %v7395_v8  ;;  %v7398_v8 = vld [vmem:[#allocation14_spill] sm:$0xff] }
 0x3a0   :  { %v2511_v34 = vpop.f32.mrf.mxu2  ;;  %v2753_v31 = vmax.f32 %v2669_v16, 0.0  ;;  %v2930_v0 = vsub.f32 %v6440_v49, %v7089_v32 }
 0x3a1   :  { %v2512_v22 = vadd.f32 %v2511_v34, %v2287_v13  ;;  %v2293_v12 = vadd.f32 %v6143_v54, %v2083_v26  ;;  %v7397_v13 = vand.u32 4294901760, %v6216_v61 }
 0x3a2   :  { %v6454_v41 = vand.u32 4294901760, %v2753_v31  ;;  %2735 = vmatmul.f32.gmra.mxu3 %v7391_v33  ;;  %v2931_v58 = vand.u32 4294901760, %v2930_v0 }
 0x3a4   :  { %7393 = vst [vmem:[#allocation28_spill] sm:$0xff] %v6454_v41  ;;  %v6459_v9 = vsub.f32 %v2753_v31, %v6454_v41  ;;  %2932 = vmatmul.f32.gmra.mxu0 %v2931_v58  ;;  %3233 = vmatmul.f32.gmra.mxu1 %v6454_v41  ;;  %v6471_v58 = vpop.f32.mrf.mxu1 }
 0x3a5   :  { %3355 = vmatmul.f32.vlgmr.msra.gmra.mxu2 %v6216_v61  ;;  %v2672_v16 = vpop.f32.mrf.mxu3 }
 0x3a6   :  { %v2673_v32 = vadd.f32 %v2672_v16, %v2512_v22  ;;  %v7092_v15 = vand.u32 4294901760, %v6459_v9 }
 0x3a8   :  { %v2515_v33 = vpop.f32.mrf.mxu2  ;;  %v2754_v0 = vmax.f32 %v2673_v32, 0.0  ;;  %v2938_v34 = vsub.f32 %v6459_v9, %v7092_v15  ;;  %v2088_v15 = vadd.f32 %v6186_v50, %v7398_v8  ;;  %v7401_v8 = vld [vmem:[#allocation65_spill] sm:$0xff] }
 0x3a9   :  { %v2516_v16 = vadd.f32 %v2515_v33, %v2293_v12 }
 0x3aa   :  { %v6473_v31 = vand.u32 4294901760, %v2754_v0  ;;  %3549 = vmatmul.f32.vlgmr.msra.gmra.mxu3 %v7397_v13  ;;  %v2939_v6 = vand.u32 4294901760, %v2938_v34  ;;  %v6489_v34 = vpop.f32.mrf.mxu0  ;;  %v2299_v13 = vadd.f32 %v6168_v23, %v2088_v15 }
 0x3ac   :  { %7396 = vst [vmem:[#allocation37_spill] sm:$0xff] %v6473_v31  ;;  %v6479_v22 = vsub.f32 %v2754_v0, %v6473_v31  ;;  %2940 = vmatmul.f32.gmra.mxu0 %v2939_v6  ;;  %3237 = vmatmul.f32.gmra.mxu1 %v6473_v31  ;;  %v7400_v6 = vand.u32 4294901760, %v6233_v43 }
 0x3ad   :  { %3360 = vmatmul.f32.gmra.mxu2 %v6233_v43  ;;  %v2676_v32 = vpop.f32.mrf.mxu3 }
 0x3ae   :  { %v2677_v41 = vadd.f32 %v2676_v32, %v2516_v16  ;;  %v7095_v54 = vand.u32 4294901760, %v6479_v22 }
 0x3b0   :  { %v2519_v26 = vpop.f32.mrf.mxu2  ;;  %v2755_v61 = vmax.f32 %v2677_v41, 0.0  ;;  %v2946_v0 = vsub.f32 %v6479_v22, %v7095_v54  ;;  %v2093_v54 = vadd.f32 %v6206_v10, %v7401_v8  ;;  %v7404_v8 = vld [vmem:[#allocation39_spill] sm:$0xff] }
 0x3b1   :  { %v6491_v33 = vpop.f32.mrf.mxu1  ;;  %v2520_v41 = vadd.f32 %v2519_v26, %v2299_v13 }
 0x3b2   :  { %v6493_v12 = vand.u32 4294901760, %v2755_v61  ;;  %3555 = vmatmul.f32.gmra.mxu3 %v7400_v6  ;;  %v2947_v50 = vand.u32 4294901760, %v2946_v0  ;;  %v2305_v13 = vadd.f32 %v6193_v42, %v2093_v54 }
 0x3b4   :  { %7399 = vst [vmem:[#allocation53_spill] sm:$0xff] %v6493_v12  ;;  %v6499_v16 = vsub.f32 %v2755_v61, %v6493_v12  ;;  %2948 = vmatmul.f32.gmra.mxu0 %v2947_v50  ;;  %3241 = vmatmul.f32.gmra.mxu1 %v6493_v12  ;;  %v7403_v50 = vand.u32 4294901760, %v6248_v59 }
 0x3b5   :  { %3365 = vmatmul.f32.gmra.mxu2 %v6248_v59  ;;  %v2680_v32 = vpop.f32.mrf.mxu3 }
 0x3b6   :  { %v2681_v31 = vadd.f32 %v2680_v32, %v2520_v41  ;;  %v7098_v23 = vand.u32 4294901760, %v6499_v16 }
 0x3b8   :  { %v2523_v15 = vpop.f32.mrf.mxu2  ;;  %v2756_v43 = vmax.f32 %v2681_v31, 0.0  ;;  %v2954_v61 = vsub.f32 %v6499_v16, %v7098_v23  ;;  %v2098_v23 = vadd.f32 %v6225_v25, %v7404_v8 }
 0x3b9   :  { %v6509_v0 = vpop.f32.mrf.mxu0  ;;  %v6514_v6 = vpop.f32.mrf.mxu1  ;;  %v2524_v31 = vadd.f32 %v2523_v15, %v2305_v13 }
 0x3ba   :  { %v6511_v26 = vand.u32 4294901760, %v2756_v43  ;;  %3561 = vmatmul.f32.gmra.mxu3 %v7403_v50  ;;  %v2955_v10 = vand.u32 4294901760, %v2954_v61  ;;  %v2311_v13 = vadd.f32 %v6209_v27, %v2098_v23 }
 0x3bc   :  { %7402 = vst [vmem:[#allocation58_spill] sm:$0xff] %v6511_v26  ;;  %v6519_v41 = vsub.f32 %v2756_v43, %v6511_v26  ;;  %2956 = vmatmul.f32.gmra.mxu0 %v2955_v10  ;;  %3245 = vmatmul.f32.gmra.mxu1 %v6511_v26  ;;  %v7406_v10 = vand.u32 4294901760, %v6263_v48 }
 0x3bd   :  { %3370 = vmatmul.f32.gmra.mxu2 %v6263_v48  ;;  %v2684_v32 = vpop.f32.mrf.mxu3 }
 0x3be   :  { %v2685_v42 = vadd.f32 %v2684_v32, %v2524_v31  ;;  %v7101_v54 = vand.u32 4294901760, %v6519_v41 }
 0x3c0   :  { %v2527_v12 = vpop.f32.mrf.mxu2  ;;  %v2757_v59 = vmax.f32 %v2685_v42, 0.0  ;;  %v2962_v43 = vsub.f32 %v6519_v41, %v7101_v54  ;;  %v7407_v42 = vld [vmem:[#allocation16_spill] sm:$0xff] }
 0x3c1   :  { %v6529_v61 = vpop.f32.mrf.mxu0  ;;  %v6534_v50 = vpop.f32.mrf.mxu1  ;;  %v2528_v32 = vadd.f32 %v2527_v12, %v2311_v13  ;;  %v2103_v54 = vadd.f32 %v6245_v36, %v7407_v42 }
 0x3c2   :  { %v6531_v15 = vand.u32 4294901760, %v2757_v59  ;;  %3567 = vmatmul.f32.gmra.mxu3 %v7406_v10  ;;  %v2963_v25 = vand.u32 4294901760, %v2962_v43 }
 0x3c3   :  { %v2317_v13 = vadd.f32 %v6230_v7, %v2103_v54 }
 0x3c4   :  { %7405 = vst [vmem:[#allocation40_spill] sm:$0xff] %v6531_v15  ;;  %v6539_v31 = vsub.f32 %v2757_v59, %v6531_v15  ;;  %2964 = vmatmul.f32.gmra.mxu0 %v2963_v25  ;;  %3249 = vmatmul.f32.gmra.mxu1 %v6531_v15  ;;  %v7408_v25 = vand.u32 4294901760, %v6280_v17 }
 0x3c5   :  { %3375 = vmatmul.f32.gmra.mxu2 %v6280_v17  ;;  %v2688_v8 = vpop.f32.mrf.mxu3 }
 0x3c6   :  { %v2689_v27 = vadd.f32 %v2688_v8, %v2528_v32  ;;  %v7104_v23 = vand.u32 4294901760, %v6539_v31 }
 0x3c8   :  { %v2531_v26 = vpop.f32.mrf.mxu2  ;;  %v2758_v48 = vmax.f32 %v2689_v27, 0.0  ;;  %v2970_v59 = vsub.f32 %v6539_v31, %v7104_v23  ;;  %v7409_v27 = vld [vmem:[#allocation15_spill] sm:$0xff] }
 0x3c9   :  { %v6549_v43 = vpop.f32.mrf.mxu0  ;;  %v3190_v10 = vpop.f32.mrf.mxu1  ;;  %v2532_v8 = vadd.f32 %v2531_v26, %v2317_v13  ;;  %v2108_v23 = vadd.f32 %v6267_v18, %v7409_v27 }
 0x3ca   :  { %v6551_v12 = vand.u32 4294901760, %v2758_v48  ;;  %3573 = vmatmul.f32.gmra.mxu3 %v7408_v25  ;;  %v2971_v36 = vand.u32 4294901760, %v2970_v59  ;;  %v7410_v25 = vand.u32 4294901760, %v6297_v57 }
 0x3cb   :  { %v2323_v13 = vadd.f32 %v6252_v55, %v2108_v23 }
 0x3cc   :  { %v6557_v32 = vsub.f32 %v2758_v48, %v6551_v12  ;;  %2972 = vmatmul.f32.gmra.mxu0 %v2971_v36  ;;  %3253 = vmatmul.f32.gmra.mxu1 %v6551_v12 }
 0x3cd   :  { %3380 = vmatmul.f32.gmra.mxu2 %v6297_v57  ;;  %v2692_v42 = vpop.f32.mrf.mxu3 }
 0x3ce   :  { %v2693_v15 = vadd.f32 %v2692_v42, %v2532_v8  ;;  %v2977_v7 = vand.u32 4294901760, %v6557_v32  ;;  %v7411_v42 = vld [vmem:[#allocation18_spill] sm:$0xff] }
 0x3cf   :  { %v2113_v27 = vadd.f32 %v6286_v5, %v7411_v42  ;;  %v7413_v42 = vld [vmem:[#allocation20_spill] sm:$0xff] }
 0x3d0   :  { %v2535_v54 = vpop.f32.mrf.mxu2  ;;  %v2759_v17 = vmax.f32 %v2693_v15, 0.0  ;;  %v2978_v48 = vsub.f32 %v6557_v32, %v2977_v7 }
 0x3d1   :  { %v2853_v59 = vpop.f32.mrf.mxu0  ;;  %v3194_v10 = vpop.f32.mrf.mxu1  ;;  %v2536_v8 = vadd.f32 %v2535_v54, %v2323_v13  ;;  %v2329_v13 = vadd.f32 %v6271_v40, %v2113_v27 }
 0x3d2   :  { %v6567_v26 = vand.u32 4294901760, %v2759_v17  ;;  %3579 = vmatmul.f32.gmra.mxu3 %v7410_v25  ;;  %v2979_v36 = vand.u32 4294901760, %v2978_v48  ;;  %v7412_v25 = vand.u32 4294901760, %v6314_v56 }
 0x3d4   :  { %v6573_v18 = vsub.f32 %v2759_v17, %v6567_v26  ;;  %2980 = vmatmul.f32.gmra.mxu0 %v2979_v36  ;;  %3257 = vmatmul.f32.gmra.mxu1 %v6567_v26 }
 0x3d5   :  { %3385 = vmatmul.f32.gmra.mxu2 %v6314_v56  ;;  %v2696_v15 = vpop.f32.mrf.mxu3 }
 0x3d6   :  { %v2697_v59 = vadd.f32 %v2696_v15, %v2536_v8  ;;  %v2985_v55 = vand.u32 4294901760, %v6573_v18 }
 0x3d8   :  { %v2539_v23 = vpop.f32.mrf.mxu2  ;;  %v2760_v57 = vmax.f32 %v2697_v59, 0.0  ;;  %v2986_v17 = vsub.f32 %v6573_v18, %v2985_v55  ;;  %v2118_v59 = vadd.f32 %v6306_v4, %v7413_v42  ;;  %v7415_v42 = vld [vmem:[#allocation22_spill] sm:$0xff] }
 0x3d9   :  { %v2861_v48 = vpop.f32.mrf.mxu0  ;;  %v3198_v10 = vpop.f32.mrf.mxu1  ;;  %v2540_v8 = vadd.f32 %v2539_v23, %v2329_v13 }
 0x3da   :  { %v6583_v54 = vand.u32 4294901760, %v2760_v57  ;;  %3585 = vmatmul.f32.gmra.mxu3 %v7412_v25  ;;  %v2987_v36 = vand.u32 4294901760, %v2986_v17  ;;  %v2335_v13 = vadd.f32 %v6291_v35, %v2118_v59  ;;  %v7414_v25 = vand.u32 4294901760, %v6332_v14 }
 0x3dc   :  { %v6589_v5 = vsub.f32 %v2760_v57, %v6583_v54  ;;  %2988 = vmatmul.f32.gmra.mxu0 %v2987_v36  ;;  %3261 = vmatmul.f32.gmra.mxu1 %v6583_v54 }
 0x3dd   :  { %3390 = vmatmul.f32.gmra.mxu2 %v6332_v14  ;;  %v2700_v15 = vpop.f32.mrf.mxu3 }
 0x3de   :  { %v2701_v48 = vadd.f32 %v2700_v15, %v2540_v8  ;;  %v2993_v40 = vand.u32 4294901760, %v6589_v5 }
 0x3e0   :  { %v2543_v27 = vpop.f32.mrf.mxu2  ;;  %v2761_v56 = vmax.f32 %v2701_v48, 0.0  ;;  %v2994_v57 = vsub.f32 %v6589_v5, %v2993_v40  ;;  %v2123_v48 = vadd.f32 %v6329_v28, %v7415_v42  ;;  %v7417_v42 = vld [vmem:[#allocation50_spill] sm:$0xff] }
 0x3e1   :  { %v2869_v17 = vpop.f32.mrf.mxu0  ;;  %v3202_v10 = vpop.f32.mrf.mxu1  ;;  %v2544_v8 = vadd.f32 %v2543_v27, %v2335_v13 }
 0x3e2   :  { %v6599_v23 = vand.u32 4294901760, %v2761_v56  ;;  %3591 = vmatmul.f32.gmra.mxu3 %v7414_v25  ;;  %v2995_v36 = vand.u32 4294901760, %v2994_v57  ;;  %v2341_v13 = vadd.f32 %v6311_v51, %v2123_v48  ;;  %v7416_v25 = vand.u32 4294901760, %v6349_v19 }
 0x3e4   :  { %v6605_v4 = vsub.f32 %v2761_v56, %v6599_v23  ;;  %2996 = vmatmul.f32.gmra.mxu0 %v2995_v36  ;;  %3265 = vmatmul.f32.gmra.mxu1 %v6599_v23 }
 0x3e5   :  { %3395 = vmatmul.f32.gmra.mxu2 %v6349_v19  ;;  %v2704_v15 = vpop.f32.mrf.mxu3 }
 0x3e6   :  { %v2705_v17 = vadd.f32 %v2704_v15, %v2544_v8  ;;  %v3001_v35 = vand.u32 4294901760, %v6605_v4 }
 0x3e8   :  { %v2547_v59 = vpop.f32.mrf.mxu2  ;;  %v2762_v14 = vmax.f32 %v2705_v17, 0.0  ;;  %v3002_v56 = vsub.f32 %v6605_v4, %v3001_v35  ;;  %v2128_v17 = vadd.f32 %v6352_v44, %v7417_v42  ;;  %v7419_v42 = vld [vmem:[#allocation54_spill] sm:$0xff] }
 0x3e9   :  { %v2877_v57 = vpop.f32.mrf.mxu0  ;;  %v3206_v10 = vpop.f32.mrf.mxu1  ;;  %v2548_v8 = vadd.f32 %v2547_v59, %v2341_v13 }
 0x3ea   :  { %v6615_v27 = vand.u32 4294901760, %v2762_v14  ;;  %3597 = vmatmul.f32.gmra.mxu3 %v7416_v25  ;;  %v3003_v36 = vand.u32 4294901760, %v3002_v56  ;;  %v2347_v13 = vadd.f32 %v6335_v11, %v2128_v17  ;;  %v7418_v25 = vand.u32 4294901760, %v6368_v53 }
 0x3ec   :  { %v6621_v28 = vsub.f32 %v2762_v14, %v6615_v27  ;;  %3004 = vmatmul.f32.gmra.mxu0 %v3003_v36  ;;  %3269 = vmatmul.f32.gmra.mxu1 %v6615_v27 }
 0x3ed   :  { %3400 = vmatmul.f32.gmra.mxu2 %v6368_v53  ;;  %v2708_v15 = vpop.f32.mrf.mxu3 }
 0x3ee   :  { %v2709_v57 = vadd.f32 %v2708_v15, %v2548_v8  ;;  %v3009_v51 = vand.u32 4294901760, %v6621_v28 }
 0x3f0   :  { %v2551_v48 = vpop.f32.mrf.mxu2  ;;  %v2763_v19 = vmax.f32 %v2709_v57, 0.0  ;;  %v3010_v14 = vsub.f32 %v6621_v28, %v3009_v51  ;;  %v2133_v57 = vadd.f32 %v6375_v30, %v7419_v42  ;;  %v7421_v42 = vld [vmem:[#allocation57_spill] sm:$0xff] }
 0x3f1   :  { %v2885_v56 = vpop.f32.mrf.mxu0  ;;  %v3210_v10 = vpop.f32.mrf.mxu1  ;;  %v2552_v8 = vadd.f32 %v2551_v48, %v2347_v13 }
 0x3f2   :  { %v6631_v59 = vand.u32 4294901760, %v2763_v19  ;;  %3603 = vmatmul.f32.gmra.mxu3 %v7418_v25  ;;  %v3011_v36 = vand.u32 4294901760, %v3010_v14  ;;  %v2353_v13 = vadd.f32 %v6358_v45, %v2133_v57  ;;  %v7420_v25 = vand.u32 4294901760, %v6387_v63 }
 0x3f4   :  { %v6637_v44 = vsub.f32 %v2763_v19, %v6631_v59  ;;  %3012 = vmatmul.f32.gmra.mxu0 %v3011_v36  ;;  %3273 = vmatmul.f32.gmra.mxu1 %v6631_v59 }
 0x3f5   :  { %3405 = vmatmul.f32.gmra.mxu2 %v6387_v63  ;;  %v2712_v15 = vpop.f32.mrf.mxu3 }
 0x3f6   :  { %v2713_v56 = vadd.f32 %v2712_v15, %v2552_v8  ;;  %v3017_v11 = vand.u32 4294901760, %v6637_v44 }
 0x3f8   :  { %v2555_v17 = vpop.f32.mrf.mxu2  ;;  %v2764_v53 = vmax.f32 %v2713_v56, 0.0  ;;  %v3018_v19 = vsub.f32 %v6637_v44, %v3017_v11  ;;  %v2138_v56 = vadd.f32 %v6397_v3, %v7421_v42  ;;  %v2143_v42 = vadd.f32 %v6420_v2, %v6131_v1 }
 0x3f9   :  { %v2893_v14 = vpop.f32.mrf.mxu0  ;;  %v3214_v10 = vpop.f32.mrf.mxu1  ;;  %v2556_v8 = vadd.f32 %v2555_v17, %v2353_v13 }
 0x3fa   :  { %v6647_v48 = vand.u32 4294901760, %v2764_v53  ;;  %3609 = vmatmul.f32.gmra.mxu3 %v7420_v25  ;;  %v3019_v36 = vand.u32 4294901760, %v3018_v19  ;;  %v2359_v13 = vadd.f32 %v6380_v52, %v2138_v56  ;;  %v7422_v25 = vand.u32 4294901760, %v6406_v37 }
 0x3fc   :  { %v6653_v30 = vsub.f32 %v2764_v53, %v6647_v48  ;;  %3020 = vmatmul.f32.gmra.mxu0 %v3019_v36  ;;  %3277 = vmatmul.f32.gmra.mxu1 %v6647_v48 }
 0x3fd   :  { %3410 = vmatmul.f32.gmra.mxu2 %v6406_v37  ;;  %v2716_v15 = vpop.f32.mrf.mxu3 }
 0x3fe   :  { %v2717_v14 = vadd.f32 %v2716_v15, %v2556_v8  ;;  %v3025_v45 = vand.u32 4294901760, %v6653_v30 }
 0x400   :  { %v2559_v57 = vpop.f32.mrf.mxu2  ;;  %v2765_v63 = vmax.f32 %v2717_v14, 0.0  ;;  %v3026_v53 = vsub.f32 %v6653_v30, %v3025_v45 }
 0x401   :  { %v2901_v19 = vpop.f32.mrf.mxu0  ;;  %v3218_v10 = vpop.f32.mrf.mxu1  ;;  %v2560_v8 = vadd.f32 %v2559_v57, %v2359_v13 }
 0x402   :  { %v6663_v17 = vand.u32 4294901760, %v2765_v63  ;;  %3615 = vmatmul.f32.gmra.mxu3 %v7422_v25  ;;  %v3027_v36 = vand.u32 4294901760, %v3026_v53  ;;  %v2365_v19 = vadd.f32 %v6403_v38, %v2143_v42  ;;  %v7423_v10 = vand.u32 4294901760, %v6423_v62 }
 0x404   :  { %v6669_v3 = vsub.f32 %v2765_v63, %v6663_v17  ;;  %3028 = vmatmul.f32.gmra.mxu0 %v3027_v36  ;;  %3281 = vmatmul.f32.gmra.mxu1 %v6663_v17 }
 0x405   :  { %3415 = vmatmul.f32.gmra.mxu2 %v6423_v62  ;;  %v2720_v15 = vpop.f32.mrf.mxu3 }
 0x406   :  { %v2721_v14 = vadd.f32 %v2720_v15, %v2560_v8  ;;  %v3033_v52 = vand.u32 4294901760, %v6669_v3  ;;  %v2148_v8 = vadd.f32 %v6443_v46, %v6152_v29 }
 0x408   :  { %v2563_v56 = vpop.f32.mrf.mxu2  ;;  %v2766_v37 = vmax.f32 %v2721_v14, 0.0  ;;  %v3034_v63 = vsub.f32 %v6669_v3, %v3033_v52 }
 0x409   :  { %v2909_v53 = vpop.f32.mrf.mxu0  ;;  %v3222_v13 = vpop.f32.mrf.mxu1  ;;  %v2564_v2 = vadd.f32 %v2563_v56, %v2365_v19  ;;  %v7424_v19 = vand.u32 4294901760, %v6440_v49 }
 0x40a   :  { %v6679_v57 = vand.u32 4294901760, %v2766_v37  ;;  %3621 = vmatmul.f32.gmra.mxu3 %v7423_v10  ;;  %v3035_v25 = vand.u32 4294901760, %v3034_v63  ;;  %v2371_v63 = vadd.f32 %v6426_v20, %v2148_v8 }
 0x40c   :  { %v6685_v1 = vsub.f32 %v2766_v37, %v6679_v57  ;;  %3036 = vmatmul.f32.gmra.mxu0 %v3035_v25  ;;  %3285 = vmatmul.f32.gmra.mxu1 %v6679_v57  ;;  %v2153_v25 = vadd.f32 %v6466_v47, %v6172_v24 }
 0x40d   :  { %3420 = vmatmul.f32.gmra.mxu2 %v6440_v49  ;;  %v2724_v36 = vpop.f32.mrf.mxu3 }
 0x40e   :  { %v2725_v15 = vadd.f32 %v2724_v36, %v2564_v2  ;;  %v3041_v38 = vand.u32 4294901760, %v6685_v1 }
 0x410   :  { %v2567_v42 = vpop.f32.mrf.mxu2  ;;  %v2767_v62 = vmax.f32 %v2725_v15, 0.0  ;;  %v3042_v14 = vsub.f32 %v6685_v1, %v3041_v38 }
 0x411   :  { %v2917_v37 = vpop.f32.mrf.mxu0  ;;  %v3226_v53 = vpop.f32.mrf.mxu1  ;;  %v2568_v46 = vadd.f32 %v2567_v42, %v2371_v63 }
 0x412   :  { %v6695_v56 = vand.u32 4294901760, %v2767_v62  ;;  %3627 = vmatmul.f32.gmra.mxu3 %v7424_v19  ;;  %v3043_v13 = vand.u32 4294901760, %v3042_v14  ;;  %v7425_v37 = vand.u32 4294901760, %v6459_v9  ;;  %v2158_v19 = vadd.f32 %v6489_v34, %v6190_v39 }
 0x414   :  { %v6701_v29 = vsub.f32 %v2767_v62, %v6695_v56  ;;  %3044 = vmatmul.f32.gmra.mxu0 %v3043_v13  ;;  %3289 = vmatmul.f32.gmra.mxu1 %v6695_v56  ;;  %v2377_v62 = vadd.f32 %v6449_v60, %v2153_v25  ;;  %v4195_v60 = vld [vmem:[%s6898_s6] ss:$0 sm:$0xff]  ;;  %v2383_v39 = vadd.f32 %v6471_v58, %v2158_v19 }
 0x415   :  { %3425 = vmatmul.f32.gmra.mxu2 %v6459_v9  ;;  %v2728_v10 = vpop.f32.mrf.mxu3 }
 0x416   :  { %v2729_v2 = vadd.f32 %v2728_v10, %v2568_v46  ;;  %v3049_v20 = vand.u32 4294901760, %v6701_v29 }
 0x418   :  { %v2571_v36 = vpop.f32.mrf.mxu2  ;;  %v2768_v49 = vmax.f32 %v2729_v2, 0.0  ;;  %v3050_v8 = vsub.f32 %v6701_v29, %v3049_v20 }
 0x419   :  { %v2925_v15 = vpop.f32.mrf.mxu0  ;;  %v3230_v14 = vpop.f32.mrf.mxu1  ;;  %v2572_v47 = vadd.f32 %v2571_v36, %v2377_v62  ;;  %v2830_v36 = vadd.f32 %v4195_v60, %v6509_v0 }
 0x41a   :  { %v6711_v42 = vand.u32 4294901760, %v2768_v49  ;;  %3633 = vmatmul.f32.gmra.mxu3 %v7425_v37  ;;  %v3051_v63 = vand.u32 4294901760, %v3050_v8  ;;  %v7426_v8 = vand.u32 4294901760, %v6479_v22 }
 0x41c   :  { %v6717_v24 = vsub.f32 %v2768_v49, %v6711_v42  ;;  %3052 = vmatmul.f32.gmra.mxu0 %v3051_v63  ;;  %3293 = vmatmul.f32.gmra.mxu1 %v6711_v42  ;;  %v3179_v63 = vadd.f32 %v6491_v33, %v2830_v36 }
 0x41d   :  { %3430 = vmatmul.f32.gmra.mxu2 %v6479_v22  ;;  %v2732_v53 = vpop.f32.mrf.mxu3 }
 0x41e   :  { %v2733_v9 = vadd.f32 %v2732_v53, %v2572_v47  ;;  %v3057_v13 = vand.u32 4294901760, %v6717_v24 }
 0x420   :  { %v2575_v46 = vpop.f32.mrf.mxu2  ;;  %v2769_v10 = vmax.f32 %v2733_v9, 0.0  ;;  %v3058_v25 = vsub.f32 %v6717_v24, %v3057_v13 }
 0x421   :  { %v2933_v2 = vpop.f32.mrf.mxu0  ;;  %v3234_v34 = vpop.f32.mrf.mxu1  ;;  %v2576_v14 = vadd.f32 %v2575_v46, %v2383_v39  ;;  %v2838_v46 = vadd.f32 %v4195_v60, %v6529_v61 }
 0x422   :  { %v6731_v49 = vand.u32 4294901760, %v2769_v10  ;;  %3639 = vmatmul.f32.gmra.mxu3 %v7426_v8  ;;  %v3059_v15 = vand.u32 4294901760, %v3058_v25  ;;  %v7427_v2 = vand.u32 4294901760, %v6499_v16 }
 0x423   :  { %v3183_v61 = vadd.f32 %v6514_v6, %v2838_v46 }
 0x424   :  { %v6737_v62 = vsub.f32 %v2769_v10, %v6731_v49  ;;  %3060 = vmatmul.f32.gmra.mxu0 %v3059_v15  ;;  %3297 = vmatmul.f32.gmra.mxu1 %v6731_v49 }
 0x425   :  { %3435 = vmatmul.f32.gmra.mxu2 %v6499_v16  ;;  %v2736_v37 = vpop.f32.mrf.mxu3 }
 0x426   :  { %v2737_v0 = vadd.f32 %v2736_v37, %v2576_v14  ;;  %v3065_v58 = vand.u32 4294901760, %v6737_v62 }
 0x428   :  { %v3356_v47 = vpop.f32.mrf.mxu2  ;;  %v2770_v53 = vmax.f32 %v2737_v0, 0.0  ;;  %v3066_v19 = vsub.f32 %v6737_v62, %v3065_v58  ;;  %v2846_v0 = vadd.f32 %v4195_v60, %v6549_v43  ;;  %v7429_v43 = vand.u32 4294901760, %v6539_v31 }
 0x429   :  { %v3357_v22 = vadd.f32 %v3356_v47, %v3179_v63  ;;  %v2941_v9 = vpop.f32.mrf.mxu0  ;;  %v3238_v25 = vpop.f32.mrf.mxu1  ;;  %v7428_v47 = vand.u32 4294901760, %v6519_v41 }
 0x42a   :  { %v6747_v10 = vand.u32 4294901760, %v2770_v53  ;;  %3645 = vmatmul.f32.gmra.mxu3 %v7427_v2  ;;  %v3067_v39 = vand.u32 4294901760, %v3066_v19  ;;  %v3187_v19 = vadd.f32 %v6534_v50, %v2846_v0  ;;  %v7431_v50 = vld [vmem:[#allocation24_spill] sm:$0xff] }
 0x42c   :  { %v6752_v33 = vsub.f32 %v2770_v53, %v6747_v10  ;;  %3068 = vmatmul.f32.gmra.mxu0 %v3067_v39  ;;  %3301 = vmatmul.f32.gmra.mxu1 %v6747_v10 }
 0x42d   :  { %3440 = vmatmul.f32.gmra.mxu2 %v6519_v41  ;;  %v3550_v36 = vpop.f32.mrf.mxu3  ;;  %v7430_v41 = vld [vmem:[#allocation63_spill] sm:$0xff] }
 0x42e   :  { %v6756_v34 = vadd.f32 %v3550_v36, %v3357_v22  ;;  %v3073_v8 = vand.u32 4294901760, %v6752_v33 }
 0x430   :  { %v3361_v15 = vpop.f32.mrf.mxu2  ;;  %v3074_v16 = vsub.f32 %v6752_v33, %v3073_v8 }
 0x431   :  { %v3362_v14 = vadd.f32 %v3361_v15, %v3183_v61  ;;  %v2949_v37 = vpop.f32.mrf.mxu0  ;;  %v3242_v63 = vpop.f32.mrf.mxu1 }
 0x432   :  { %3651 = vmatmul.f32.gmra.mxu3 %v7428_v47  ;;  %v3075_v53 = vand.u32 4294901760, %v3074_v16  ;;  %v7432_v37 = vld [vmem:[#allocation23_spill] sm:$0xff]  ;;  %v7433_v47 = vld [vmem:[#allocation25_spill] sm:$0xff] }
 0x434   :  { %3076 = vmatmul.f32.gmra.mxu0 %v3075_v53  ;;  %3965 = vmatmul.f32.vlgmr.msra.gmra.mxu1 %v6211_v21 }
 0x435   :  { %3445 = vmatmul.f32.gmra.mxu2 %v6539_v31  ;;  %v3556_v6 = vpop.f32.mrf.mxu3 }
 0x436   :  { %v6768_v22 = vadd.f32 %v3556_v6, %v3362_v14 }
 0x438   :  { %v3366_v9 = vpop.f32.mrf.mxu2 }
 0x439   :  { %v3367_v46 = vadd.f32 %v3366_v9, %v3187_v19  ;;  %v2957_v25 = vpop.f32.mrf.mxu0  ;;  %v3246_v2 = vpop.f32.mrf.mxu1  ;;  %v7434_v19 = vld [vmem:[#allocation31_spill] sm:$0xff] }
 0x43a   :  { %3657 = vmatmul.f32.gmra.mxu3 %v7429_v43  ;;  %v7435_v25 = vld [vmem:[#allocation41_spill] sm:$0xff]  ;;  %v7436_v43 = vld [vmem:[#allocation27_spill] sm:$0xff] }
 0x43c   :  { %3804 = vmatmul.f32.vlgmr.msra.gmra.mxu0 %v6211_v21  ;;  %3969 = vmatmul.f32.gmra.mxu1 %v7430_v41 }
 0x43d   :  { %3450 = vmatmul.f32.gmra.mxu2 %v6557_v32  ;;  %v3562_v60 = vpop.f32.mrf.mxu3 }
 0x43e   :  { %v6776_v39 = vadd.f32 %v3562_v60, %v3367_v46 }
 0x440   :  { %v3371_v36 = vpop.f32.mrf.mxu2 }
 0x441   :  { %v2965_v61 = vpop.f32.mrf.mxu0  ;;  %v3250_v15 = vpop.f32.mrf.mxu1 }
 0x442   :  { %3663 = vmatmul.f32.gmra.mxu3 %v2977_v7 }
 0x444   :  { %3808 = vmatmul.f32.gmra.mxu0 %v7430_v41  ;;  %3973 = vmatmul.f32.gmra.mxu1 %v7431_v50  ;;  %v7437_v41 = vld [vmem:[#allocation26_spill] sm:$0xff] }
 0x445   :  { %3455 = vmatmul.f32.gmra.mxu2 %v6573_v18  ;;  %v3568_v31 = vpop.f32.mrf.mxu3 }
 0x448   :  { %v3376_v14 = vpop.f32.mrf.mxu2 }
 0x449   :  { %v2973_v21 = vpop.f32.mrf.mxu0  ;;  %v3254_v16 = vpop.f32.mrf.mxu1 }
 0x44a   :  { %3669 = vmatmul.f32.gmra.mxu3 %v2985_v55 }
 0x44c   :  { %3812 = vmatmul.f32.gmra.mxu0 %v7431_v50  ;;  %3977 = vmatmul.f32.gmra.mxu1 %v7432_v37 }
 0x44d   :  { %3460 = vmatmul.f32.gmra.mxu2 %v6589_v5  ;;  %v3574_v32 = vpop.f32.mrf.mxu3 }
 0x450   :  { %v3381_v7 = vpop.f32.mrf.mxu2 }
 0x451   :  { %v2981_v0 = vpop.f32.mrf.mxu0  ;;  %v3258_v63 = vpop.f32.mrf.mxu1 }
 0x452   :  { %3675 = vmatmul.f32.gmra.mxu3 %v2993_v40  ;;  %v7446_v0 = vld [vmem:[#allocation58_spill] sm:$0xff] }
 0x454   :  { %3816 = vmatmul.f32.gmra.mxu0 %v7432_v37  ;;  %3981 = vmatmul.f32.gmra.mxu1 %v7433_v47  ;;  %v7445_v37 = vld [vmem:[#allocation53_spill] sm:$0xff] }
 0x455   :  { %3465 = vmatmul.f32.gmra.mxu2 %v6605_v4  ;;  %v3580_v18 = vpop.f32.mrf.mxu3 }
 0x458   :  { %v3386_v55 = vpop.f32.mrf.mxu2 }
 0x459   :  { %v2989_v53 = vpop.f32.mrf.mxu0  ;;  %v3262_v6 = vpop.f32.mrf.mxu1 }
 0x45a   :  { %3681 = vmatmul.f32.gmra.mxu3 %v3001_v35 }
 0x45c   :  { %3820 = vmatmul.f32.gmra.mxu0 %v7433_v47  ;;  %3985 = vmatmul.f32.gmra.mxu1 %v7434_v19 }
 0x45d   :  { %3470 = vmatmul.f32.gmra.mxu2 %v6621_v28  ;;  %v3586_v5 = vpop.f32.mrf.mxu3 }
 0x460   :  { %v3391_v40 = vpop.f32.mrf.mxu2 }
 0x461   :  { %v2997_v9 = vpop.f32.mrf.mxu0  ;;  %v3266_v46 = vpop.f32.mrf.mxu1 }
 0x462   :  { %3687 = vmatmul.f32.gmra.mxu3 %v3009_v51 }
 0x464   :  { %3824 = vmatmul.f32.gmra.mxu0 %v7434_v19  ;;  %3989 = vmatmul.f32.gmra.mxu1 %v7435_v25  ;;  %v7447_v19 = vld [vmem:[#allocation40_spill] sm:$0xff] }
 0x465   :  { %3475 = vmatmul.f32.gmra.mxu2 %v6637_v44  ;;  %v3592_v4 = vpop.f32.mrf.mxu3 }
 0x468   :  { %v3396_v53 = vpop.f32.mrf.mxu2 }
 0x469   :  { %v3005_v35 = vpop.f32.mrf.mxu0  ;;  %v3270_v2 = vpop.f32.mrf.mxu1 }
 0x46a   :  { %3693 = vmatmul.f32.gmra.mxu3 %v3017_v11  ;;  %v7438_v11 = vld [vmem:[#allocation33_spill] sm:$0xff] }
 0x46c   :  { %3828 = vmatmul.f32.gmra.mxu0 %v7435_v25  ;;  %3993 = vmatmul.f32.gmra.mxu1 %v7436_v43 }
 0x46d   :  { %3480 = vmatmul.f32.gmra.mxu2 %v6653_v30 }
 0x470   :  { %v3401_v25 = vpop.f32.mrf.mxu2 }
 0x471   :  { %v3013_v28 = vpop.f32.mrf.mxu0  ;;  %v3274_v51 = vpop.f32.mrf.mxu1 }
 0x472   :  { %3699 = vmatmul.f32.gmra.mxu3 %v3025_v45  ;;  %v7439_v45 = vld [vmem:[#allocation45_spill] sm:$0xff] }
 0x474   :  { %3832 = vmatmul.f32.gmra.mxu0 %v7436_v43  ;;  %3997 = vmatmul.f32.gmra.mxu1 %v7437_v41 }
 0x475   :  { %3485 = vmatmul.f32.gmra.mxu2 %v6669_v3 }
 0x478   :  { %v3406_v43 = vpop.f32.mrf.mxu2 }
 0x479   :  { %v3021_v60 = vpop.f32.mrf.mxu0  ;;  %v3278_v44 = vpop.f32.mrf.mxu1 }
 0x47a   :  { %3705 = vmatmul.f32.gmra.mxu3 %v3033_v52  ;;  %v7440_v52 = vld [vmem:[#allocation34_spill] sm:$0xff] }
 0x47c   :  { %3836 = vmatmul.f32.gmra.mxu0 %v7437_v41  ;;  %4001 = vmatmul.f32.gmra.mxu1 %v7438_v11 }
 0x47d   :  { %3490 = vmatmul.f32.gmra.mxu2 %v6685_v1 }
 0x481   :  { %v3029_v36 = vpop.f32.mrf.mxu0  ;;  %v3282_v30 = vpop.f32.mrf.mxu1 }
 0x482   :  { %3711 = vmatmul.f32.gmra.mxu3 %v3041_v38  ;;  %v7441_v38 = vld [vmem:[#allocation49_spill] sm:$0xff] }
 0x484   :  { %3840 = vmatmul.f32.gmra.mxu0 %v7438_v11  ;;  %4005 = vmatmul.f32.gmra.mxu1 %v7439_v45  ;;  %v3411_v11 = vpop.f32.mrf.mxu2 }
 0x485   :  { %3495 = vmatmul.f32.gmra.mxu2 %v6701_v29 }
 0x489   :  { %v3037_v61 = vpop.f32.mrf.mxu0  ;;  %v3286_v3 = vpop.f32.mrf.mxu1 }
 0x48a   :  { %3717 = vmatmul.f32.gmra.mxu3 %v3049_v20  ;;  %v7442_v20 = vld [vmem:[#allocation29_spill] sm:$0xff] }
 0x48c   :  { %3844 = vmatmul.f32.gmra.mxu0 %v7439_v45  ;;  %4009 = vmatmul.f32.gmra.mxu1 %v7440_v52  ;;  %v3416_v45 = vpop.f32.mrf.mxu2 }
 0x48d   :  { %3500 = vmatmul.f32.gmra.mxu2 %v6717_v24 }
 0x491   :  { %v3045_v15 = vpop.f32.mrf.mxu0  ;;  %v3290_v1 = vpop.f32.mrf.mxu1 }
 0x492   :  { %3723 = vmatmul.f32.gmra.mxu3 %v3057_v13  ;;  %v7443_v13 = vld [vmem:[#allocation28_spill] sm:$0xff] }
 0x494   :  { %3848 = vmatmul.f32.gmra.mxu0 %v7440_v52  ;;  %4013 = vmatmul.f32.gmra.mxu1 %v7441_v38  ;;  %v3421_v52 = vpop.f32.mrf.mxu2 }
 0x495   :  { %3505 = vmatmul.f32.gmra.mxu2 %v6737_v62  ;;  %v7444_v62 = vld [vmem:[#allocation37_spill] sm:$0xff] }
 0x499   :  { %v3053_v50 = vpop.f32.mrf.mxu0  ;;  %v3294_v29 = vpop.f32.mrf.mxu1 }
 0x49a   :  { %3729 = vmatmul.f32.gmra.mxu3 %v3065_v58 }
 0x49c   :  { %3852 = vmatmul.f32.gmra.mxu0 %v7441_v38  ;;  %4017 = vmatmul.f32.gmra.mxu1 %v7442_v20  ;;  %v3426_v38 = vpop.f32.mrf.mxu2 }
 0x49d   :  { %3510 = vmatmul.f32.gmra.mxu2 %v6752_v33 }
 0x4a1   :  { %v3061_v31 = vpop.f32.mrf.mxu0  ;;  %v3298_v24 = vpop.f32.mrf.mxu1 }
 0x4a2   :  { %3735 = vmatmul.f32.gmra.mxu3 %v3073_v8 }
 0x4a4   :  { %3856 = vmatmul.f32.gmra.mxu0 %v7442_v20  ;;  %4021 = vmatmul.f32.gmra.mxu1 %v7443_v13  ;;  %v3431_v31 = vpop.f32.mrf.mxu2 }
 0x4a9   :  { %v3069_v14 = vpop.f32.mrf.mxu0  ;;  %v3302_v21 = vpop.f32.mrf.mxu1 }
 0x4ac   :  { %3860 = vmatmul.f32.gmra.mxu0 %v7443_v13  ;;  %4025 = vmatmul.f32.gmra.mxu1 %v7444_v62  ;;  %v3436_v14 = vpop.f32.mrf.mxu2 }
 0x4b1   :  { %v3077_v58 = vpop.f32.mrf.mxu0  ;;  %v3966_v16 = vpop.f32.mrf.mxu1 }
 0x4b4   :  { %3864 = vmatmul.f32.gmra.mxu0 %v7444_v62  ;;  %4029 = vmatmul.f32.gmra.mxu1 %v7445_v37  ;;  %v3441_v58 = vpop.f32.mrf.mxu2 }
 0x4b9   :  { %v3805_v32 = vpop.f32.mrf.mxu0  ;;  %v3970_v8 = vpop.f32.mrf.mxu1 }
 0x4ba   :  { %v3806_v33 = vadd.f32 %v3805_v32, %v6756_v34  ;;  %v3598_v34 = vpop.f32.mrf.mxu3 }
 0x4bc   :  { %v3967_v7 = vadd.f32 %v3966_v16, %v3806_v33  ;;  %3868 = vmatmul.f32.gmra.mxu0 %v7445_v37  ;;  %4033 = vmatmul.f32.gmra.mxu1 %v7446_v0  ;;  %v3446_v32 = vpop.f32.mrf.mxu2 }
 0x4be   :  { %4094 = vst.msk [vmem:[#allocation10] sm:$0xff] %vm4093_vm1, %v3967_v7 }
 0x4c1   :  { %v3809_v63 = vpop.f32.mrf.mxu0  ;;  %v3974_v18 = vpop.f32.mrf.mxu1 }
 0x4c2   :  { %v3810_v47 = vadd.f32 %v3809_v63, %v6768_v22  ;;  %v3604_v4 = vpop.f32.mrf.mxu3 }
 0x4c4   :  { %v3971_v55 = vadd.f32 %v3970_v8, %v3810_v47  ;;  %3872 = vmatmul.f32.gmra.mxu0 %v7446_v0  ;;  %4037 = vmatmul.f32.gmra.mxu1 %v7447_v19  ;;  %v3451_v0 = vpop.f32.mrf.mxu2 }
 0x4c5   :  { %v4160_v6 = vld [vmem:[#allocation10] sm:$0xff] }
 0x4c6   :  { %4161 = vst [vmem:[%s6899_s7] sm:$0xff] %v4160_v6 }
 0x4c7   :  { %4095 = vst.msk [vmem:[#allocation10 + $0x8] sm:$0xff] %vm4093_vm1, %v3971_v55 }
 0x4c9   :  { %v3813_v5 = vpop.f32.mrf.mxu0  ;;  %v3978_v9 = vpop.f32.mrf.mxu1 }
 0x4ca   :  { %v3814_v40 = vadd.f32 %v3813_v5, %v6776_v39  ;;  %v3610_v41 = vpop.f32.mrf.mxu3 }
 0x4cc   :  { %v3975_v22 = vadd.f32 %v3974_v18, %v3814_v40  ;;  %3876 = vmatmul.f32.gmra.mxu0 %v7447_v19  ;;  %4041 = vmatmul.f32.gmra.mxu1 %v6551_v12  ;;  %v3456_v55 = vpop.f32.mrf.mxu2 }
 0x4ce   :  { %v4162_v46 = vld [vmem:[#allocation10 + $0x8] sm:$0xff]  ;;  %4096 = vst.msk [vmem:[#allocation10 + $0x10] sm:$0xff] %vm4093_vm1, %v3975_v22 }
 0x4cf   :  { %4163 = vst [vmem:[%s6899_s7 + $0x8] sm:$0xff] %v4162_v46 }
 0x4d1   :  { %v3817_v35 = vpop.f32.mrf.mxu0  ;;  %v3982_v2 = vpop.f32.mrf.mxu1 }
 0x4d4   :  { %3880 = vmatmul.f32.gmra.mxu0 %v6551_v12  ;;  %4045 = vmatmul.f32.gmra.mxu1 %v6567_v26  ;;  %v3616_v12 = vpop.f32.mrf.mxu3  ;;  %v3461_v19 = vpop.f32.mrf.mxu2 }
 0x4d5   :  { %v4164_v39 = vld [vmem:[#allocation10 + $0x10] sm:$0xff] }
 0x4d6   :  { %4165 = vst [vmem:[%s6899_s7 + $0x10] sm:$0xff] %v4164_v39 }
 0x4d9   :  { %v3821_v28 = vpop.f32.mrf.mxu0  ;;  %v3986_v51 = vpop.f32.mrf.mxu1 }
 0x4dc   :  { %3884 = vmatmul.f32.gmra.mxu0 %v6567_v26  ;;  %4049 = vmatmul.f32.gmra.mxu1 %v6583_v54  ;;  %v3622_v61 = vpop.f32.mrf.mxu3  ;;  %v3466_v9 = vpop.f32.mrf.mxu2 }
 0x4e1   :  { %v3825_v60 = vpop.f32.mrf.mxu0  ;;  %v3990_v44 = vpop.f32.mrf.mxu1 }
 0x4e4   :  { %3888 = vmatmul.f32.gmra.mxu0 %v6583_v54  ;;  %4053 = vmatmul.f32.gmra.mxu1 %v6599_v23  ;;  %v3628_v15 = vpop.f32.mrf.mxu3  ;;  %v3471_v35 = vpop.f32.mrf.mxu2 }
 0x4e9   :  { %v3829_v36 = vpop.f32.mrf.mxu0  ;;  %v3994_v30 = vpop.f32.mrf.mxu1 }
 0x4ec   :  { %3892 = vmatmul.f32.gmra.mxu0 %v6599_v23  ;;  %4057 = vmatmul.f32.gmra.mxu1 %v6615_v27  ;;  %v3634_v29 = vpop.f32.mrf.mxu3  ;;  %v3476_v43 = vpop.f32.mrf.mxu2 }
 0x4f1   :  { %v3833_v3 = vpop.f32.mrf.mxu0  ;;  %v3998_v26 = vpop.f32.mrf.mxu1 }
 0x4f4   :  { %3896 = vmatmul.f32.gmra.mxu0 %v6615_v27  ;;  %4061 = vmatmul.f32.gmra.mxu1 %v6631_v59  ;;  %v3640_v24 = vpop.f32.mrf.mxu3  ;;  %v3481_v60 = vpop.f32.mrf.mxu2 }
 0x4f9   :  { %v3837_v54 = vpop.f32.mrf.mxu0  ;;  %v4002_v1 = vpop.f32.mrf.mxu1 }
 0x4fc   :  { %3900 = vmatmul.f32.gmra.mxu0 %v6631_v59  ;;  %4065 = vmatmul.f32.gmra.mxu1 %v6647_v48  ;;  %v3646_v21 = vpop.f32.mrf.mxu3  ;;  %v3486_v36 = vpop.f32.mrf.mxu2 }
 0x501   :  { %v3841_v23 = vpop.f32.mrf.mxu0  ;;  %v4006_v50 = vpop.f32.mrf.mxu1 }
 0x504   :  { %3904 = vmatmul.f32.gmra.mxu0 %v6647_v48  ;;  %4069 = vmatmul.f32.gmra.mxu1 %v6663_v17  ;;  %v3652_v16 = vpop.f32.mrf.mxu3  ;;  %v3491_v52 = vpop.f32.mrf.mxu2 }
 0x509   :  { %v3845_v20 = vpop.f32.mrf.mxu0  ;;  %v4010_v27 = vpop.f32.mrf.mxu1 }
 0x50c   :  { %3908 = vmatmul.f32.gmra.mxu0 %v6663_v17  ;;  %4073 = vmatmul.f32.gmra.mxu1 %v6679_v57  ;;  %v3658_v8 = vpop.f32.mrf.mxu3  ;;  %v3496_v38 = vpop.f32.mrf.mxu2 }
 0x511   :  { %v3849_v13 = vpop.f32.mrf.mxu0  ;;  %v4014_v59 = vpop.f32.mrf.mxu1 }
 0x514   :  { %3912 = vmatmul.f32.gmra.mxu0 %v6679_v57  ;;  %4077 = vmatmul.f32.gmra.mxu1 %v6695_v56  ;;  %v3664_v63 = vpop.f32.mrf.mxu3  ;;  %v3501_v20 = vpop.f32.mrf.mxu2 }
 0x519   :  { %v3853_v62 = vpop.f32.mrf.mxu0  ;;  %v4018_v48 = vpop.f32.mrf.mxu1 }
 0x51c   :  { %3916 = vmatmul.f32.gmra.mxu0 %v6695_v56  ;;  %4081 = vmatmul.f32.gmra.mxu1 %v6711_v42  ;;  %v3506_v13 = vpop.f32.mrf.mxu2 }
 0x521   :  { %v3857_v17 = vpop.f32.mrf.mxu0  ;;  %v4022_v37 = vpop.f32.mrf.mxu1 }
 0x524   :  { %3920 = vmatmul.f32.gmra.mxu0 %v6711_v42  ;;  %4085 = vmatmul.f32.gmra.mxu1 %v6731_v49  ;;  %v3670_v42 = vpop.f32.mrf.mxu3  ;;  %v3511_v48 = vpop.f32.mrf.mxu2 }
 0x529   :  { %v3861_v57 = vpop.f32.mrf.mxu0  ;;  %v4026_v33 = vpop.f32.mrf.mxu1 }
 0x52c   :  { %3924 = vmatmul.f32.gmra.mxu0 %v6731_v49  ;;  %4089 = vmatmul.f32.gmra.mxu1 %v6747_v10  ;;  %v3676_v34 = vpop.f32.mrf.mxu3 }
 0x531   :  { %v3865_v7 = vpop.f32.mrf.mxu0  ;;  %v4030_v56 = vpop.f32.mrf.mxu1 }
 0x534   :  { %3928 = vmatmul.f32.gmra.mxu0 %v6747_v10  ;;  %v3682_v46 = vpop.f32.mrf.mxu3 }
 0x539   :  { %v3869_v47 = vpop.f32.mrf.mxu0  ;;  %v4034_v18 = vpop.f32.mrf.mxu1 }
 0x53c   :  { %v3688_v2 = vpop.f32.mrf.mxu3 }
 0x541   :  { %v3873_v53 = vpop.f32.mrf.mxu0  ;;  %v4038_v6 = vpop.f32.mrf.mxu1 }
 0x544   :  { %v3694_v28 = vpop.f32.mrf.mxu3 }
 0x549   :  { %v3877_v5 = vpop.f32.mrf.mxu0  ;;  %v4042_v40 = vpop.f32.mrf.mxu1 }
 0x54c   :  { %v3700_v44 = vpop.f32.mrf.mxu3 }
 0x551   :  { %v3881_v49 = vpop.f32.mrf.mxu0  ;;  %v4046_v22 = vpop.f32.mrf.mxu1 }
 0x554   :  { %v3706_v61 = vpop.f32.mrf.mxu3 }
 0x559   :  { %v3885_v25 = vpop.f32.mrf.mxu0  ;;  %v4050_v4 = vpop.f32.mrf.mxu1 }
 0x55c   :  { %v3712_v15 = vpop.f32.mrf.mxu3 }
 0x561   :  { %v3889_v10 = vpop.f32.mrf.mxu0  ;;  %v4054_v39 = vpop.f32.mrf.mxu1 }
 0x564   :  { %v3718_v23 = vpop.f32.mrf.mxu3 }
 0x569   :  { %v3893_v51 = vpop.f32.mrf.mxu0  ;;  %v4058_v41 = vpop.f32.mrf.mxu1 }
 0x56c   :  { %v3724_v27 = vpop.f32.mrf.mxu3 }
 0x571   :  { %v3897_v11 = vpop.f32.mrf.mxu0  ;;  %v4062_v12 = vpop.f32.mrf.mxu1 }
 0x574   :  { %v3730_v14 = vpop.f32.mrf.mxu3 }
 0x579   :  { %v3901_v30 = vpop.f32.mrf.mxu0  ;;  %v4066_v45 = vpop.f32.mrf.mxu1 }
 0x57c   :  { %v3736_v58 = vpop.f32.mrf.mxu3 }
 0x581   :  { %v3905_v3 = vpop.f32.mrf.mxu0  ;;  %v4070_v26 = vpop.f32.mrf.mxu1 }
 0x589   :  { %v3909_v54 = vpop.f32.mrf.mxu0  ;;  %v4074_v1 = vpop.f32.mrf.mxu1 }
 0x591   :  { %v3913_v50 = vpop.f32.mrf.mxu0  ;;  %v4078_v29 = vpop.f32.mrf.mxu1 }
 0x599   :  { %v3917_v31 = vpop.f32.mrf.mxu0  ;;  %v4082_v24 = vpop.f32.mrf.mxu1 }
 0x5a1   :  { %v3921_v59 = vpop.f32.mrf.mxu0  ;;  %v4086_v21 = vpop.f32.mrf.mxu1 }
 0x5a9   :  { %v3925_v62 = vpop.f32.mrf.mxu0  ;;  %v4090_v17 = vpop.f32.mrf.mxu1 }
 0x5b1   :  { %v3929_v16 = vpop.f32.mrf.mxu0 }
 0x5b2   :  { %4171 = vsyncpa [#allocation3], 1 }
 0x5b3   :  { %4172 = vsyncpa [#allocation5], 1 }
 0x5b4   :  { %4173 = vsyncpa [#allocation8], 1 }

</bundles_post_ra>
